<compile_context>
chip_gen: v6e
topology: v6e:2x2x1
jax: 0.10.0
libtpu: 0.0.40
codegen_flags: <defaults>
</compile_context>

<pallas_src>
import functools
import math

import jax
import jax.numpy as jnp
from jax.experimental import pallas as pl
from jax.experimental.pallas import tpu as pltpu

_NEG_INF = -1e30
_VMEM_LIMIT = 64 * 1024 * 1024


# ------------------------------ helpers -------------------------------------


def _round_up(x, m):
    return (x + m - 1) // m * m


def _pad2d(x, rows, cols):
    r, c = x.shape
    if r == rows and c == cols:
        return x
    return jnp.pad(x, ((0, rows - r), (0, cols - c)))


def _pick_tile(n, unit, cap):
    """Largest multiple of `unit` that divides `n` and is <= cap (n is a multiple of unit)."""
    cap = max(unit, min(cap, n))
    best = unit
    d = unit
    while d <= cap:
        if n % d == 0:
            best = d
        d += unit
    return best


# ------------------------- tiled fused matmul kernel -------------------------


def _matmul_kernel(*refs, has_ln, has_bias, act, has_residual, k_valid, k_tile):
    x_ref, w_ref = refs[0], refs[1]
    idx = 2
    if has_ln:
        g_ref, bb_ref = refs[idx], refs[idx + 1]
        idx += 2
    if has_bias:
        b_ref = refs[idx]
        idx += 1
    if has_residual:
        r_ref = refs[idx]
        idx += 1
    o_ref = refs[idx]
    acc_ref = refs[idx + 1]

    @pl.when(pl.program_id(2) == 0)
    def _init():
        acc_ref[...] = jnp.zeros_like(acc_ref)

    if has_ln:
        # LayerNorm prologue: full feature dim lives in this single K tile.
        xv = x_ref[...].astype(jnp.float32)
        if k_valid < k_tile:
            # Padded feature columns are zeros; normalize over the true K only.
            lane = jax.lax.broadcasted_iota(jnp.int32, xv.shape, 1)
            msk = (lane < k_valid).astype(jnp.float32)
            inv_n = 1.0 / k_valid
            mu = jnp.sum(xv, axis=-1, keepdims=True) * inv_n
            var = jnp.sum(jnp.square(xv - mu) * msk, axis=-1, keepdims=True) * inv_n
        else:
            mu = jnp.mean(xv, axis=-1, keepdims=True)
            var = jnp.mean(jnp.square(xv - mu), axis=-1, keepdims=True)
        xv = (xv - mu) * jax.lax.rsqrt(var + 1e-5) * g_ref[...] + bb_ref[...]
        x = xv.astype(jnp.bfloat16)
    else:
        x = x_ref[...]

    acc_ref[...] += jnp.dot(x, w_ref[...], preferred_element_type=jnp.float32)

    @pl.when(pl.program_id(2) == pl.num_programs(2) - 1)
    def _finalize():
        out = acc_ref[...]
        if has_bias:
            out = out + b_ref[...]
        if act == "quick_gelu":
            out = out * jax.nn.sigmoid(1.702 * out)          # CLIP QuickGELU, f32 math
        if has_residual:
            out = out + r_ref[...].astype(jnp.float32)
        o_ref[...] = out.astype(o_ref.dtype)


def pallas_linear(x, w, b=None, *, ln=None, act=None, residual=None,
                  out_dtype=jnp.bfloat16, max_tm=512, max_tn=512, max_tk=1024):
    """out = act(LN?(x) @ w + b) + residual.  bf16 MXU inputs, f32 accumulation."""
    M, K = x.shape
    Kw, N = w.shape
    assert K == Kw

    Mp = _round_up(M, 8)
    Np = _round_up(N, 128)
    Kp = _round_up(K, 128)

    has_ln = ln is not None
    tm = _pick_tile(Mp, 8, max_tm)
    tn = _pick_tile(Np, 128, max_tn)
    tk = Kp if has_ln else _pick_tile(Kp, 128, max_tk)   # LN prologue needs full K in one tile

    x_p = _pad2d(x.astype(jnp.bfloat16), Mp, Kp)
    w_p = _pad2d(w.astype(jnp.bfloat16), Kp, Np)

    inputs = [x_p, w_p]
    in_specs = [
        pl.BlockSpec((tm, tk), lambda i, j, k: (i, k)),
        pl.BlockSpec((tk, tn), lambda i, j, k: (k, j)),
    ]
    if has_ln:
        g, bb = ln
        inputs.append(_pad2d(g.reshape(1, K).astype(jnp.float32), 1, Kp))
        inputs.append(_pad2d(bb.reshape(1, K).astype(jnp.float32), 1, Kp))
        in_specs.append(pl.BlockSpec((1, tk), lambda i, j, k: (0, k)))
        in_specs.append(pl.BlockSpec((1, tk), lambda i, j, k: (0, k)))
    has_bias = b is not None
    if has_bias:
        inputs.append(_pad2d(b.reshape(1, N).astype(jnp.float32), 1, Np))
        in_specs.append(pl.BlockSpec((1, tn), lambda i, j, k: (0, j)))
    has_residual = residual is not None
    if has_residual:
        inputs.append(_pad2d(residual, Mp, Np))
        in_specs.append(pl.BlockSpec((tm, tn), lambda i, j, k: (i, j)))

    kernel = functools.partial(
        _matmul_kernel, has_ln=has_ln, has_bias=has_bias, act=act,
        has_residual=has_residual, k_valid=K, k_tile=tk,
    )
    flops = 2 * Mp * Np * Kp
    transcendentals = Mp * Np if act == "quick_gelu" else 0
    bytes_accessed = 2 * (Mp * Kp + Kp * Np + Mp * Np) + (4 * Np if has_bias else 0) \
        + (2 * Mp * Np if has_residual else 0)

    out = pl.pallas_call(
        kernel,
        out_shape=jax.ShapeDtypeStruct((Mp, Np), out_dtype),
        grid=(Mp // tm, Np // tn, Kp // tk),
        in_specs=in_specs,
        out_specs=pl.BlockSpec((tm, tn), lambda i, j, k: (i, j)),
        scratch_shapes=[pltpu.VMEM((tm, tn), jnp.float32)],
        compiler_params=pltpu.CompilerParams(
            dimension_semantics=("parallel", "parallel", "arbitrary"),
            vmem_limit_bytes=_VMEM_LIMIT,
        ),
        cost_estimate=pl.CostEstimate(
            flops=flops, transcendentals=transcendentals, bytes_accessed=bytes_accessed
        ),
    )(*inputs)
    return out[:M, :N]


# ------------------------------ layer norm (standalone) -----------------------


def _layernorm_kernel(x_ref, g_ref, b_ref, o_ref):
    x = x_ref[...].astype(jnp.float32)
    mu = jnp.mean(x, axis=-1, keepdims=True)
    var = jnp.mean(jnp.square(x - mu), axis=-1, keepdims=True)
    y = (x - mu) * jax.lax.rsqrt(var + 1e-5) * g_ref[...] + b_ref[...]
    o_ref[...] = y.astype(o_ref.dtype)


def pallas_layernorm(x, gamma, beta, *, out_dtype=jnp.bfloat16, max_rows=512):
    M, D = x.shape
    Mp = _round_up(M, 8)
    tr = _pick_tile(Mp, 8, max_rows)
    x_p = x if Mp == M else jnp.pad(x, ((0, Mp - M), (0, 0)))
    out = pl.pallas_call(
        _layernorm_kernel,
        out_shape=jax.ShapeDtypeStruct((Mp, D), out_dtype),
        grid=(Mp // tr,),
        in_specs=[
            pl.BlockSpec((tr, D), lambda i: (i, 0)),
            pl.BlockSpec((1, D), lambda i: (0, 0)),
            pl.BlockSpec((1, D), lambda i: (0, 0)),
        ],
        out_specs=pl.BlockSpec((tr, D), lambda i: (i, 0)),
        compiler_params=pltpu.CompilerParams(dimension_semantics=("parallel",)),
    )(x_p, gamma.reshape(1, D).astype(jnp.float32), beta.reshape(1, D).astype(jnp.float32))
    return out if Mp == M else out[:M]


# ------------------------- flash-style multi-head attention ------------------


def _flash_attn_kernel(q_ref, k_ref, v_ref, o_ref, m_sc, l_sc, acc_sc, *,
                       seq_len, kv_tile, need_mask):
    kv_i = pl.program_id(2)

    @pl.when(kv_i == 0)
    def _init():
        m_sc[...] = jnp.full_like(m_sc, _NEG_INF)
        l_sc[...] = jnp.zeros_like(l_sc)
        acc_sc[...] = jnp.zeros_like(acc_sc)

    q = q_ref[0]                                   # (tq, Dh) bf16, 1/sqrt(Dh) folded into w_q
    k = k_ref[0]                                   # (tkv, Dh) bf16
    v = v_ref[0]                                   # (tkv, Dh) bf16

    s = jnp.einsum("qd,kd->qk", q, k, preferred_element_type=jnp.float32)   # (tq, tkv)

    if need_mask:
        kv_pos = kv_i * kv_tile + jax.lax.broadcasted_iota(jnp.int32, s.shape, 1)
        valid = kv_pos < seq_len
        s = jnp.where(valid, s, _NEG_INF)

    m_prev = m_sc[...]
    m_new = jnp.maximum(m_prev, jnp.max(s, axis=-1, keepdims=True))
    alpha = jnp.exp(m_prev - m_new)
    p = jnp.exp(s - m_new)                         # f32 softmax math
    if need_mask:
        p = jnp.where(valid, p, 0.0)               # robust even for fully-padded KV tiles
    l_sc[...] = alpha * l_sc[...] + jnp.sum(p, axis=-1, keepdims=True)
    acc_sc[...] = alpha * acc_sc[...] + jnp.dot(
        p.astype(jnp.bfloat16), v, preferred_element_type=jnp.float32
    )
    m_sc[...] = m_new

    @pl.when(kv_i == pl.num_programs(2) - 1)
    def _finalize():
        inv_l = pl.reciprocal(l_sc[...], approx=True)           # EUP, not VALU
        o_ref[0] = (acc_sc[...] * inv_l).astype(o_ref.dtype)


def pallas_flash_attention(q, k, v, *, seq_len, q_tile, kv_tile):
    """q, k, v: (B*heads, Lp, head_dim) bf16 -> (B*heads, Lp, head_dim) bf16."""
    BH, Lp, Dh = q.shape
    n_q, n_kv = Lp // q_tile, Lp // kv_tile
    kernel = functools.partial(
        _flash_attn_kernel, seq_len=seq_len, kv_tile=kv_tile, need_mask=(Lp != seq_len)
    )
    flops = 4 * BH * Lp * Lp * Dh
    return pl.pallas_call(
        kernel,
        out_shape=jax.ShapeDtypeStruct((BH, Lp, Dh), q.dtype),
        grid=(BH, n_q, n_kv),
        in_specs=[
            pl.BlockSpec((1, q_tile, Dh), lambda b, qi, ki: (b, qi, 0)),
            pl.BlockSpec((1, kv_tile, Dh), lambda b, qi, ki: (b, ki, 0)),
            pl.BlockSpec((1, kv_tile, Dh), lambda b, qi, ki: (b, ki, 0)),
        ],
        out_specs=pl.BlockSpec((1, q_tile, Dh), lambda b, qi, ki: (b, qi, 0)),
        scratch_shapes=[
            pltpu.VMEM((q_tile, 1), jnp.float32),      # running max
            pltpu.VMEM((q_tile, 1), jnp.float32),      # running sum
            pltpu.VMEM((q_tile, Dh), jnp.float32),     # output accumulator
        ],
        compiler_params=pltpu.CompilerParams(
            dimension_semantics=("parallel", "parallel", "arbitrary"),
        ),
        cost_estimate=pl.CostEstimate(
            flops=flops,
            transcendentals=BH * Lp * Lp,
            bytes_accessed=8 * BH * Lp * Dh,
        ),
    )(q, k, v)


# ----------------------------- parameter init --------------------------------


def init_params(key, *, in_ch, patch, width, layers, heads, embed_dim, n_class, grid):
    """Synthetic parameters matching CLIP VisionTransformer + cls_head shapes."""
    # TODO(synk): loading pretrained CLIP weights from disk has no in-script equivalent;
    #             deterministic synthetic weights are used instead.
    scale = 0.02
    wdt = jnp.bfloat16
    ks = iter(jax.random.split(key, 16 + 12 * layers))
    nxt = lambda: next(ks)
    rnd = lambda shape: (scale * jax.random.normal(nxt(), shape, jnp.float32))

    head_dim = width // heads
    att_scale = 1.0 / math.sqrt(head_dim)
    patch_dim = in_ch * patch * patch
    p = {
        "patch": patch,
        "width": width,
        "heads": heads,
        "conv1_w": rnd((patch_dim, width)).astype(wdt),            # conv as matmul, no bias
        "class_embedding": rnd((width,)).astype(wdt),
        "positional_embedding": rnd((grid * grid + 1, width)).astype(wdt),
        "ln_pre_g": jnp.ones((width,), jnp.float32),
        "ln_pre_b": jnp.zeros((width,), jnp.float32),
        "ln_post_g": jnp.ones((width,), jnp.float32),
        "ln_post_b": jnp.zeros((width,), jnp.float32),
        "proj": rnd((width, embed_dim)).astype(wdt),               # no bias
        "cls_w": rnd((embed_dim, n_class)).astype(wdt),
        "cls_b": rnd((n_class,)),
        "blocks": [],
    }
    for _ in range(layers):
        w_q, b_q = rnd((width, width)), rnd((width,))
        w_k, b_k = rnd((width, width)), rnd((width,))
        w_v, b_v = rnd((width, width)), rnd((width,))
        blk = {
            "ln1_g": jnp.ones((width,), jnp.float32),
            "ln1_b": jnp.zeros((width,), jnp.float32),
            "ln2_g": jnp.ones((width,), jnp.float32),
            "ln2_b": jnp.zeros((width,), jnp.float32),
            # Fused MHA in_proj (q|k|v); the 1/sqrt(head_dim) scale is folded into q's
            # weight + bias so the attention kernel never rescales q.
            "w_qkv": jnp.concatenate([w_q * att_scale, w_k, w_v], axis=1).astype(wdt),
            "b_qkv": jnp.concatenate([b_q * att_scale, b_k, b_v]),
            "w_out": rnd((width, width)).astype(wdt),
            "b_out": rnd((width,)),
            "w_fc": rnd((width, 4 * width)).astype(wdt),
            "b_fc": rnd((4 * width,)),
            "w_proj": rnd((4 * width, width)).astype(wdt),
            "b_proj": rnd((width,)),
        }
        p["blocks"].append(blk)
    return p


# ------------------------------- forward pass --------------------------------


def clip_image_encoder_forward(image, params):
    """image: (B, C, H, W) float32 NCHW -> logits (B, n_class) float32."""
    B, C, H, W_img = image.shape
    P = params["patch"]
    width = params["width"]
    heads = params["heads"]
    head_dim = width // heads
    Gh, Gw = H // P, W_img // P
    num_patches = Gh * Gw
    L = num_patches + 1

    # --- patch embedding (conv1, kernel == stride == P, no bias) as a matmul ---
    patches = image.reshape(B, C, Gh, P, Gw, P)
    patches = patches.transpose(0, 2, 4, 1, 3, 5).reshape(B * num_patches, C * P * P)
    x = pallas_linear(patches, params["conv1_w"])                      # (B*num_patches, width)
    x = x.reshape(B, num_patches, width)

    # --- prepend class token, add positional embedding ---
    cls_tok = jnp.broadcast_to(params["class_embedding"], (B, 1, width)).astype(jnp.bfloat16)
    x = jnp.concatenate([cls_tok, x.astype(jnp.bfloat16)], axis=1)     # (B, L, width)
    x = x + params["positional_embedding"][None].astype(jnp.bfloat16)

    # --- pad token axis once to a multiple of 128 (lane-dense tiles; padded keys masked) ---
    Lp = _round_up(L, 128)
    if Lp != L:
        x = jnp.pad(x, ((0, 0), (0, Lp - L), (0, 0)))
    t_seq = _pick_tile(Lp, 128, 256)

    # ln_pre stays standalone: its output IS the residual-stream input.
    xf = pallas_layernorm(x.reshape(B * Lp, width), params["ln_pre_g"], params["ln_pre_b"])

    # --- transformer residual attention blocks ---
    for blk in params["blocks"]:
        # attention branch: (LN1 fused) -> fused QKV matmul -> flash attention -> out proj (+bias+residual)
        qkv = pallas_linear(xf, blk["w_qkv"], blk["b_qkv"],
                            ln=(blk["ln1_g"], blk["ln1_b"]))           # (B*Lp, 3*width)
        qkv = qkv.reshape(B, Lp, 3, heads, head_dim)
        qkv = qkv.transpose(2, 0, 3, 1, 4).reshape(3, B * heads, Lp, head_dim)
        attn = pallas_flash_attention(qkv[0], qkv[1], qkv[2],
                                      seq_len=L, q_tile=t_seq, kv_tile=t_seq)
        attn = attn.reshape(B, heads, Lp, head_dim).transpose(0, 2, 1, 3)
        attn = attn.reshape(B * Lp, width)
        xf = pallas_linear(attn, blk["w_out"], blk["b_out"], residual=xf)

        # MLP branch: (LN2 fused) -> c_fc (+bias+QuickGELU) -> c_proj (+bias+residual)
        h = pallas_linear(xf, blk["w_fc"], blk["b_fc"],
                          ln=(blk["ln2_g"], blk["ln2_b"]), act="quick_gelu")
        xf = pallas_linear(h, blk["w_proj"], blk["b_proj"], residual=xf)

    # --- ln_post (fused into visual projection) on the CLS token, then classification head ---
    cls = xf.reshape(B, Lp, width)[:, 0, :]                            # (B, width)
    feat = pallas_linear(cls, params["proj"],
                         ln=(params["ln_post_g"], params["ln_post_b"]))  # (B, embed_dim)
    logits = pallas_linear(feat, params["cls_w"], params["cls_b"], out_dtype=jnp.float32)
    return logits


# ----------------------------------- main -------------------------------------

if __name__ == "__main__":
    # small synthetic config consistent with the ViT forward
    B, C, R = 2, 3, 16          # batch, channels, image_resolution
    PATCH = 8                   # -> 2x2 grid of patches, seq len 5 (with CLS)
    WIDTH = 32
    LAYERS = 2
    HEADS = 4
    EMBED_DIM = 16              # visual projection output (stand-in for CLIP's 512/768)
    N_CLASS = 10
    GRID = R // PATCH

    key = jax.random.PRNGKey(0)
    k_param, k_img = jax.random.split(key)

    params = init_params(
        k_param,
        in_ch=C,
        patch=PATCH,
        width=WIDTH,
        layers=LAYERS,
        heads=HEADS,
        embed_dim=EMBED_DIM,
        n_class=N_CLASS,
        grid=GRID,
    )

    image = jax.random.normal(k_img, (B, C, R, R), jnp.float32)

    fwd = jax.jit(lambda img: clip_image_encoder_forward(img, params))
    logits = jax.block_until_ready(fwd(image))

    assert logits.shape == (B, N_CLASS), logits.shape
    assert bool(jnp.all(jnp.isfinite(logits)))
    print("KERNEL_OK")
</pallas_src>

<mosaic_0001>
module attributes {stable_mosaic.version = 11 : i64} {
  func.func @_matmul_kernel(%arg0: i32, %arg1: i32, %arg2: i32, %arg3: memref<8x256xbf16, #tpu.memory_space<vmem>>, %arg4: memref<256x128xbf16, #tpu.memory_space<vmem>>, %arg5: memref<8x128xbf16, #tpu.memory_space<vmem>>, %arg6: memref<8x128xf32, #tpu.memory_space<vmem>>) attributes {dimension_semantics = [#tpu.dimension_semantics<parallel>, #tpu.dimension_semantics<parallel>, #tpu.dimension_semantics<arbitrary>], iteration_bounds = array<i64: 1, 1, 1>, scalar_prefetch = 0 : i64, scratch_operands = 1 : i64, tpu.core_type = #tpu.core_type<tc>, window_params = [{transform_indices = @transform_0, window_bounds = array<i64: 8, 256>}, {transform_indices = @transform_1, window_bounds = array<i64: 256, 128>}, {transform_indices = @transform_2, window_bounds = array<i64: 8, 128>}]} {
    %c0_i32 = arith.constant 0 : i32
    %0 = arith.cmpi eq, %arg2, %c0_i32 : i32
    %1 = arith.extui %0 : i1 to i32
    %c0_i32_0 = arith.constant 0 : i32
    %2 = arith.cmpi ne, %1, %c0_i32_0 : i32
    scf.if %2 {
      %cst_10 = arith.constant 0.000000e+00 : f32
      %12 = vector.broadcast %cst_10 : f32 to vector<8x128xf32>
      %c0_11 = arith.constant 0 : index
      %c0_12 = arith.constant 0 : index
      %13 = vector.load %arg6[%c0_11, %c0_12] : memref<8x128xf32, #tpu.memory_space<vmem>>, vector<8x128xf32>
      tpu.vector_store %arg6[%c0_11, %c0_12], %12 {strides = array<i32>} : memref<8x128xf32, #tpu.memory_space<vmem>>, vector<8x128xf32>,
    } else {
    }
    %c0 = arith.constant 0 : index
    %c0_1 = arith.constant 0 : index
    %3 = vector.load %arg3[%c0, %c0_1] : memref<8x256xbf16, #tpu.memory_space<vmem>>, vector<8x256xbf16>
    %c0_2 = arith.constant 0 : index
    %c0_3 = arith.constant 0 : index
    %4 = vector.load %arg6[%c0_2, %c0_3] : memref<8x128xf32, #tpu.memory_space<vmem>>, vector<8x128xf32>
    %c0_4 = arith.constant 0 : index
    %c0_5 = arith.constant 0 : index
    %5 = vector.load %arg4[%c0_4, %c0_5] : memref<256x128xbf16, #tpu.memory_space<vmem>>, vector<256x128xbf16>
    %cst = arith.constant dense<0.000000e+00> : vector<8x128xf32>
    %6 = tpu.matmul %3, %5, %cst {dimension_numbers = #tpu.dot_dimension_numbers<[1], [0], [0], [1], [0, 0, 1, 1], [], []>} : vector<8x256xbf16>, vector<256x128xbf16>, vector<8x128xf32> -> vector<8x128xf32>
    %7 = arith.addf %4, %6 : vector<8x128xf32>
    %c0_6 = arith.constant 0 : index
    %c0_7 = arith.constant 0 : index
    %8 = vector.load %arg6[%c0_6, %c0_7] : memref<8x128xf32, #tpu.memory_space<vmem>>, vector<8x128xf32>
    tpu.vector_store %arg6[%c0_6, %c0_7], %7 {strides = array<i32>} : memref<8x128xf32, #tpu.memory_space<vmem>>, vector<8x128xf32>,
    %c0_i32_8 = arith.constant 0 : i32
    %9 = arith.cmpi eq, %arg2, %c0_i32_8 : i32
    %10 = arith.extui %9 : i1 to i32
    %c0_i32_9 = arith.constant 0 : i32
    %11 = arith.cmpi ne, %10, %c0_i32_9 : i32
    scf.if %11 {
      %c0_10 = arith.constant 0 : index
      %c0_11 = arith.constant 0 : index
      %12 = vector.load %arg6[%c0_10, %c0_11] : memref<8x128xf32, #tpu.memory_space<vmem>>, vector<8x128xf32>
      %13 = arith.truncf %12 : vector<8x128xf32> to vector<8x128xbf16>
      %c0_12 = arith.constant 0 : index
      %c0_13 = arith.constant 0 : index
      %14 = vector.load %arg5[%c0_12, %c0_13] : memref<8x128xbf16, #tpu.memory_space<vmem>>, vector<8x128xbf16>
      tpu.vector_store %arg5[%c0_12, %c0_13], %13 {strides = array<i32>} : memref<8x128xbf16, #tpu.memory_space<vmem>>, vector<8x128xbf16>,
    } else {
    }
    return
  }
  func.func @transform_0(%arg0: i32, %arg1: i32, %arg2: i32) -> (i32, i32) {
    %c0_i32 = arith.constant 0 : i32
    return %arg0, %arg2 : i32, i32
  }
  func.func @transform_1(%arg0: i32, %arg1: i32, %arg2: i32) -> (i32, i32) {
    %c0_i32 = arith.constant 0 : i32
    return %arg2, %arg1 : i32, i32
  }
  func.func @transform_2(%arg0: i32, %arg1: i32, %arg2: i32) -> (i32, i32) {
    %c0_i32 = arith.constant 0 : i32
    return %arg0, %arg1 : i32, i32
  }
}

module attributes {stable_mosaic.version = 11 : i64} {
  func.func @_layernorm_kernel(%arg0: i32, %arg1: memref<256x32xbf16, #tpu.memory_space<vmem>>, %arg2: memref<1x32xf32, #tpu.memory_space<vmem>>, %arg3: memref<1x32xf32, #tpu.memory_space<vmem>>, %arg4: memref<256x32xbf16, #tpu.memory_space<vmem>>) attributes {dimension_semantics = [#tpu.dimension_semantics<parallel>], iteration_bounds = array<i64: 1>, scalar_prefetch = 0 : i64, scratch_operands = 0 : i64, tpu.core_type = #tpu.core_type<tc>, window_params = [{transform_indices = @transform_0, window_bounds = array<i64: 256, 32>}, {pipeline_mode = #tpu.pipeline_mode<synchronous>, transform_indices = @transform_1, window_bounds = array<i64: 1, 32>}, {pipeline_mode = #tpu.pipeline_mode<synchronous>, transform_indices = @transform_2, window_bounds = array<i64: 1, 32>}, {transform_indices = @transform_3, window_bounds = array<i64: 256, 32>}]} {
    %c0 = arith.constant 0 : index
    %c0_0 = arith.constant 0 : index
    %0 = vector.load %arg1[%c0, %c0_0] : memref<256x32xbf16, #tpu.memory_space<vmem>>, vector<256x32xbf16>
    %1 = arith.extf %0 : vector<256x32xbf16> to vector<256x32xf32>
    %cst = arith.constant dense<0.000000e+00> : vector<256xf32>
    %2 = vector.multi_reduction <add>, %1, %cst [1] : vector<256x32xf32> to vector<256xf32>
    %3 = vector.shape_cast %2 : vector<256xf32> to vector<256x1xf32>
    %cst_1 = arith.constant 3.200000e+01 : f32
    %4 = vector.broadcast %cst_1 : f32 to vector<256x1xf32>
    %5 = arith.divf %3, %4 : vector<256x1xf32>
    %6 = vector.broadcast %5 : vector<256x1xf32> to vector<256x32xf32>
    %7 = arith.subf %1, %6 : vector<256x32xf32>
    %8 = arith.mulf %7, %7 : vector<256x32xf32>
    %cst_2 = arith.constant dense<0.000000e+00> : vector<256xf32>
    %9 = vector.multi_reduction <add>, %8, %cst_2 [1] : vector<256x32xf32> to vector<256xf32>
    %10 = vector.shape_cast %9 : vector<256xf32> to vector<256x1xf32>
    %cst_3 = arith.constant 3.200000e+01 : f32
    %11 = vector.broadcast %cst_3 : f32 to vector<256x1xf32>
    %12 = arith.divf %10, %11 : vector<256x1xf32>
    %13 = vector.broadcast %5 : vector<256x1xf32> to vector<256x32xf32>
    %14 = arith.subf %1, %13 : vector<256x32xf32>
    %cst_4 = arith.constant 9.99999974E-6 : f32
    %15 = vector.broadcast %cst_4 : f32 to vector<256x1xf32>
    %16 = arith.addf %12, %15 : vector<256x1xf32>
    %17 = math.rsqrt %16 : vector<256x1xf32>
    %18 = vector.broadcast %17 : vector<256x1xf32> to vector<256x32xf32>
    %19 = arith.mulf %14, %18 : vector<256x32xf32>
    %c0_5 = arith.constant 0 : index
    %c0_6 = arith.constant 0 : index
    %20 = vector.load %arg2[%c0_5, %c0_6] : memref<1x32xf32, #tpu.memory_space<vmem>>, vector<1x32xf32>
    %21 = vector.broadcast %20 : vector<1x32xf32> to vector<256x32xf32>
    %22 = arith.mulf %19, %21 : vector<256x32xf32>
    %c0_7 = arith.constant 0 : index
    %c0_8 = arith.constant 0 : index
    %23 = vector.load %arg3[%c0_7, %c0_8] : memref<1x32xf32, #tpu.memory_space<vmem>>, vector<1x32xf32>
    %24 = vector.broadcast %23 : vector<1x32xf32> to vector<256x32xf32>
    %25 = arith.addf %22, %24 : vector<256x32xf32>
    %26 = arith.truncf %25 : vector<256x32xf32> to vector<256x32xbf16>
    %c0_9 = arith.constant 0 : index
    %c0_10 = arith.constant 0 : index
    %27 = vector.load %arg4[%c0_9, %c0_10] : memref<256x32xbf16, #tpu.memory_space<vmem>>, vector<256x32xbf16>
    tpu.vector_store %arg4[%c0_9, %c0_10], %26 {strides = array<i32>} : memref<256x32xbf16, #tpu.memory_space<vmem>>, vector<256x32xbf16>,
    return
  }
  func.func @transform_0(%arg0: i32) -> (i32, i32) {
    %c0_i32 = arith.constant 0 : i32
    %c0_i32_0 = arith.constant 0 : i32
    return %arg0, %c0_i32 : i32, i32
  }
  func.func @transform_1(%arg0: i32) -> (i32, i32) {
    %c0_i32 = arith.constant 0 : i32
    %c0_i32_0 = arith.constant 0 : i32
    %c0_i32_1 = arith.constant 0 : i32
    return %c0_i32, %c0_i32_0 : i32, i32
  }
  func.func @transform_2(%arg0: i32) -> (i32, i32) {
    %c0_i32 = arith.constant 0 : i32
    %c0_i32_0 = arith.constant 0 : i32
    %c0_i32_1 = arith.constant 0 : i32
    return %c0_i32, %c0_i32_0 : i32, i32
  }
  func.func @transform_3(%arg0: i32) -> (i32, i32) {
    %c0_i32 = arith.constant 0 : i32
    %c0_i32_0 = arith.constant 0 : i32
    return %arg0, %c0_i32 : i32, i32
  }
}

module attributes {stable_mosaic.version = 11 : i64} {
  func.func @_matmul_kernel(%arg0: i32, %arg1: i32, %arg2: i32, %arg3: memref<256x128xbf16, #tpu.memory_space<vmem>>, %arg4: memref<128x128xbf16, #tpu.memory_space<vmem>>, %arg5: memref<1x128xf32, #tpu.memory_space<vmem>>, %arg6: memref<1x128xf32, #tpu.memory_space<vmem>>, %arg7: memref<1x128xf32, #tpu.memory_space<vmem>>, %arg8: memref<256x128xbf16, #tpu.memory_space<vmem>>, %arg9: memref<256x128xf32, #tpu.memory_space<vmem>>) attributes {dimension_semantics = [#tpu.dimension_semantics<parallel>, #tpu.dimension_semantics<parallel>, #tpu.dimension_semantics<arbitrary>], iteration_bounds = array<i64: 1, 1, 1>, scalar_prefetch = 0 : i64, scratch_operands = 1 : i64, tpu.core_type = #tpu.core_type<tc>, window_params = [{transform_indices = @transform_0, window_bounds = array<i64: 256, 128>}, {transform_indices = @transform_1, window_bounds = array<i64: 128, 128>}, {transform_indices = @transform_2, window_bounds = array<i64: 1, 128>}, {transform_indices = @transform_3, window_bounds = array<i64: 1, 128>}, {transform_indices = @transform_4, window_bounds = array<i64: 1, 128>}, {transform_indices = @transform_5, window_bounds = array<i64: 256, 128>}]} {
    %c0_i32 = arith.constant 0 : i32
    %0 = arith.cmpi eq, %arg2, %c0_i32 : i32
    %1 = arith.extui %0 : i1 to i32
    %c0_i32_0 = arith.constant 0 : i32
    %2 = arith.cmpi ne, %1, %c0_i32_0 : i32
    scf.if %2 {
      %cst_19 = arith.constant 0.000000e+00 : f32
      %44 = vector.broadcast %cst_19 : f32 to vector<256x128xf32>
      %c0_20 = arith.constant 0 : index
      %c0_21 = arith.constant 0 : index
      %45 = vector.load %arg9[%c0_20, %c0_21] : memref<256x128xf32, #tpu.memory_space<vmem>>, vector<256x128xf32>
      tpu.vector_store %arg9[%c0_20, %c0_21], %44 {strides = array<i32>} : memref<256x128xf32, #tpu.memory_space<vmem>>, vector<256x128xf32>,
    } else {
    }
    %c0 = arith.constant 0 : index
    %c0_1 = arith.constant 0 : index
    %3 = vector.load %arg3[%c0, %c0_1] : memref<256x128xbf16, #tpu.memory_space<vmem>>, vector<256x128xbf16>
    %4 = arith.extf %3 : vector<256x128xbf16> to vector<256x128xf32>
    %5 = tpu.iota {dimensions = array<i32: 1>} : vector<256x128xi32>
    %c32_i32 = arith.constant 32 : i32
    %6 = vector.broadcast %c32_i32 : i32 to vector<256x128xi32>
    %7 = arith.cmpi slt, %5, %6 : vector<256x128xi32>
    %8 = arith.extui %7 : vector<256x128xi1> to vector<256x128xi32>
    %9 = arith.sitofp %8 : vector<256x128xi32> to vector<256x128xf32>
    %cst = arith.constant dense<0.000000e+00> : vector<256xf32>
    %10 = vector.multi_reduction <add>, %4, %cst [1] : vector<256x128xf32> to vector<256xf32>
    %11 = vector.shape_cast %10 : vector<256xf32> to vector<256x1xf32>
    %cst_2 = arith.constant 3.125000e-02 : f32
    %12 = vector.broadcast %cst_2 : f32 to vector<256x1xf32>
    %13 = arith.mulf %11, %12 : vector<256x1xf32>
    %14 = vector.broadcast %13 : vector<256x1xf32> to vector<256x128xf32>
    %15 = arith.subf %4, %14 : vector<256x128xf32>
    %16 = arith.mulf %15, %15 : vector<256x128xf32>
    %17 = arith.mulf %16, %9 : vector<256x128xf32>
    %cst_3 = arith.constant dense<0.000000e+00> : vector<256xf32>
    %18 = vector.multi_reduction <add>, %17, %cst_3 [1] : vector<256x128xf32> to vector<256xf32>
    %19 = vector.shape_cast %18 : vector<256xf32> to vector<256x1xf32>
    %cst_4 = arith.constant 3.125000e-02 : f32
    %20 = vector.broadcast %cst_4 : f32 to vector<256x1xf32>
    %21 = arith.mulf %19, %20 : vector<256x1xf32>
    %22 = vector.broadcast %13 : vector<256x1xf32> to vector<256x128xf32>
    %23 = arith.subf %4, %22 : vector<256x128xf32>
    %cst_5 = arith.constant 9.99999974E-6 : f32
    %24 = vector.broadcast %cst_5 : f32 to vector<256x1xf32>
    %25 = arith.addf %21, %24 : vector<256x1xf32>
    %26 = math.rsqrt %25 : vector<256x1xf32>
    %27 = vector.broadcast %26 : vector<256x1xf32> to vector<256x128xf32>
    %28 = arith.mulf %23, %27 : vector<256x128xf32>
    %c0_6 = arith.constant 0 : index
    %c0_7 = arith.constant 0 : index
    %29 = vector.load %arg5[%c0_6, %c0_7] : memref<1x128xf32, #tpu.memory_space<vmem>>, vector<1x128xf32>
    %30 = vector.broadcast %29 : vector<1x128xf32> to vector<256x128xf32>
    %31 = arith.mulf %28, %30 : vector<256x128xf32>
    %c0_8 = arith.constant 0 : index
    %c0_9 = arith.constant 0 : index
    %32 = vector.load %arg6[%c0_8, %c0_9] : memref<1x128xf32, #tpu.memory_space<vmem>>, vector<1x128xf32>
    %33 = vector.broadcast %32 : vector<1x128xf32> to vector<256x128xf32>
    %34 = arith.addf %31, %33 : vector<256x128xf32>
    %35 = arith.truncf %34 : vector<256x128xf32> to vector<256x128xbf16>
    %c0_10 = arith.constant 0 : index
    %c0_11 = arith.constant 0 : index
    %36 = vector.load %arg9[%c0_10, %c0_11] : memref<256x128xf32, #tpu.memory_space<vmem>>, vector<256x128xf32>
    %c0_12 = arith.constant 0 : index
    %c0_13 = arith.constant 0 : index
    %37 = vector.load %arg4[%c0_12, %c0_13] : memref<128x128xbf16, #tpu.memory_space<vmem>>, vector<128x128xbf16>
    %cst_14 = arith.constant dense<0.000000e+00> : vector<256x128xf32>
    %38 = tpu.matmul %35, %37, %cst_14 {dimension_numbers = #tpu.dot_dimension_numbers<[1], [0], [0], [1], [0, 0, 1, 1], [], []>} : vector<256x128xbf16>, vector<128x128xbf16>, vector<256x128xf32> -> vector<256x128xf32>
    %39 = arith.addf %36, %38 : vector<256x128xf32>
    %c0_15 = arith.constant 0 : index
    %c0_16 = arith.constant 0 : index
    %40 = vector.load %arg9[%c0_15, %c0_16] : memref<256x128xf32, #tpu.memory_space<vmem>>, vector<256x128xf32>
    tpu.vector_store %arg9[%c0_15, %c0_16], %39 {strides = array<i32>} : memref<256x128xf32, #tpu.memory_space<vmem>>, vector<256x128xf32>,
    %c0_i32_17 = arith.constant 0 : i32
    %41 = arith.cmpi eq, %arg2, %c0_i32_17 : i32
    %42 = arith.extui %41 : i1 to i32
    %c0_i32_18 = arith.constant 0 : i32
    %43 = arith.cmpi ne, %42, %c0_i32_18 : i32
    scf.if %43 {
      %c0_19 = arith.constant 0 : index
      %c0_20 = arith.constant 0 : index
      %44 = vector.load %arg9[%c0_19, %c0_20] : memref<256x128xf32, #tpu.memory_space<vmem>>, vector<256x128xf32>
      %c0_21 = arith.constant 0 : index
      %c0_22 = arith.constant 0 : index
      %45 = vector.load %arg7[%c0_21, %c0_22] : memref<1x128xf32, #tpu.memory_space<vmem>>, vector<1x128xf32>
      %46 = vector.broadcast %45 : vector<1x128xf32> to vector<256x128xf32>
      %47 = arith.addf %44, %46 : vector<256x128xf32>
      %48 = arith.truncf %47 : vector<256x128xf32> to vector<256x128xbf16>
      %c0_23 = arith.constant 0 : index
      %c0_24 = arith.constant 0 : index
      %49 = vector.load %arg8[%c0_23, %c0_24] : memref<256x128xbf16, #tpu.memory_space<vmem>>, vector<256x128xbf16>
      tpu.vector_store %arg8[%c0_23, %c0_24], %48 {strides = array<i32>} : memref<256x128xbf16, #tpu.memory_space<vmem>>, vector<256x128xbf16>,
    } else {
    }
    return
  }
  func.func @transform_0(%arg0: i32, %arg1: i32, %arg2: i32) -> (i32, i32) {
    %c0_i32 = arith.constant 0 : i32
    return %arg0, %arg2 : i32, i32
  }
  func.func @transform_1(%arg0: i32, %arg1: i32, %arg2: i32) -> (i32, i32) {
    %c0_i32 = arith.constant 0 : i32
    return %arg2, %arg1 : i32, i32
  }
  func.func @transform_2(%arg0: i32, %arg1: i32, %arg2: i32) -> (i32, i32) {
    %c0_i32 = arith.constant 0 : i32
    %c0_i32_0 = arith.constant 0 : i32
    return %c0_i32, %arg2 : i32, i32
  }
  func.func @transform_3(%arg0: i32, %arg1: i32, %arg2: i32) -> (i32, i32) {
    %c0_i32 = arith.constant 0 : i32
    %c0_i32_0 = arith.constant 0 : i32
    return %c0_i32, %arg2 : i32, i32
  }
  func.func @transform_4(%arg0: i32, %arg1: i32, %arg2: i32) -> (i32, i32) {
    %c0_i32 = arith.constant 0 : i32
    %c0_i32_0 = arith.constant 0 : i32
    return %c0_i32, %arg1 : i32, i32
  }
  func.func @transform_5(%arg0: i32, %arg1: i32, %arg2: i32) -> (i32, i32) {
    %c0_i32 = arith.constant 0 : i32
    return %arg0, %arg1 : i32, i32
  }
}

module attributes {stable_mosaic.version = 11 : i64} {
  func.func @_flash_attn_kernel(%arg0: i32, %arg1: i32, %arg2: i32, %arg3: memref<1x128x8xbf16, #tpu.memory_space<vmem>>, %arg4: memref<1x128x8xbf16, #tpu.memory_space<vmem>>, %arg5: memref<1x128x8xbf16, #tpu.memory_space<vmem>>, %arg6: memref<1x128x8xbf16, #tpu.memory_space<vmem>>, %arg7: memref<128x1xf32, #tpu.memory_space<vmem>>, %arg8: memref<128x1xf32, #tpu.memory_space<vmem>>, %arg9: memref<128x8xf32, #tpu.memory_space<vmem>>) attributes {dimension_semantics = [#tpu.dimension_semantics<parallel>, #tpu.dimension_semantics<parallel>, #tpu.dimension_semantics<arbitrary>], iteration_bounds = array<i64: 8, 1, 1>, scalar_prefetch = 0 : i64, scratch_operands = 3 : i64, tpu.core_type = #tpu.core_type<tc>, window_params = [{transform_indices = @transform_0, window_bounds = array<i64: 1, 128, 8>}, {transform_indices = @transform_1, window_bounds = array<i64: 1, 128, 8>}, {transform_indices = @transform_2, window_bounds = array<i64: 1, 128, 8>}, {transform_indices = @transform_3, window_bounds = array<i64: 1, 128, 8>}]} {
    %c0_i32 = arith.constant 0 : i32
    %0 = arith.cmpi eq, %arg2, %c0_i32 : i32
    %1 = arith.extui %0 : i1 to i32
    %c0_i32_0 = arith.constant 0 : i32
    %2 = arith.cmpi ne, %1, %c0_i32_0 : i32
    scf.if %2 {
      %cst_28 = arith.constant -1.000000e+30 : f32
      %46 = vector.broadcast %cst_28 : f32 to vector<128x1xf32>
      %c0_29 = arith.constant 0 : index
      %c0_30 = arith.constant 0 : index
      %47 = vector.load %arg7[%c0_29, %c0_30] : memref<128x1xf32, #tpu.memory_space<vmem>>, vector<128x1xf32>
      tpu.vector_store %arg7[%c0_29, %c0_30], %46 {strides = array<i32>} : memref<128x1xf32, #tpu.memory_space<vmem>>, vector<128x1xf32>,
      %cst_31 = arith.constant 0.000000e+00 : f32
      %48 = vector.broadcast %cst_31 : f32 to vector<128x1xf32>
      %c0_32 = arith.constant 0 : index
      %c0_33 = arith.constant 0 : index
      %49 = vector.load %arg8[%c0_32, %c0_33] : memref<128x1xf32, #tpu.memory_space<vmem>>, vector<128x1xf32>
      tpu.vector_store %arg8[%c0_32, %c0_33], %48 {strides = array<i32>} : memref<128x1xf32, #tpu.memory_space<vmem>>, vector<128x1xf32>,
      %cst_34 = arith.constant 0.000000e+00 : f32
      %50 = vector.broadcast %cst_34 : f32 to vector<128x8xf32>
      %c0_35 = arith.constant 0 : index
      %c0_36 = arith.constant 0 : index
      %51 = vector.load %arg9[%c0_35, %c0_36] : memref<128x8xf32, #tpu.memory_space<vmem>>, vector<128x8xf32>
      tpu.vector_store %arg9[%c0_35, %c0_36], %50 {strides = array<i32>} : memref<128x8xf32, #tpu.memory_space<vmem>>, vector<128x8xf32>,
    } else {
    }
    %c0 = arith.constant 0 : index
    %c0_1 = arith.constant 0 : index
    %c0_2 = arith.constant 0 : index
    %3 = vector.load %arg3[%c0, %c0_1, %c0_2] : memref<1x128x8xbf16, #tpu.memory_space<vmem>>, vector<1x128x8xbf16>
    %4 = vector.shape_cast %3 : vector<1x128x8xbf16> to vector<128x8xbf16>
    %c0_3 = arith.constant 0 : index
    %c0_4 = arith.constant 0 : index
    %c0_5 = arith.constant 0 : index
    %5 = vector.load %arg4[%c0_3, %c0_4, %c0_5] : memref<1x128x8xbf16, #tpu.memory_space<vmem>>, vector<1x128x8xbf16>
    %6 = vector.shape_cast %5 : vector<1x128x8xbf16> to vector<128x8xbf16>
    %c0_6 = arith.constant 0 : index
    %c0_7 = arith.constant 0 : index
    %c0_8 = arith.constant 0 : index
    %7 = vector.load %arg5[%c0_6, %c0_7, %c0_8] : memref<1x128x8xbf16, #tpu.memory_space<vmem>>, vector<1x128x8xbf16>
    %8 = vector.shape_cast %7 : vector<1x128x8xbf16> to vector<128x8xbf16>
    "tpu.trace_start"() <{level = 10 : i32, message = "qd,kd->qk"}> : () -> ()
    %cst = arith.constant dense<0.000000e+00> : vector<128x128xf32>
    %9 = tpu.matmul %4, %6, %cst {dimension_numbers = #tpu.dot_dimension_numbers<[1], [1], [0], [0], [0, 0, 1, 0], [], []>} : vector<128x8xbf16>, vector<128x8xbf16>, vector<128x128xf32> -> vector<128x128xf32>
    "tpu.trace_stop"() : () -> ()
    %c128_i32 = arith.constant 128 : i32
    %10 = arith.muli %arg2, %c128_i32 : i32
    %11 = tpu.iota {dimensions = array<i32: 1>} : vector<128x128xi32>
    %12 = vector.broadcast %10 : i32 to vector<128x128xi32>
    %13 = arith.addi %12, %11 : vector<128x128xi32>
    %c5_i32 = arith.constant 5 : i32
    %14 = vector.broadcast %c5_i32 : i32 to vector<128x128xi32>
    %15 = arith.cmpi slt, %13, %14 : vector<128x128xi32>
    %cst_9 = arith.constant -1.000000e+30 : f32
    %16 = vector.broadcast %cst_9 : f32 to vector<128x128xf32>
    %17 = arith.select %15, %9, %16 : vector<128x128xi1>, vector<128x128xf32>
    %c0_10 = arith.constant 0 : index
    %c0_11 = arith.constant 0 : index
    %18 = vector.load %arg7[%c0_10, %c0_11] : memref<128x1xf32, #tpu.memory_space<vmem>>, vector<128x1xf32>
    %cst_12 = arith.constant dense<0xFF800000> : vector<128xf32>
    %19 = vector.multi_reduction <maximumf>, %17, %cst_12 [1] : vector<128x128xf32> to vector<128xf32>
    %20 = vector.shape_cast %19 : vector<128xf32> to vector<128x1xf32>
    %21 = arith.maximumf %18, %20 : vector<128x1xf32>
    %22 = arith.subf %18, %21 : vector<128x1xf32>
    %23 = math.exp %22 : vector<128x1xf32>
    %24 = vector.broadcast %21 : vector<128x1xf32> to vector<128x128xf32>
    %25 = arith.subf %17, %24 : vector<128x128xf32>
    %26 = math.exp %25 : vector<128x128xf32>
    %cst_13 = arith.constant 0.000000e+00 : f32
    %27 = vector.broadcast %cst_13 : f32 to vector<128x128xf32>
    %28 = arith.select %15, %26, %27 : vector<128x128xi1>, vector<128x128xf32>
    %c0_14 = arith.constant 0 : index
    %c0_15 = arith.constant 0 : index
    %29 = vector.load %arg8[%c0_14, %c0_15] : memref<128x1xf32, #tpu.memory_space<vmem>>, vector<128x1xf32>
    %30 = arith.mulf %23, %29 : vector<128x1xf32>
    %cst_16 = arith.constant dense<0.000000e+00> : vector<128xf32>
    %31 = vector.multi_reduction <add>, %28, %cst_16 [1] : vector<128x128xf32> to vector<128xf32>
    %32 = vector.shape_cast %31 : vector<128xf32> to vector<128x1xf32>
    %33 = arith.addf %30, %32 : vector<128x1xf32>
    %c0_17 = arith.constant 0 : index
    %c0_18 = arith.constant 0 : index
    %34 = vector.load %arg8[%c0_17, %c0_18] : memref<128x1xf32, #tpu.memory_space<vmem>>, vector<128x1xf32>
    tpu.vector_store %arg8[%c0_17, %c0_18], %33 {strides = array<i32>} : memref<128x1xf32, #tpu.memory_space<vmem>>, vector<128x1xf32>,
    %c0_19 = arith.constant 0 : index
    %c0_20 = arith.constant 0 : index
    %35 = vector.load %arg9[%c0_19, %c0_20] : memref<128x8xf32, #tpu.memory_space<vmem>>, vector<128x8xf32>
    %36 = vector.broadcast %23 : vector<128x1xf32> to vector<128x8xf32>
    %37 = arith.mulf %36, %35 : vector<128x8xf32>
    %38 = arith.truncf %28 : vector<128x128xf32> to vector<128x128xbf16>
    %cst_21 = arith.constant dense<0.000000e+00> : vector<128x8xf32>
    %39 = tpu.matmul %38, %8, %cst_21 {dimension_numbers = #tpu.dot_dimension_numbers<[1], [0], [0], [1], [0, 0, 1, 1], [], []>} : vector<128x128xbf16>, vector<128x8xbf16>, vector<128x8xf32> -> vector<128x8xf32>
    %40 = arith.addf %37, %39 : vector<128x8xf32>
    %c0_22 = arith.constant 0 : index
    %c0_23 = arith.constant 0 : index
    %41 = vector.load %arg9[%c0_22, %c0_23] : memref<128x8xf32, #tpu.memory_space<vmem>>, vector<128x8xf32>
    tpu.vector_store %arg9[%c0_22, %c0_23], %40 {strides = array<i32>} : memref<128x8xf32, #tpu.memory_space<vmem>>, vector<128x8xf32>,
    %c0_24 = arith.constant 0 : index
    %c0_25 = arith.constant 0 : index
    %42 = vector.load %arg7[%c0_24, %c0_25] : memref<128x1xf32, #tpu.memory_space<vmem>>, vector<128x1xf32>
    tpu.vector_store %arg7[%c0_24, %c0_25], %21 {strides = array<i32>} : memref<128x1xf32, #tpu.memory_space<vmem>>, vector<128x1xf32>,
    %c0_i32_26 = arith.constant 0 : i32
    %43 = arith.cmpi eq, %arg2, %c0_i32_26 : i32
    %44 = arith.extui %43 : i1 to i32
    %c0_i32_27 = arith.constant 0 : i32
    %45 = arith.cmpi ne, %44, %c0_i32_27 : i32
    scf.if %45 {
      %c0_28 = arith.constant 0 : index
      %c0_29 = arith.constant 0 : index
      %46 = vector.load %arg8[%c0_28, %c0_29] : memref<128x1xf32, #tpu.memory_space<vmem>>, vector<128x1xf32>
      %47 = tpu.reciprocal %46 {approx = true} : vector<128x1xf32> -> vector<128x1xf32>
      %c0_30 = arith.constant 0 : index
      %c0_31 = arith.constant 0 : index
      %48 = vector.load %arg9[%c0_30, %c0_31] : memref<128x8xf32, #tpu.memory_space<vmem>>, vector<128x8xf32>
      %49 = vector.broadcast %47 : vector<128x1xf32> to vector<128x8xf32>
      %50 = arith.mulf %48, %49 : vector<128x8xf32>
      %51 = arith.truncf %50 : vector<128x8xf32> to vector<128x8xbf16>
      %c0_32 = arith.constant 0 : index
      %c0_33 = arith.constant 0 : index
      %c0_34 = arith.constant 0 : index
      %52 = vector.load %arg6[%c0_32, %c0_33, %c0_34] : memref<1x128x8xbf16, #tpu.memory_space<vmem>>, vector<1x128x8xbf16>
      %53 = vector.shape_cast %52 : vector<1x128x8xbf16> to vector<128x8xbf16>
      %54 = vector.shape_cast %51 : vector<128x8xbf16> to vector<1x128x8xbf16>
      tpu.vector_store %arg6[%c0_32, %c0_33, %c0_34], %54 {strides = array<i32>} : memref<1x128x8xbf16, #tpu.memory_space<vmem>>, vector<1x128x8xbf16>,
    } else {
    }
    return
  }
  func.func @transform_0(%arg0: i32, %arg1: i32, %arg2: i32) -> (i32, i32, i32) {
    %c0_i32 = arith.constant 0 : i32
    %c0_i32_0 = arith.constant 0 : i32
    return %arg0, %arg1, %c0_i32 : i32, i32, i32
  }
  func.func @transform_1(%arg0: i32, %arg1: i32, %arg2: i32) -> (i32, i32, i32) {
    %c0_i32 = arith.constant 0 : i32
    %c0_i32_0 = arith.constant 0 : i32
    return %arg0, %arg2, %c0_i32 : i32, i32, i32
  }
  func.func @transform_2(%arg0: i32, %arg1: i32, %arg2: i32) -> (i32, i32, i32) {
    %c0_i32 = arith.constant 0 : i32
    %c0_i32_0 = arith.constant 0 : i32
    return %arg0, %arg2, %c0_i32 : i32, i32, i32
  }
  func.func @transform_3(%arg0: i32, %arg1: i32, %arg2: i32) -> (i32, i32, i32) {
    %c0_i32 = arith.constant 0 : i32
    %c0_i32_0 = arith.constant 0 : i32
    return %arg0, %arg1, %c0_i32 : i32, i32, i32
  }
}

module attributes {stable_mosaic.version = 11 : i64} {
  func.func @_matmul_kernel(%arg0: i32, %arg1: i32, %arg2: i32, %arg3: memref<256x128xbf16, #tpu.memory_space<vmem>>, %arg4: memref<128x128xbf16, #tpu.memory_space<vmem>>, %arg5: memref<1x128xf32, #tpu.memory_space<vmem>>, %arg6: memref<256x128xbf16, #tpu.memory_space<vmem>>, %arg7: memref<256x128xbf16, #tpu.memory_space<vmem>>, %arg8: memref<256x128xf32, #tpu.memory_space<vmem>>) attributes {dimension_semantics = [#tpu.dimension_semantics<parallel>, #tpu.dimension_semantics<parallel>, #tpu.dimension_semantics<arbitrary>], iteration_bounds = array<i64: 1, 1, 1>, scalar_prefetch = 0 : i64, scratch_operands = 1 : i64, tpu.core_type = #tpu.core_type<tc>, window_params = [{transform_indices = @transform_0, window_bounds = array<i64: 256, 128>}, {transform_indices = @transform_1, window_bounds = array<i64: 128, 128>}, {transform_indices = @transform_2, window_bounds = array<i64: 1, 128>}, {transform_indices = @transform_3, window_bounds = array<i64: 256, 128>}, {transform_indices = @transform_4, window_bounds = array<i64: 256, 128>}]} {
    %c0_i32 = arith.constant 0 : i32
    %0 = arith.cmpi eq, %arg2, %c0_i32 : i32
    %1 = arith.extui %0 : i1 to i32
    %c0_i32_0 = arith.constant 0 : i32
    %2 = arith.cmpi ne, %1, %c0_i32_0 : i32
    scf.if %2 {
      %cst_10 = arith.constant 0.000000e+00 : f32
      %12 = vector.broadcast %cst_10 : f32 to vector<256x128xf32>
      %c0_11 = arith.constant 0 : index
      %c0_12 = arith.constant 0 : index
      %13 = vector.load %arg8[%c0_11, %c0_12] : memref<256x128xf32, #tpu.memory_space<vmem>>, vector<256x128xf32>
      tpu.vector_store %arg8[%c0_11, %c0_12], %12 {strides = array<i32>} : memref<256x128xf32, #tpu.memory_space<vmem>>, vector<256x128xf32>,
    } else {
    }
    %c0 = arith.constant 0 : index
    %c0_1 = arith.constant 0 : index
    %3 = vector.load %arg3[%c0, %c0_1] : memref<256x128xbf16, #tpu.memory_space<vmem>>, vector<256x128xbf16>
    %c0_2 = arith.constant 0 : index
    %c0_3 = arith.constant 0 : index
    %4 = vector.load %arg8[%c0_2, %c0_3] : memref<256x128xf32, #tpu.memory_space<vmem>>, vector<256x128xf32>
    %c0_4 = arith.constant 0 : index
    %c0_5 = arith.constant 0 : index
    %5 = vector.load %arg4[%c0_4, %c0_5] : memref<128x128xbf16, #tpu.memory_space<vmem>>, vector<128x128xbf16>
    %cst = arith.constant dense<0.000000e+00> : vector<256x128xf32>
    %6 = tpu.matmul %3, %5, %cst {dimension_numbers = #tpu.dot_dimension_numbers<[1], [0], [0], [1], [0, 0, 1, 1], [], []>} : vector<256x128xbf16>, vector<128x128xbf16>, vector<256x128xf32> -> vector<256x128xf32>
    %7 = arith.addf %4, %6 : vector<256x128xf32>
    %c0_6 = arith.constant 0 : index
    %c0_7 = arith.constant 0 : index
    %8 = vector.load %arg8[%c0_6, %c0_7] : memref<256x128xf32, #tpu.memory_space<vmem>>, vector<256x128xf32>
    tpu.vector_store %arg8[%c0_6, %c0_7], %7 {strides = array<i32>} : memref<256x128xf32, #tpu.memory_space<vmem>>, vector<256x128xf32>,
    %c0_i32_8 = arith.constant 0 : i32
    %9 = arith.cmpi eq, %arg2, %c0_i32_8 : i32
    %10 = arith.extui %9 : i1 to i32
    %c0_i32_9 = arith.constant 0 : i32
    %11 = arith.cmpi ne, %10, %c0_i32_9 : i32
    scf.if %11 {
      %c0_10 = arith.constant 0 : index
      %c0_11 = arith.constant 0 : index
      %12 = vector.load %arg8[%c0_10, %c0_11] : memref<256x128xf32, #tpu.memory_space<vmem>>, vector<256x128xf32>
      %c0_12 = arith.constant 0 : index
      %c0_13 = arith.constant 0 : index
      %13 = vector.load %arg5[%c0_12, %c0_13] : memref<1x128xf32, #tpu.memory_space<vmem>>, vector<1x128xf32>
      %14 = vector.broadcast %13 : vector<1x128xf32> to vector<256x128xf32>
      %15 = arith.addf %12, %14 : vector<256x128xf32>
      %c0_14 = arith.constant 0 : index
      %c0_15 = arith.constant 0 : index
      %16 = vector.load %arg6[%c0_14, %c0_15] : memref<256x128xbf16, #tpu.memory_space<vmem>>, vector<256x128xbf16>
      %17 = arith.extf %16 : vector<256x128xbf16> to vector<256x128xf32>
      %18 = arith.addf %15, %17 : vector<256x128xf32>
      %19 = arith.truncf %18 : vector<256x128xf32> to vector<256x128xbf16>
      %c0_16 = arith.constant 0 : index
      %c0_17 = arith.constant 0 : index
      %20 = vector.load %arg7[%c0_16, %c0_17] : memref<256x128xbf16, #tpu.memory_space<vmem>>, vector<256x128xbf16>
      tpu.vector_store %arg7[%c0_16, %c0_17], %19 {strides = array<i32>} : memref<256x128xbf16, #tpu.memory_space<vmem>>, vector<256x128xbf16>,
    } else {
    }
    return
  }
  func.func @transform_0(%arg0: i32, %arg1: i32, %arg2: i32) -> (i32, i32) {
    %c0_i32 = arith.constant 0 : i32
    return %arg0, %arg2 : i32, i32
  }
  func.func @transform_1(%arg0: i32, %arg1: i32, %arg2: i32) -> (i32, i32) {
    %c0_i32 = arith.constant 0 : i32
    return %arg2, %arg1 : i32, i32
  }
  func.func @transform_2(%arg0: i32, %arg1: i32, %arg2: i32) -> (i32, i32) {
    %c0_i32 = arith.constant 0 : i32
    %c0_i32_0 = arith.constant 0 : i32
    return %c0_i32, %arg1 : i32, i32
  }
  func.func @transform_3(%arg0: i32, %arg1: i32, %arg2: i32) -> (i32, i32) {
    %c0_i32 = arith.constant 0 : i32
    return %arg0, %arg1 : i32, i32
  }
  func.func @transform_4(%arg0: i32, %arg1: i32, %arg2: i32) -> (i32, i32) {
    %c0_i32 = arith.constant 0 : i32
    return %arg0, %arg1 : i32, i32
  }
}

module attributes {stable_mosaic.version = 11 : i64} {
  func.func @_matmul_kernel(%arg0: i32, %arg1: i32, %arg2: i32, %arg3: memref<256x128xbf16, #tpu.memory_space<vmem>>, %arg4: memref<128x128xbf16, #tpu.memory_space<vmem>>, %arg5: memref<1x128xf32, #tpu.memory_space<vmem>>, %arg6: memref<1x128xf32, #tpu.memory_space<vmem>>, %arg7: memref<1x128xf32, #tpu.memory_space<vmem>>, %arg8: memref<256x128xbf16, #tpu.memory_space<vmem>>, %arg9: memref<256x128xf32, #tpu.memory_space<vmem>>) attributes {dimension_semantics = [#tpu.dimension_semantics<parallel>, #tpu.dimension_semantics<parallel>, #tpu.dimension_semantics<arbitrary>], iteration_bounds = array<i64: 1, 1, 1>, scalar_prefetch = 0 : i64, scratch_operands = 1 : i64, tpu.core_type = #tpu.core_type<tc>, window_params = [{transform_indices = @transform_0, window_bounds = array<i64: 256, 128>}, {transform_indices = @transform_1, window_bounds = array<i64: 128, 128>}, {transform_indices = @transform_2, window_bounds = array<i64: 1, 128>}, {transform_indices = @transform_3, window_bounds = array<i64: 1, 128>}, {transform_indices = @transform_4, window_bounds = array<i64: 1, 128>}, {transform_indices = @transform_5, window_bounds = array<i64: 256, 128>}]} {
    %c0_i32 = arith.constant 0 : i32
    %0 = arith.cmpi eq, %arg2, %c0_i32 : i32
    %1 = arith.extui %0 : i1 to i32
    %c0_i32_0 = arith.constant 0 : i32
    %2 = arith.cmpi ne, %1, %c0_i32_0 : i32
    scf.if %2 {
      %cst_19 = arith.constant 0.000000e+00 : f32
      %44 = vector.broadcast %cst_19 : f32 to vector<256x128xf32>
      %c0_20 = arith.constant 0 : index
      %c0_21 = arith.constant 0 : index
      %45 = vector.load %arg9[%c0_20, %c0_21] : memref<256x128xf32, #tpu.memory_space<vmem>>, vector<256x128xf32>
      tpu.vector_store %arg9[%c0_20, %c0_21], %44 {strides = array<i32>} : memref<256x128xf32, #tpu.memory_space<vmem>>, vector<256x128xf32>,
    } else {
    }
    %c0 = arith.constant 0 : index
    %c0_1 = arith.constant 0 : index
    %3 = vector.load %arg3[%c0, %c0_1] : memref<256x128xbf16, #tpu.memory_space<vmem>>, vector<256x128xbf16>
    %4 = arith.extf %3 : vector<256x128xbf16> to vector<256x128xf32>
    %5 = tpu.iota {dimensions = array<i32: 1>} : vector<256x128xi32>
    %c32_i32 = arith.constant 32 : i32
    %6 = vector.broadcast %c32_i32 : i32 to vector<256x128xi32>
    %7 = arith.cmpi slt, %5, %6 : vector<256x128xi32>
    %8 = arith.extui %7 : vector<256x128xi1> to vector<256x128xi32>
    %9 = arith.sitofp %8 : vector<256x128xi32> to vector<256x128xf32>
    %cst = arith.constant dense<0.000000e+00> : vector<256xf32>
    %10 = vector.multi_reduction <add>, %4, %cst [1] : vector<256x128xf32> to vector<256xf32>
    %11 = vector.shape_cast %10 : vector<256xf32> to vector<256x1xf32>
    %cst_2 = arith.constant 3.125000e-02 : f32
    %12 = vector.broadcast %cst_2 : f32 to vector<256x1xf32>
    %13 = arith.mulf %11, %12 : vector<256x1xf32>
    %14 = vector.broadcast %13 : vector<256x1xf32> to vector<256x128xf32>
    %15 = arith.subf %4, %14 : vector<256x128xf32>
    %16 = arith.mulf %15, %15 : vector<256x128xf32>
    %17 = arith.mulf %16, %9 : vector<256x128xf32>
    %cst_3 = arith.constant dense<0.000000e+00> : vector<256xf32>
    %18 = vector.multi_reduction <add>, %17, %cst_3 [1] : vector<256x128xf32> to vector<256xf32>
    %19 = vector.shape_cast %18 : vector<256xf32> to vector<256x1xf32>
    %cst_4 = arith.constant 3.125000e-02 : f32
    %20 = vector.broadcast %cst_4 : f32 to vector<256x1xf32>
    %21 = arith.mulf %19, %20 : vector<256x1xf32>
    %22 = vector.broadcast %13 : vector<256x1xf32> to vector<256x128xf32>
    %23 = arith.subf %4, %22 : vector<256x128xf32>
    %cst_5 = arith.constant 9.99999974E-6 : f32
    %24 = vector.broadcast %cst_5 : f32 to vector<256x1xf32>
    %25 = arith.addf %21, %24 : vector<256x1xf32>
    %26 = math.rsqrt %25 : vector<256x1xf32>
    %27 = vector.broadcast %26 : vector<256x1xf32> to vector<256x128xf32>
    %28 = arith.mulf %23, %27 : vector<256x128xf32>
    %c0_6 = arith.constant 0 : index
    %c0_7 = arith.constant 0 : index
    %29 = vector.load %arg5[%c0_6, %c0_7] : memref<1x128xf32, #tpu.memory_space<vmem>>, vector<1x128xf32>
    %30 = vector.broadcast %29 : vector<1x128xf32> to vector<256x128xf32>
    %31 = arith.mulf %28, %30 : vector<256x128xf32>
    %c0_8 = arith.constant 0 : index
    %c0_9 = arith.constant 0 : index
    %32 = vector.load %arg6[%c0_8, %c0_9] : memref<1x128xf32, #tpu.memory_space<vmem>>, vector<1x128xf32>
    %33 = vector.broadcast %32 : vector<1x128xf32> to vector<256x128xf32>
    %34 = arith.addf %31, %33 : vector<256x128xf32>
    %35 = arith.truncf %34 : vector<256x128xf32> to vector<256x128xbf16>
    %c0_10 = arith.constant 0 : index
    %c0_11 = arith.constant 0 : index
    %36 = vector.load %arg9[%c0_10, %c0_11] : memref<256x128xf32, #tpu.memory_space<vmem>>, vector<256x128xf32>
    %c0_12 = arith.constant 0 : index
    %c0_13 = arith.constant 0 : index
    %37 = vector.load %arg4[%c0_12, %c0_13] : memref<128x128xbf16, #tpu.memory_space<vmem>>, vector<128x128xbf16>
    %cst_14 = arith.constant dense<0.000000e+00> : vector<256x128xf32>
    %38 = tpu.matmul %35, %37, %cst_14 {dimension_numbers = #tpu.dot_dimension_numbers<[1], [0], [0], [1], [0, 0, 1, 1], [], []>} : vector<256x128xbf16>, vector<128x128xbf16>, vector<256x128xf32> -> vector<256x128xf32>
    %39 = arith.addf %36, %38 : vector<256x128xf32>
    %c0_15 = arith.constant 0 : index
    %c0_16 = arith.constant 0 : index
    %40 = vector.load %arg9[%c0_15, %c0_16] : memref<256x128xf32, #tpu.memory_space<vmem>>, vector<256x128xf32>
    tpu.vector_store %arg9[%c0_15, %c0_16], %39 {strides = array<i32>} : memref<256x128xf32, #tpu.memory_space<vmem>>, vector<256x128xf32>,
    %c0_i32_17 = arith.constant 0 : i32
    %41 = arith.cmpi eq, %arg2, %c0_i32_17 : i32
    %42 = arith.extui %41 : i1 to i32
    %c0_i32_18 = arith.constant 0 : i32
    %43 = arith.cmpi ne, %42, %c0_i32_18 : i32
    scf.if %43 {
      %c0_19 = arith.constant 0 : index
      %c0_20 = arith.constant 0 : index
      %44 = vector.load %arg9[%c0_19, %c0_20] : memref<256x128xf32, #tpu.memory_space<vmem>>, vector<256x128xf32>
      %c0_21 = arith.constant 0 : index
      %c0_22 = arith.constant 0 : index
      %45 = vector.load %arg7[%c0_21, %c0_22] : memref<1x128xf32, #tpu.memory_space<vmem>>, vector<1x128xf32>
      %46 = vector.broadcast %45 : vector<1x128xf32> to vector<256x128xf32>
      %47 = arith.addf %44, %46 : vector<256x128xf32>
      %cst_23 = arith.constant 1.702000e+00 : f32
      %48 = vector.broadcast %cst_23 : f32 to vector<256x128xf32>
      %49 = arith.mulf %48, %47 : vector<256x128xf32>
      %50 = arith.negf %49 : vector<256x128xf32>
      %51 = math.exp %50 : vector<256x128xf32>
      %cst_24 = arith.constant 1.000000e+00 : f32
      %52 = vector.broadcast %cst_24 : f32 to vector<256x128xf32>
      %53 = arith.addf %52, %51 : vector<256x128xf32>
      %54 = arith.divf %52, %53 : vector<256x128xf32>
      %55 = arith.mulf %47, %54 : vector<256x128xf32>
      %56 = arith.truncf %55 : vector<256x128xf32> to vector<256x128xbf16>
      %c0_25 = arith.constant 0 : index
      %c0_26 = arith.constant 0 : index
      %57 = vector.load %arg8[%c0_25, %c0_26] : memref<256x128xbf16, #tpu.memory_space<vmem>>, vector<256x128xbf16>
      tpu.vector_store %arg8[%c0_25, %c0_26], %56 {strides = array<i32>} : memref<256x128xbf16, #tpu.memory_space<vmem>>, vector<256x128xbf16>,
    } else {
    }
    return
  }
  func.func @transform_0(%arg0: i32, %arg1: i32, %arg2: i32) -> (i32, i32) {
    %c0_i32 = arith.constant 0 : i32
    return %arg0, %arg2 : i32, i32
  }
  func.func @transform_1(%arg0: i32, %arg1: i32, %arg2: i32) -> (i32, i32) {
    %c0_i32 = arith.constant 0 : i32
    return %arg2, %arg1 : i32, i32
  }
  func.func @transform_2(%arg0: i32, %arg1: i32, %arg2: i32) -> (i32, i32) {
    %c0_i32 = arith.constant 0 : i32
    %c0_i32_0 = arith.constant 0 : i32
    return %c0_i32, %arg2 : i32, i32
  }
  func.func @transform_3(%arg0: i32, %arg1: i32, %arg2: i32) -> (i32, i32) {
    %c0_i32 = arith.constant 0 : i32
    %c0_i32_0 = arith.constant 0 : i32
    return %c0_i32, %arg2 : i32, i32
  }
  func.func @transform_4(%arg0: i32, %arg1: i32, %arg2: i32) -> (i32, i32) {
    %c0_i32 = arith.constant 0 : i32
    %c0_i32_0 = arith.constant 0 : i32
    return %c0_i32, %arg1 : i32, i32
  }
  func.func @transform_5(%arg0: i32, %arg1: i32, %arg2: i32) -> (i32, i32) {
    %c0_i32 = arith.constant 0 : i32
    return %arg0, %arg1 : i32, i32
  }
}

module attributes {stable_mosaic.version = 11 : i64} {
  func.func @_matmul_kernel(%arg0: i32, %arg1: i32, %arg2: i32, %arg3: memref<8x128xbf16, #tpu.memory_space<vmem>>, %arg4: memref<128x128xbf16, #tpu.memory_space<vmem>>, %arg5: memref<1x128xf32, #tpu.memory_space<vmem>>, %arg6: memref<1x128xf32, #tpu.memory_space<vmem>>, %arg7: memref<8x128xbf16, #tpu.memory_space<vmem>>, %arg8: memref<8x128xf32, #tpu.memory_space<vmem>>) attributes {dimension_semantics = [#tpu.dimension_semantics<parallel>, #tpu.dimension_semantics<parallel>, #tpu.dimension_semantics<arbitrary>], iteration_bounds = array<i64: 1, 1, 1>, scalar_prefetch = 0 : i64, scratch_operands = 1 : i64, tpu.core_type = #tpu.core_type<tc>, window_params = [{transform_indices = @transform_0, window_bounds = array<i64: 8, 128>}, {transform_indices = @transform_1, window_bounds = array<i64: 128, 128>}, {transform_indices = @transform_2, window_bounds = array<i64: 1, 128>}, {transform_indices = @transform_3, window_bounds = array<i64: 1, 128>}, {transform_indices = @transform_4, window_bounds = array<i64: 8, 128>}]} {
    %c0_i32 = arith.constant 0 : i32
    %0 = arith.cmpi eq, %arg2, %c0_i32 : i32
    %1 = arith.extui %0 : i1 to i32
    %c0_i32_0 = arith.constant 0 : i32
    %2 = arith.cmpi ne, %1, %c0_i32_0 : i32
    scf.if %2 {
      %cst_19 = arith.constant 0.000000e+00 : f32
      %44 = vector.broadcast %cst_19 : f32 to vector<8x128xf32>
      %c0_20 = arith.constant 0 : index
      %c0_21 = arith.constant 0 : index
      %45 = vector.load %arg8[%c0_20, %c0_21] : memref<8x128xf32, #tpu.memory_space<vmem>>, vector<8x128xf32>
      tpu.vector_store %arg8[%c0_20, %c0_21], %44 {strides = array<i32>} : memref<8x128xf32, #tpu.memory_space<vmem>>, vector<8x128xf32>,
    } else {
    }
    %c0 = arith.constant 0 : index
    %c0_1 = arith.constant 0 : index
    %3 = vector.load %arg3[%c0, %c0_1] : memref<8x128xbf16, #tpu.memory_space<vmem>>, vector<8x128xbf16>
    %4 = arith.extf %3 : vector<8x128xbf16> to vector<8x128xf32>
    %5 = tpu.iota {dimensions = array<i32: 1>} : vector<8x128xi32>
    %c32_i32 = arith.constant 32 : i32
    %6 = vector.broadcast %c32_i32 : i32 to vector<8x128xi32>
    %7 = arith.cmpi slt, %5, %6 : vector<8x128xi32>
    %8 = arith.extui %7 : vector<8x128xi1> to vector<8x128xi32>
    %9 = arith.sitofp %8 : vector<8x128xi32> to vector<8x128xf32>
    %cst = arith.constant dense<0.000000e+00> : vector<8xf32>
    %10 = vector.multi_reduction <add>, %4, %cst [1] : vector<8x128xf32> to vector<8xf32>
    %11 = vector.shape_cast %10 : vector<8xf32> to vector<8x1xf32>
    %cst_2 = arith.constant 3.125000e-02 : f32
    %12 = vector.broadcast %cst_2 : f32 to vector<8x1xf32>
    %13 = arith.mulf %11, %12 : vector<8x1xf32>
    %14 = vector.broadcast %13 : vector<8x1xf32> to vector<8x128xf32>
    %15 = arith.subf %4, %14 : vector<8x128xf32>
    %16 = arith.mulf %15, %15 : vector<8x128xf32>
    %17 = arith.mulf %16, %9 : vector<8x128xf32>
    %cst_3 = arith.constant dense<0.000000e+00> : vector<8xf32>
    %18 = vector.multi_reduction <add>, %17, %cst_3 [1] : vector<8x128xf32> to vector<8xf32>
    %19 = vector.shape_cast %18 : vector<8xf32> to vector<8x1xf32>
    %cst_4 = arith.constant 3.125000e-02 : f32
    %20 = vector.broadcast %cst_4 : f32 to vector<8x1xf32>
    %21 = arith.mulf %19, %20 : vector<8x1xf32>
    %22 = vector.broadcast %13 : vector<8x1xf32> to vector<8x128xf32>
    %23 = arith.subf %4, %22 : vector<8x128xf32>
    %cst_5 = arith.constant 9.99999974E-6 : f32
    %24 = vector.broadcast %cst_5 : f32 to vector<8x1xf32>
    %25 = arith.addf %21, %24 : vector<8x1xf32>
    %26 = math.rsqrt %25 : vector<8x1xf32>
    %27 = vector.broadcast %26 : vector<8x1xf32> to vector<8x128xf32>
    %28 = arith.mulf %23, %27 : vector<8x128xf32>
    %c0_6 = arith.constant 0 : index
    %c0_7 = arith.constant 0 : index
    %29 = vector.load %arg5[%c0_6, %c0_7] : memref<1x128xf32, #tpu.memory_space<vmem>>, vector<1x128xf32>
    %30 = vector.broadcast %29 : vector<1x128xf32> to vector<8x128xf32>
    %31 = arith.mulf %28, %30 : vector<8x128xf32>
    %c0_8 = arith.constant 0 : index
    %c0_9 = arith.constant 0 : index
    %32 = vector.load %arg6[%c0_8, %c0_9] : memref<1x128xf32, #tpu.memory_space<vmem>>, vector<1x128xf32>
    %33 = vector.broadcast %32 : vector<1x128xf32> to vector<8x128xf32>
    %34 = arith.addf %31, %33 : vector<8x128xf32>
    %35 = arith.truncf %34 : vector<8x128xf32> to vector<8x128xbf16>
    %c0_10 = arith.constant 0 : index
    %c0_11 = arith.constant 0 : index
    %36 = vector.load %arg8[%c0_10, %c0_11] : memref<8x128xf32, #tpu.memory_space<vmem>>, vector<8x128xf32>
    %c0_12 = arith.constant 0 : index
    %c0_13 = arith.constant 0 : index
    %37 = vector.load %arg4[%c0_12, %c0_13] : memref<128x128xbf16, #tpu.memory_space<vmem>>, vector<128x128xbf16>
    %cst_14 = arith.constant dense<0.000000e+00> : vector<8x128xf32>
    %38 = tpu.matmul %35, %37, %cst_14 {dimension_numbers = #tpu.dot_dimension_numbers<[1], [0], [0], [1], [0, 0, 1, 1], [], []>} : vector<8x128xbf16>, vector<128x128xbf16>, vector<8x128xf32> -> vector<8x128xf32>
    %39 = arith.addf %36, %38 : vector<8x128xf32>
    %c0_15 = arith.constant 0 : index
    %c0_16 = arith.constant 0 : index
    %40 = vector.load %arg8[%c0_15, %c0_16] : memref<8x128xf32, #tpu.memory_space<vmem>>, vector<8x128xf32>
    tpu.vector_store %arg8[%c0_15, %c0_16], %39 {strides = array<i32>} : memref<8x128xf32, #tpu.memory_space<vmem>>, vector<8x128xf32>,
    %c0_i32_17 = arith.constant 0 : i32
    %41 = arith.cmpi eq, %arg2, %c0_i32_17 : i32
    %42 = arith.extui %41 : i1 to i32
    %c0_i32_18 = arith.constant 0 : i32
    %43 = arith.cmpi ne, %42, %c0_i32_18 : i32
    scf.if %43 {
      %c0_19 = arith.constant 0 : index
      %c0_20 = arith.constant 0 : index
      %44 = vector.load %arg8[%c0_19, %c0_20] : memref<8x128xf32, #tpu.memory_space<vmem>>, vector<8x128xf32>
      %45 = arith.truncf %44 : vector<8x128xf32> to vector<8x128xbf16>
      %c0_21 = arith.constant 0 : index
      %c0_22 = arith.constant 0 : index
      %46 = vector.load %arg7[%c0_21, %c0_22] : memref<8x128xbf16, #tpu.memory_space<vmem>>, vector<8x128xbf16>
      tpu.vector_store %arg7[%c0_21, %c0_22], %45 {strides = array<i32>} : memref<8x128xbf16, #tpu.memory_space<vmem>>, vector<8x128xbf16>,
    } else {
    }
    return
  }
  func.func @transform_0(%arg0: i32, %arg1: i32, %arg2: i32) -> (i32, i32) {
    %c0_i32 = arith.constant 0 : i32
    return %arg0, %arg2 : i32, i32
  }
  func.func @transform_1(%arg0: i32, %arg1: i32, %arg2: i32) -> (i32, i32) {
    %c0_i32 = arith.constant 0 : i32
    return %arg2, %arg1 : i32, i32
  }
  func.func @transform_2(%arg0: i32, %arg1: i32, %arg2: i32) -> (i32, i32) {
    %c0_i32 = arith.constant 0 : i32
    %c0_i32_0 = arith.constant 0 : i32
    return %c0_i32, %arg2 : i32, i32
  }
  func.func @transform_3(%arg0: i32, %arg1: i32, %arg2: i32) -> (i32, i32) {
    %c0_i32 = arith.constant 0 : i32
    %c0_i32_0 = arith.constant 0 : i32
    return %c0_i32, %arg2 : i32, i32
  }
  func.func @transform_4(%arg0: i32, %arg1: i32, %arg2: i32) -> (i32, i32) {
    %c0_i32 = arith.constant 0 : i32
    return %arg0, %arg1 : i32, i32
  }
}

module attributes {stable_mosaic.version = 11 : i64} {
  func.func @_matmul_kernel(%arg0: i32, %arg1: i32, %arg2: i32, %arg3: memref<8x128xbf16, #tpu.memory_space<vmem>>, %arg4: memref<128x128xbf16, #tpu.memory_space<vmem>>, %arg5: memref<1x128xf32, #tpu.memory_space<vmem>>, %arg6: memref<8x128xf32, #tpu.memory_space<vmem>>, %arg7: memref<8x128xf32, #tpu.memory_space<vmem>>) attributes {dimension_semantics = [#tpu.dimension_semantics<parallel>, #tpu.dimension_semantics<parallel>, #tpu.dimension_semantics<arbitrary>], iteration_bounds = array<i64: 1, 1, 1>, scalar_prefetch = 0 : i64, scratch_operands = 1 : i64, tpu.core_type = #tpu.core_type<tc>, window_params = [{transform_indices = @transform_0, window_bounds = array<i64: 8, 128>}, {transform_indices = @transform_1, window_bounds = array<i64: 128, 128>}, {transform_indices = @transform_2, window_bounds = array<i64: 1, 128>}, {transform_indices = @transform_3, window_bounds = array<i64: 8, 128>}]} {
    %c0_i32 = arith.constant 0 : i32
    %0 = arith.cmpi eq, %arg2, %c0_i32 : i32
    %1 = arith.extui %0 : i1 to i32
    %c0_i32_0 = arith.constant 0 : i32
    %2 = arith.cmpi ne, %1, %c0_i32_0 : i32
    scf.if %2 {
      %cst_10 = arith.constant 0.000000e+00 : f32
      %12 = vector.broadcast %cst_10 : f32 to vector<8x128xf32>
      %c0_11 = arith.constant 0 : index
      %c0_12 = arith.constant 0 : index
      %13 = vector.load %arg7[%c0_11, %c0_12] : memref<8x128xf32, #tpu.memory_space<vmem>>, vector<8x128xf32>
      tpu.vector_store %arg7[%c0_11, %c0_12], %12 {strides = array<i32>} : memref<8x128xf32, #tpu.memory_space<vmem>>, vector<8x128xf32>,
    } else {
    }
    %c0 = arith.constant 0 : index
    %c0_1 = arith.constant 0 : index
    %3 = vector.load %arg3[%c0, %c0_1] : memref<8x128xbf16, #tpu.memory_space<vmem>>, vector<8x128xbf16>
    %c0_2 = arith.constant 0 : index
    %c0_3 = arith.constant 0 : index
    %4 = vector.load %arg7[%c0_2, %c0_3] : memref<8x128xf32, #tpu.memory_space<vmem>>, vector<8x128xf32>
    %c0_4 = arith.constant 0 : index
    %c0_5 = arith.constant 0 : index
    %5 = vector.load %arg4[%c0_4, %c0_5] : memref<128x128xbf16, #tpu.memory_space<vmem>>, vector<128x128xbf16>
    %cst = arith.constant dense<0.000000e+00> : vector<8x128xf32>
    %6 = tpu.matmul %3, %5, %cst {dimension_numbers = #tpu.dot_dimension_numbers<[1], [0], [0], [1], [0, 0, 1, 1], [], []>} : vector<8x128xbf16>, vector<128x128xbf16>, vector<8x128xf32> -> vector<8x128xf32>
    %7 = arith.addf %4, %6 : vector<8x128xf32>
    %c0_6 = arith.constant 0 : index
    %c0_7 = arith.constant 0 : index
    %8 = vector.load %arg7[%c0_6, %c0_7] : memref<8x128xf32, #tpu.memory_space<vmem>>, vector<8x128xf32>
    tpu.vector_store %arg7[%c0_6, %c0_7], %7 {strides = array<i32>} : memref<8x128xf32, #tpu.memory_space<vmem>>, vector<8x128xf32>,
    %c0_i32_8 = arith.constant 0 : i32
    %9 = arith.cmpi eq, %arg2, %c0_i32_8 : i32
    %10 = arith.extui %9 : i1 to i32
    %c0_i32_9 = arith.constant 0 : i32
    %11 = arith.cmpi ne, %10, %c0_i32_9 : i32
    scf.if %11 {
      %c0_10 = arith.constant 0 : index
      %c0_11 = arith.constant 0 : index
      %12 = vector.load %arg7[%c0_10, %c0_11] : memref<8x128xf32, #tpu.memory_space<vmem>>, vector<8x128xf32>
      %c0_12 = arith.constant 0 : index
      %c0_13 = arith.constant 0 : index
      %13 = vector.load %arg5[%c0_12, %c0_13] : memref<1x128xf32, #tpu.memory_space<vmem>>, vector<1x128xf32>
      %14 = vector.broadcast %13 : vector<1x128xf32> to vector<8x128xf32>
      %15 = arith.addf %12, %14 : vector<8x128xf32>
      %c0_14 = arith.constant 0 : index
      %c0_15 = arith.constant 0 : index
      %16 = vector.load %arg6[%c0_14, %c0_15] : memref<8x128xf32, #tpu.memory_space<vmem>>, vector<8x128xf32>
      tpu.vector_store %arg6[%c0_14, %c0_15], %15 {strides = array<i32>} : memref<8x128xf32, #tpu.memory_space<vmem>>, vector<8x128xf32>,
    } else {
    }
    return
  }
  func.func @transform_0(%arg0: i32, %arg1: i32, %arg2: i32) -> (i32, i32) {
    %c0_i32 = arith.constant 0 : i32
    return %arg0, %arg2 : i32, i32
  }
  func.func @transform_1(%arg0: i32, %arg1: i32, %arg2: i32) -> (i32, i32) {
    %c0_i32 = arith.constant 0 : i32
    return %arg2, %arg1 : i32, i32
  }
  func.func @transform_2(%arg0: i32, %arg1: i32, %arg2: i32) -> (i32, i32) {
    %c0_i32 = arith.constant 0 : i32
    %c0_i32_0 = arith.constant 0 : i32
    return %c0_i32, %arg1 : i32, i32
  }
  func.func @transform_3(%arg0: i32, %arg1: i32, %arg2: i32) -> (i32, i32) {
    %c0_i32 = arith.constant 0 : i32
    return %arg0, %arg1 : i32, i32
  }
}

</mosaic_0001>

<bundles_post_ra>
// kernel: _lambda_.14
= control target key start
LH: loop header
LB: loop body
LE: loop exit
PB: predicated region body
PF: predicated region fallthrough
CT: control target
= control target key end

     0   :  { %s333_s1 = inlined_call_operand.vmem [shape: bf16[256,128], index: 1, kind: input, shape index: {}]   ;;  %s334_s0 = inlined_call_operand.vmem [shape: bf16[8,256], index: 0, kind: input, shape index: {}]   ;;  %s335_s2 = inlined_call_operand.vmem [shape: bf16[8,128], index: 2, kind: output, shape index: {}]  }
   0x1   :  { %v246_v0 = vld [vmem:[%s333_s1 + $0x78] sm:$0xff]   ;;  %v248_v2 = vld [vmem:[%s333_s1 + $0x70] sm:$0xff]   ;;  %v250_v4 = vld [vmem:[%s333_s1 + $0x68] sm:$0xff]  }
   0x2   :  { %v247_v1 = vld [vmem:[%s333_s1 + $0x38] sm:$0xff]   ;;  %224 = vmatprep.subr.bf16.mxu0 %v246_v0  ;;  %v249_v3 = vld [vmem:[%s333_s1 + $0x30] sm:$0xff]   ;;  %v251_v5 = vld [vmem:[%s333_s1 + $0x28] sm:$0xff]  }
   0x3   :  { %225 = vmatpush3.bf16.msra.mxu0 %v247_v1  ;;  %v252_v6 = vld [vmem:[%s333_s1 + $0x60] sm:$0xff]   ;;  %v254_v8 = vld [vmem:[%s333_s1 + $0x58] sm:$0xff]   ;;  %v256_v10 = vld [vmem:[%s333_s1 + $0x50] sm:$0xff]  }
   0x4   :  { %226 = vmatprep.subr.bf16.mxu0 %v248_v2  ;;  %v253_v7 = vld [vmem:[%s333_s1 + $0x20] sm:$0xff]   ;;  %v255_v9 = vld [vmem:[%s333_s1 + $0x18] sm:$0xff]   ;;  %v257_v13 = vld [vmem:[%s333_s1 + $0x10] sm:$0xff]  }
   0x5   :  { %v17_v11 = vld [vmem:[%s334_s0] sm:$0xff]  ;;  %v258_v14 = vld [vmem:[%s333_s1 + $0x48] sm:$0xff]  }
   0x6   :  { %v207_v12 = vcombine.high %v17_v11, %v17_v11  ;;  %v259_v15 = vld [vmem:[%s333_s1 + $0x8] sm:$0xff]   ;;  %v260_v16 = vld [vmem:[%s333_s1 + $0x40] sm:$0xff]   ;;  %v206_v18 = vcombine.low %v17_v11, %v17_v11 }
   0x7   :  { %227 = vmatpush3.bf16.msra.mxu0 %v249_v3  ;;  %v261_v17 = vld [vmem:[%s333_s1] sm:$0xff]  }
   0x8   :  { %228 = vmatprep.subr.bf16.mxu0 %v250_v4  ;;  %186 = vmatprep.mubr.bf16.mxu0 %v207_v12 }
   0xb   :  { %229 = vmatpush3.bf16.msra.mxu0 %v251_v5 }
   0xc   :  { %230 = vmatprep.subr.bf16.mxu0 %v252_v6 }
   0xf   :  { %231 = vmatpush3.bf16.msra.mxu0 %v253_v7 }
  0x10   :  { %232 = vmatprep.subr.bf16.mxu0 %v254_v8 }
  0x13   :  { %233 = vmatpush3.bf16.msra.mxu0 %v255_v9 }
  0x14   :  { %234 = vmatprep.subr.bf16.mxu0 %v256_v10 }
  0x17   :  { %235 = vmatpush3.bf16.msra.mxu0 %v257_v13 }
  0x18   :  { %236 = vmatprep.subr.bf16.mxu0 %v258_v14 }
  0x1b   :  { %237 = vmatpush3.bf16.msra.mxu0 %v259_v15 }
  0x1c   :  { %238 = vmatprep.subr.bf16.mxu0 %v260_v16 }
  0x1f   :  { %239 = vmatpush3.bf16.msra.mxu0 %v261_v17 }
  0x22   :  { %187 = vmatmul.mubr.bf16.vlgmr.msra.gmra.mxu0 %v206_v18 }
  0xe2   :  { %v240_v19 = vpop.f32.mrf.mxu0 }
  0xe4   :  { %v241_v20 = vpop.f32.mrf.mxu0 }
  0xe5   :  { %v242_v21 = vadd.f32 %v241_v20, %v240_v19 }
  0xe6   :  { %v243_v22 = vpop.f32.mrf.mxu0 }
  0xe7   :  { %v200_v23 = vpack.c.bf16 %v242_v21, %v242_v21 }
  0xe8   :  { %v244_v24 = vpop.f32.mrf.mxu0 }
  0xe9   :  { %201 = vst [vmem:[%s335_s2] sm:$0xf] %v200_v23 }

// kernel: _lambda_.15
= control target key start
LH: loop header
LB: loop body
LE: loop exit
PB: predicated region body
PF: predicated region fallthrough
CT: control target
= control target key end

     0   :  { %vm78_vm0 = vcmask 261120   ;;  %vm702_vm1 = vcmask 257024   ;;  %s1634_s0 = inlined_call_operand.vmem [shape: bf16[256,32], index: 0, kind: input, shape index: {}]   ;;  %s1635_s1 = inlined_call_operand.vmem [shape: f32[1,32], index: 1, kind: input, shape index: {}]   ;;  %s1636_s2 = inlined_call_operand.vmem [shape: f32[1,32], index: 2, kind: input, shape index: {}]   ;;  %s1637_s3 = inlined_call_operand.vmem [shape: bf16[256,32], index: 3, kind: output, shape index: {}]  }
   0x1   :  { %v971_v0 = vld [vmem:[%s1634_s0] sm:$0xff]   ;;  %v976_v1 = vld [vmem:[%s1634_s0 + $0x8] sm:$0xff]   ;;  %v985_v6 = vld [vmem:[%s1634_s0 + $0x10] sm:$0xff]  }
   0x2   :  { %v807_v2 = vunpack.c.l.bf16 %v971_v0  ;;  %v811_v3 = vunpack.c.l.bf16 %v976_v1  ;;  %v808_v4 = vunpack.c.h.bf16 %v971_v0  ;;  %v812_v5 = vunpack.c.h.bf16 %v976_v1  ;;  %v1004_v13 = vld [vmem:[%s1634_s0 + $0x18] sm:$0xff]   ;;  %v1017_v18 = vld [vmem:[%s1634_s0 + $0x20] sm:$0xff]   ;;  %v1030_v23 = vld [vmem:[%s1634_s0 + $0x28] sm:$0xff]  }
   0x3   :  { %v815_v11 = vunpack.c.l.bf16 %v985_v6  ;;  %v816_v12 = vunpack.c.h.bf16 %v985_v6  ;;  %v819_v16 = vunpack.c.l.bf16 %v1004_v13  ;;  %v820_v17 = vunpack.c.h.bf16 %v1004_v13  ;;  %v1043_v28 = vld [vmem:[%s1634_s0 + $0x30] sm:$0xff]   ;;  %v1056_v33 = vld [vmem:[%s1634_s0 + $0x38] sm:$0xff]   ;;  %v1069_v38 = vld [vmem:[%s1634_s0 + $0x40] sm:$0xff]  }
   0x4   :  { %v79_v7 = vsel %vm78_vm0, %v807_v2, 0.0  ;;  %v85_v8 = vsel %vm78_vm0, %v811_v3, 0.0  ;;  %v82_v9 = vsel %vm78_vm0, %v808_v4, 0.0  ;;  %v88_v10 = vsel %vm78_vm0, %v812_v5, 0.0  ;;  %v1082_v43 = vld [vmem:[%s1634_s0 + $0x48] sm:$0xff]   ;;  %v1095_v48 = vld [vmem:[%s1634_s0 + $0x50] sm:$0xff]  }
   0x5   :  { %80 = vadd.xlane.f32.xlu0 %v79_v7  ;;  %86 = vadd.xlane.f32.xlu1 %v85_v8  ;;  %v91_v14 = vsel %vm78_vm0, %v815_v11, 0.0  ;;  %v94_v15 = vsel %vm78_vm0, %v816_v12, 0.0  ;;  %v97_v19 = vsel %vm78_vm0, %v819_v16, 0.0  ;;  %v100_v20 = vsel %vm78_vm0, %v820_v17, 0.0  ;;  %v1108_v53 = vld [vmem:[%s1634_s0 + $0x58] sm:$0xff]   ;;  %v1121_v58 = vld [vmem:[%s1634_s0 + $0x60] sm:$0xff]  }
   0x6   :  { %v823_v21 = vunpack.c.l.bf16 %v1017_v18  ;;  %v824_v22 = vunpack.c.h.bf16 %v1017_v18  ;;  %v827_v26 = vunpack.c.l.bf16 %v1030_v23  ;;  %v828_v27 = vunpack.c.h.bf16 %v1030_v23  ;;  %v1134_v63 = vld [vmem:[%s1634_s0 + $0x68] sm:$0xff]  }
   0x7   :  { %v831_v31 = vunpack.c.l.bf16 %v1043_v28  ;;  %v832_v32 = vunpack.c.h.bf16 %v1043_v28  ;;  %v835_v36 = vunpack.c.l.bf16 %v1056_v33  ;;  %v836_v37 = vunpack.c.h.bf16 %v1056_v33 }
   0x8   :  { %v103_v24 = vsel %vm78_vm0, %v823_v21, 0.0  ;;  %v106_v25 = vsel %vm78_vm0, %v824_v22, 0.0  ;;  %v109_v29 = vsel %vm78_vm0, %v827_v26, 0.0  ;;  %v112_v30 = vsel %vm78_vm0, %v828_v27, 0.0 }
   0x9   :  { %83 = vadd.xlane.f32.xlu0 %v82_v9  ;;  %89 = vadd.xlane.f32.xlu1 %v88_v10  ;;  %v115_v34 = vsel %vm78_vm0, %v831_v31, 0.0  ;;  %v118_v35 = vsel %vm78_vm0, %v832_v32, 0.0  ;;  %v121_v39 = vsel %vm78_vm0, %v835_v36, 0.0  ;;  %v124_v40 = vsel %vm78_vm0, %v836_v37, 0.0 }
   0xa   :  { %v839_v41 = vunpack.c.l.bf16 %v1069_v38  ;;  %v840_v42 = vunpack.c.h.bf16 %v1069_v38  ;;  %v843_v46 = vunpack.c.l.bf16 %v1082_v43  ;;  %v844_v47 = vunpack.c.h.bf16 %v1082_v43 }
   0xb   :  { %v847_v51 = vunpack.c.l.bf16 %v1095_v48  ;;  %v848_v52 = vunpack.c.h.bf16 %v1095_v48  ;;  %v851_v56 = vunpack.c.l.bf16 %v1108_v53  ;;  %v852_v57 = vunpack.c.h.bf16 %v1108_v53 }
   0xc   :  { %v127_v44 = vsel %vm78_vm0, %v839_v41, 0.0  ;;  %v130_v45 = vsel %vm78_vm0, %v840_v42, 0.0  ;;  %v133_v49 = vsel %vm78_vm0, %v843_v46, 0.0  ;;  %v136_v50 = vsel %vm78_vm0, %v844_v47, 0.0 }
   0xd   :  { %92 = vadd.xlane.f32.xlu0 %v91_v14  ;;  %95 = vadd.xlane.f32.xlu1 %v94_v15  ;;  %v139_v54 = vsel %vm78_vm0, %v847_v51, 0.0  ;;  %v142_v55 = vsel %vm78_vm0, %v848_v52, 0.0  ;;  %v145_v59 = vsel %vm78_vm0, %v851_v56, 0.0  ;;  %v148_v60 = vsel %vm78_vm0, %v852_v57, 0.0  ;;  %v1147_v14 = vld [vmem:[%s1634_s0 + $0x70] sm:$0xff]  }
   0xe   :  { %v855_v61 = vunpack.c.l.bf16 %v1121_v58  ;;  %v856_v62 = vunpack.c.h.bf16 %v1121_v58  ;;  %v859_v9 = vunpack.c.l.bf16 %v1134_v63  ;;  %v860_v10 = vunpack.c.h.bf16 %v1134_v63 }
  0x10   :  { %v151_v7 = vsel %vm78_vm0, %v855_v61, 0.0  ;;  %v154_v8 = vsel %vm78_vm0, %v856_v62, 0.0  ;;  %v157_v15 = vsel %vm78_vm0, %v859_v9, 0.0 }
  0x11   :  { %98 = vadd.xlane.f32.xlu0 %v97_v19  ;;  %101 = vadd.xlane.f32.xlu1 %v100_v20  ;;  %v160_v19 = vsel %vm78_vm0, %v860_v10, 0.0  ;;  %v863_v20 = vunpack.c.l.bf16 %v1147_v14 }
  0x15   :  { %104 = vadd.xlane.f32.xlu0 %v103_v24  ;;  %107 = vadd.xlane.f32.xlu1 %v106_v25  ;;  %v864_v24 = vunpack.c.h.bf16 %v1147_v14  ;;  %v1160_v25 = vld [vmem:[%s1634_s0 + $0x78] sm:$0xff]  }
  0x19   :  { %110 = vadd.xlane.f32.xlu0 %v109_v29  ;;  %113 = vadd.xlane.f32.xlu1 %v112_v30  ;;  %v163_v29 = vsel %vm78_vm0, %v863_v20, 0.0  ;;  %v166_v30 = vsel %vm78_vm0, %v864_v24, 0.0 }
  0x1d   :  { %116 = vadd.xlane.f32.xlu0 %v115_v34  ;;  %119 = vadd.xlane.f32.xlu1 %v118_v35  ;;  %v867_v34 = vunpack.c.l.bf16 %v1160_v25  ;;  %v868_v35 = vunpack.c.h.bf16 %v1160_v25 }
  0x21   :  { %122 = vadd.xlane.f32.xlu0 %v121_v39  ;;  %125 = vadd.xlane.f32.xlu1 %v124_v40  ;;  %v169_v39 = vsel %vm78_vm0, %v867_v34, 0.0  ;;  %v172_v40 = vsel %vm78_vm0, %v868_v35, 0.0 }
  0x25   :  { %128 = vadd.xlane.f32.xlu0 %v127_v44  ;;  %131 = vadd.xlane.f32.xlu1 %v130_v45 }
  0x29   :  { %134 = vadd.xlane.f32.xlu0 %v133_v49  ;;  %137 = vadd.xlane.f32.xlu1 %v136_v50 }
  0x2d   :  { %140 = vadd.xlane.f32.xlu0 %v139_v54  ;;  %143 = vadd.xlane.f32.xlu1 %v142_v55 }
  0x31   :  { %146 = vadd.xlane.f32.xlu0 %v145_v59  ;;  %149 = vadd.xlane.f32.xlu1 %v148_v60 }
  0x35   :  { %152 = vadd.xlane.f32.xlu0 %v151_v7  ;;  %155 = vadd.xlane.f32.xlu1 %v154_v8 }
  0x39   :  { %158 = vadd.xlane.f32.xlu0 %v157_v15  ;;  %161 = vadd.xlane.f32.xlu1 %v160_v19 }
  0x3d   :  { %164 = vadd.xlane.f32.xlu0 %v163_v29  ;;  %167 = vadd.xlane.f32.xlu1 %v166_v30 }
  0x41   :  { %170 = vadd.xlane.f32.xlu0 %v169_v39  ;;  %173 = vadd.xlane.f32.xlu1 %v172_v40 }
  0x8e   :  { %v81_v44 = vpop.xlane.xlu0 %80  ;;  %v87_v45 = vpop.xlane.xlu1 %86 }
  0x8f   :  { %v176_v49 = vmul.f32 0.03125, %v81_v44  ;;  %v178_v50 = vmul.f32 0.03125, %v87_v45 }
  0x91   :  { %v1178_v54 = vsub.f32 %v807_v2, %v176_v49  ;;  %v1182_v55 = vsub.f32 %v811_v3, %v178_v50 }
  0x92   :  { %v84_v59 = vpop.xlane.xlu0 %83  ;;  %v90_v60 = vpop.xlane.xlu1 %89 }
  0x93   :  { %v177_v7 = vmul.f32 0.03125, %v84_v59  ;;  %v179_v8 = vmul.f32 0.03125, %v90_v60  ;;  %v240_v15 = vmul.f32 %v1178_v54, %v1178_v54  ;;  %v242_v19 = vmul.f32 %v1182_v55, %v1182_v55 }
  0x95   :  { %v1190_v29 = vsub.f32 %v808_v4, %v177_v7  ;;  %v1194_v2 = vsub.f32 %v812_v5, %v179_v8  ;;  %v272_v3 = vsel %vm78_vm0, %v240_v15, 0.0  ;;  %v278_v40 = vsel %vm78_vm0, %v242_v19, 0.0 }
  0x96   :  { %273 = vadd.xlane.f32.xlu0 %v272_v3  ;;  %v93_v30 = vpop.xlane.xlu0 %92  ;;  %v96_v39 = vpop.xlane.xlu1 %95 }
  0x97   :  { %v180_v44 = vmul.f32 0.03125, %v93_v30  ;;  %v181_v45 = vmul.f32 0.03125, %v96_v39  ;;  %v241_v49 = vmul.f32 %v1190_v29, %v1190_v29  ;;  %v243_v0 = vmul.f32 %v1194_v2, %v1194_v2 }
  0x99   :  { %v1204_v1 = vsub.f32 %v815_v11, %v180_v44  ;;  %v1208_v4 = vsub.f32 %v816_v12, %v181_v45  ;;  %v275_v5 = vsel %vm78_vm0, %v241_v49, 0.0  ;;  %v281_v60 = vsel %vm78_vm0, %v243_v0, 0.0 }
  0x9a   :  { %279 = vadd.xlane.f32.xlu0 %v278_v40  ;;  %276 = vadd.xlane.f32.xlu1 %v275_v5  ;;  %v99_v50 = vpop.xlane.xlu0 %98  ;;  %v102_v59 = vpop.xlane.xlu1 %101 }
  0x9b   :  { %v182_v7 = vmul.f32 0.03125, %v99_v50  ;;  %v183_v8 = vmul.f32 0.03125, %v102_v59  ;;  %v244_v15 = vmul.f32 %v1204_v1, %v1204_v1  ;;  %v245_v11 = vmul.f32 %v1208_v4, %v1208_v4 }
  0x9d   :  { %v1218_v6 = vsub.f32 %v819_v16, %v182_v7  ;;  %v1222_v12 = vsub.f32 %v820_v17, %v183_v8  ;;  %v284_v19 = vsel %vm78_vm0, %v244_v15, 0.0  ;;  %v287_v39 = vsel %vm78_vm0, %v245_v11, 0.0 }
  0x9e   :  { %282 = vadd.xlane.f32.xlu1 %v281_v60  ;;  %285 = vadd.xlane.f32.xlu0 %v284_v19  ;;  %v105_v3 = vpop.xlane.xlu0 %104  ;;  %v108_v30 = vpop.xlane.xlu1 %107 }
  0x9f   :  { %v184_v40 = vmul.f32 0.03125, %v105_v3  ;;  %v185_v44 = vmul.f32 0.03125, %v108_v30  ;;  %v246_v45 = vmul.f32 %v1218_v6, %v1218_v6  ;;  %v247_v16 = vmul.f32 %v1222_v12, %v1222_v12 }
  0xa1   :  { %v1232_v13 = vsub.f32 %v823_v21, %v184_v40  ;;  %v1236_v17 = vsub.f32 %v824_v22, %v185_v44  ;;  %v290_v49 = vsel %vm78_vm0, %v246_v45, 0.0  ;;  %v293_v50 = vsel %vm78_vm0, %v247_v16, 0.0 }
  0xa2   :  { %288 = vadd.xlane.f32.xlu1 %v287_v39  ;;  %291 = vadd.xlane.f32.xlu0 %v290_v49  ;;  %v111_v0 = vpop.xlane.xlu0 %110  ;;  %v114_v5 = vpop.xlane.xlu1 %113 }
  0xa3   :  { %v186_v59 = vmul.f32 0.03125, %v111_v0  ;;  %v187_v60 = vmul.f32 0.03125, %v114_v5  ;;  %v248_v7 = vmul.f32 %v1232_v13, %v1232_v13  ;;  %v249_v21 = vmul.f32 %v1236_v17, %v1236_v17 }
  0xa5   :  { %v1246_v18 = vsub.f32 %v827_v26, %v186_v59  ;;  %v1250_v22 = vsub.f32 %v828_v27, %v187_v60  ;;  %v296_v8 = vsel %vm78_vm0, %v248_v7, 0.0  ;;  %v299_v19 = vsel %vm78_vm0, %v249_v21, 0.0 }
  0xa6   :  { %294 = vadd.xlane.f32.xlu1 %v293_v50  ;;  %297 = vadd.xlane.f32.xlu0 %v296_v8  ;;  %v117_v15 = vpop.xlane.xlu0 %116  ;;  %v120_v11 = vpop.xlane.xlu1 %119 }
  0xa7   :  { %v188_v3 = vmul.f32 0.03125, %v117_v15  ;;  %v189_v30 = vmul.f32 0.03125, %v120_v11  ;;  %v250_v39 = vmul.f32 %v1246_v18, %v1246_v18  ;;  %v251_v26 = vmul.f32 %v1250_v22, %v1250_v22 }
  0xa9   :  { %v1260_v23 = vsub.f32 %v831_v31, %v188_v3  ;;  %v1264_v27 = vsub.f32 %v832_v32, %v189_v30  ;;  %v302_v40 = vsel %vm78_vm0, %v250_v39, 0.0  ;;  %v305_v16 = vsel %vm78_vm0, %v251_v26, 0.0 }
  0xaa   :  { %300 = vadd.xlane.f32.xlu1 %v299_v19  ;;  %303 = vadd.xlane.f32.xlu0 %v302_v40  ;;  %v123_v44 = vpop.xlane.xlu0 %122  ;;  %v126_v45 = vpop.xlane.xlu1 %125 }
  0xab   :  { %v190_v49 = vmul.f32 0.03125, %v123_v44  ;;  %v191_v0 = vmul.f32 0.03125, %v126_v45  ;;  %v252_v5 = vmul.f32 %v1260_v23, %v1260_v23  ;;  %v253_v31 = vmul.f32 %v1264_v27, %v1264_v27 }
  0xad   :  { %v1274_v28 = vsub.f32 %v835_v36, %v190_v49  ;;  %v1278_v32 = vsub.f32 %v836_v37, %v191_v0  ;;  %v308_v50 = vsel %vm78_vm0, %v252_v5, 0.0  ;;  %v311_v7 = vsel %vm78_vm0, %v253_v31, 0.0 }
  0xae   :  { %306 = vadd.xlane.f32.xlu1 %v305_v16  ;;  %309 = vadd.xlane.f32.xlu0 %v308_v50  ;;  %v129_v59 = vpop.xlane.xlu0 %128  ;;  %v132_v60 = vpop.xlane.xlu1 %131 }
  0xaf   :  { %v192_v21 = vmul.f32 0.03125, %v129_v59  ;;  %v193_v8 = vmul.f32 0.03125, %v132_v60  ;;  %v254_v15 = vmul.f32 %v1274_v28, %v1274_v28  ;;  %v255_v36 = vmul.f32 %v1278_v32, %v1278_v32 }
  0xb1   :  { %v1288_v33 = vsub.f32 %v839_v41, %v192_v21  ;;  %v1292_v37 = vsub.f32 %v840_v42, %v193_v8  ;;  %v314_v11 = vsel %vm78_vm0, %v254_v15, 0.0  ;;  %v317_v30 = vsel %vm78_vm0, %v255_v36, 0.0 }
  0xb2   :  { %312 = vadd.xlane.f32.xlu1 %v311_v7  ;;  %315 = vadd.xlane.f32.xlu0 %v314_v11  ;;  %v135_v19 = vpop.xlane.xlu0 %134  ;;  %v138_v3 = vpop.xlane.xlu1 %137 }
  0xb3   :  { %v194_v39 = vmul.f32 0.03125, %v135_v19  ;;  %v195_v26 = vmul.f32 0.03125, %v138_v3  ;;  %v256_v40 = vmul.f32 %v1288_v33, %v1288_v33  ;;  %v257_v41 = vmul.f32 %v1292_v37, %v1292_v37 }
  0xb5   :  { %v1302_v38 = vsub.f32 %v843_v46, %v194_v39  ;;  %v1306_v42 = vsub.f32 %v844_v47, %v195_v26  ;;  %v320_v44 = vsel %vm78_vm0, %v256_v40, 0.0  ;;  %v323_v49 = vsel %vm78_vm0, %v257_v41, 0.0 }
  0xb6   :  { %318 = vadd.xlane.f32.xlu1 %v317_v30  ;;  %321 = vadd.xlane.f32.xlu0 %v320_v44  ;;  %v141_v45 = vpop.xlane.xlu0 %140  ;;  %v144_v16 = vpop.xlane.xlu1 %143 }
  0xb7   :  { %v196_v0 = vmul.f32 0.03125, %v141_v45  ;;  %v197_v5 = vmul.f32 0.03125, %v144_v16  ;;  %v258_v31 = vmul.f32 %v1302_v38, %v1302_v38  ;;  %v259_v46 = vmul.f32 %v1306_v42, %v1306_v42 }
  0xb9   :  { %v1316_v43 = vsub.f32 %v847_v51, %v196_v0  ;;  %v1320_v47 = vsub.f32 %v848_v52, %v197_v5  ;;  %v326_v50 = vsel %vm78_vm0, %v258_v31, 0.0  ;;  %v329_v7 = vsel %vm78_vm0, %v259_v46, 0.0 }
  0xba   :  { %324 = vadd.xlane.f32.xlu1 %v323_v49  ;;  %327 = vadd.xlane.f32.xlu0 %v326_v50  ;;  %v147_v59 = vpop.xlane.xlu0 %146  ;;  %v150_v60 = vpop.xlane.xlu1 %149 }
  0xbb   :  { %v198_v21 = vmul.f32 0.03125, %v147_v59  ;;  %v199_v8 = vmul.f32 0.03125, %v150_v60  ;;  %v260_v15 = vmul.f32 %v1316_v43, %v1316_v43  ;;  %v261_v51 = vmul.f32 %v1320_v47, %v1320_v47 }
  0xbd   :  { %v1330_v48 = vsub.f32 %v851_v56, %v198_v21  ;;  %v1334_v52 = vsub.f32 %v852_v57, %v199_v8  ;;  %v332_v36 = vsel %vm78_vm0, %v260_v15, 0.0  ;;  %v335_v3 = vsel %vm78_vm0, %v261_v51, 0.0 }
  0xbe   :  { %330 = vadd.xlane.f32.xlu1 %v329_v7  ;;  %333 = vadd.xlane.f32.xlu0 %v332_v36  ;;  %v153_v11 = vpop.xlane.xlu0 %152  ;;  %v156_v19 = vpop.xlane.xlu1 %155 }
  0xbf   :  { %v200_v30 = vmul.f32 0.03125, %v153_v11  ;;  %v201_v39 = vmul.f32 0.03125, %v156_v19  ;;  %v262_v26 = vmul.f32 %v1330_v48, %v1330_v48  ;;  %v263_v56 = vmul.f32 %v1334_v52, %v1334_v52 }
  0xc1   :  { %v1344_v53 = vsub.f32 %v855_v61, %v200_v30  ;;  %v1348_v57 = vsub.f32 %v856_v62, %v201_v39  ;;  %v338_v40 = vsel %vm78_vm0, %v262_v26, 0.0  ;;  %v341_v45 = vsel %vm78_vm0, %v263_v56, 0.0 }
  0xc2   :  { %336 = vadd.xlane.f32.xlu1 %v335_v3  ;;  %339 = vadd.xlane.f32.xlu0 %v338_v40  ;;  %v159_v41 = vpop.xlane.xlu0 %158  ;;  %v162_v44 = vpop.xlane.xlu1 %161 }
  0xc3   :  { %v202_v16 = vmul.f32 0.03125, %v159_v41  ;;  %v203_v49 = vmul.f32 0.03125, %v162_v44  ;;  %v264_v0 = vmul.f32 %v1344_v53, %v1344_v53  ;;  %v265_v61 = vmul.f32 %v1348_v57, %v1348_v57 }
  0xc5   :  { %v1358_v58 = vsub.f32 %v859_v9, %v202_v16  ;;  %v1362_v62 = vsub.f32 %v860_v10, %v203_v49  ;;  %v344_v5 = vsel %vm78_vm0, %v264_v0, 0.0  ;;  %v347_v50 = vsel %vm78_vm0, %v265_v61, 0.0 }
  0xc6   :  { %342 = vadd.xlane.f32.xlu1 %v341_v45  ;;  %345 = vadd.xlane.f32.xlu0 %v344_v5  ;;  %v165_v31 = vpop.xlane.xlu0 %164  ;;  %v168_v46 = vpop.xlane.xlu1 %167 }
  0xc7   :  { %v204_v59 = vmul.f32 0.03125, %v165_v31  ;;  %v205_v60 = vmul.f32 0.03125, %v168_v46  ;;  %v266_v7 = vmul.f32 %v1358_v58, %v1358_v58  ;;  %v267_v9 = vmul.f32 %v1362_v62, %v1362_v62 }
  0xc9   :  { %v1372_v63 = vsub.f32 %v863_v20, %v204_v59  ;;  %v1376_v10 = vsub.f32 %v864_v24, %v205_v60  ;;  %v350_v21 = vsel %vm78_vm0, %v266_v7, 0.0  ;;  %v353_v51 = vsel %vm78_vm0, %v267_v9, 0.0 }
  0xca   :  { %348 = vadd.xlane.f32.xlu1 %v347_v50  ;;  %351 = vadd.xlane.f32.xlu0 %v350_v21  ;;  %v171_v8 = vpop.xlane.xlu0 %170  ;;  %v174_v15 = vpop.xlane.xlu1 %173 }
  0xcb   :  { %v206_v36 = vmul.f32 0.03125, %v171_v8  ;;  %v207_v11 = vmul.f32 0.03125, %v174_v15  ;;  %v268_v19 = vmul.f32 %v1372_v63, %v1372_v63  ;;  %v269_v20 = vmul.f32 %v1376_v10, %v1376_v10 }
  0xcd   :  { %v1386_v14 = vsub.f32 %v867_v34, %v206_v36  ;;  %v1390_v24 = vsub.f32 %v868_v35, %v207_v11  ;;  %v356_v3 = vsel %vm78_vm0, %v268_v19, 0.0  ;;  %v359_v30 = vsel %vm78_vm0, %v269_v20, 0.0 }
  0xce   :  { %354 = vadd.xlane.f32.xlu1 %v353_v51  ;;  %357 = vadd.xlane.f32.xlu0 %v356_v3  ;;  %v1403_v3 = vld [vmem:[%s1635_s1] ss:$0 sm:$0xff] }
  0xcf   :  { %v270_v39 = vmul.f32 %v1386_v14, %v1386_v14  ;;  %v271_v26 = vmul.f32 %v1390_v24, %v1390_v24 }
  0xd1   :  { %v362_v56 = vsel %vm78_vm0, %v270_v39, 0.0  ;;  %v365_v25 = vsel %vm78_vm0, %v271_v26, 0.0 }
  0xd2   :  { %360 = vadd.xlane.f32.xlu1 %v359_v30  ;;  %363 = vadd.xlane.f32.xlu0 %v362_v56  ;;  %v1409_v56 = vld [vmem:[%s1636_s2] ss:$0 sm:$0xff] }
  0xd6   :  { %366 = vadd.xlane.f32.xlu1 %v365_v25 }
 0x11f   :  { %v274_v34 = vpop.xlane.xlu0 %273 }
 0x120   :  { %v368_v35 = vmul.f32 0.03125, %v274_v34 }
 0x122   :  { %v400_v40 = vadd.f32 1e-05, %v368_v35 }
 0x123   :  { %v277_v41 = vpop.xlane.xlu1 %276  ;;  %v280_v44 = vpop.xlane.xlu0 %279 }
 0x124   :  { %884 = vrsqrt.f32 %v400_v40  ;;  %v369_v45 = vmul.f32 0.03125, %v277_v41  ;;  %v370_v16 = vmul.f32 0.03125, %v280_v44 }
 0x126   :  { %v401_v49 = vadd.f32 1e-05, %v369_v45  ;;  %v402_v0 = vadd.f32 1e-05, %v370_v16 }
 0x127   :  { %v283_v61 = vpop.xlane.xlu1 %282  ;;  %v286_v5 = vpop.xlane.xlu0 %285 }
 0x128   :  { %886 = vrsqrt.f32 %v401_v49  ;;  %v371_v31 = vmul.f32 0.03125, %v283_v61  ;;  %v372_v46 = vmul.f32 0.03125, %v286_v5 }
 0x129   :  { %888 = vrsqrt.f32 %v402_v0 }
 0x12a   :  { %v403_v50 = vadd.f32 1e-05, %v371_v31  ;;  %v404_v59 = vadd.f32 1e-05, %v372_v46 }
 0x12b   :  { %v289_v60 = vpop.xlane.xlu1 %288  ;;  %v292_v7 = vpop.xlane.xlu0 %291 }
 0x12c   :  { %890 = vrsqrt.f32 %v403_v50  ;;  %v373_v9 = vmul.f32 0.03125, %v289_v60  ;;  %v374_v21 = vmul.f32 0.03125, %v292_v7 }
 0x12d   :  { %892 = vrsqrt.f32 %v404_v59 }
 0x12e   :  { %v405_v8 = vadd.f32 1e-05, %v373_v9  ;;  %v406_v15 = vadd.f32 1e-05, %v374_v21 }
 0x12f   :  { %v295_v51 = vpop.xlane.xlu1 %294  ;;  %v298_v36 = vpop.xlane.xlu0 %297 }
 0x130   :  { %894 = vrsqrt.f32 %v405_v8  ;;  %v375_v11 = vmul.f32 0.03125, %v295_v51  ;;  %v376_v19 = vmul.f32 0.03125, %v298_v36 }
 0x131   :  { %v885_v20 = vpop.eup %884  ;;  %896 = vrsqrt.f32 %v406_v15 }
 0x132   :  { %v464_v30 = vmul.f32 %v885_v20, %v1178_v54  ;;  %v407_v39 = vadd.f32 1e-05, %v375_v11  ;;  %v408_v26 = vadd.f32 1e-05, %v376_v19 }
 0x133   :  { %v301_v25 = vpop.xlane.xlu1 %300  ;;  %v304_v34 = vpop.xlane.xlu0 %303 }
 0x134   :  { %v503_v35 = vmul.f32 %v1403_v3, %v464_v30  ;;  %898 = vrsqrt.f32 %v407_v39  ;;  %v377_v40 = vmul.f32 0.03125, %v301_v25  ;;  %v378_v41 = vmul.f32 0.03125, %v304_v34 }
 0x135   :  { %v887_v44 = vpop.eup %886  ;;  %900 = vrsqrt.f32 %v408_v26 }
 0x136   :  { %v889_v45 = vpop.eup %888  ;;  %v542_v16 = vadd.f32 %v1409_v56, %v503_v35  ;;  %v465_v54 = vmul.f32 %v887_v44, %v1190_v29  ;;  %v409_v49 = vadd.f32 1e-05, %v377_v40  ;;  %v410_v0 = vadd.f32 1e-05, %v378_v41 }
 0x137   :  { %v466_v61 = vmul.f32 %v889_v45, %v1182_v55  ;;  %v307_v5 = vpop.xlane.xlu1 %306  ;;  %v310_v31 = vpop.xlane.xlu0 %309 }
 0x138   :  { %v773_v46 = vpack.c.bf16 %v542_v16, %v542_v16  ;;  %v504_v50 = vmul.f32 %v1403_v3, %v465_v54  ;;  %902 = vrsqrt.f32 %v409_v49  ;;  %v379_v59 = vmul.f32 0.03125, %v307_v5 }
 0x139   :  { %v891_v60 = vpop.eup %890  ;;  %v505_v7 = vmul.f32 %v1403_v3, %v466_v61  ;;  %904 = vrsqrt.f32 %v410_v0  ;;  %v380_v9 = vmul.f32 0.03125, %v310_v31 }
 0x13a   :  { %v893_v21 = vpop.eup %892  ;;  %703 = vst.msk [vmem:[%s1637_s3] sm:$0xf] %vm702_vm1, %v773_v46  ;;  %v543_v55 = vadd.f32 %v1409_v56, %v504_v50  ;;  %v467_v29 = vmul.f32 %v891_v60, %v1194_v2  ;;  %v411_v8 = vadd.f32 1e-05, %v379_v59 }
 0x13b   :  { %v544_v15 = vadd.f32 %v1409_v56, %v505_v7  ;;  %v468_v51 = vmul.f32 %v893_v21, %v1204_v1  ;;  %v412_v36 = vadd.f32 1e-05, %v380_v9  ;;  %v313_v11 = vpop.xlane.xlu1 %312  ;;  %v316_v19 = vpop.xlane.xlu0 %315 }
 0x13c   :  { %v774_v20 = vpack.c.bf16 %v543_v55, %v543_v55  ;;  %v506_v30 = vmul.f32 %v1403_v3, %v467_v29  ;;  %906 = vrsqrt.f32 %v411_v8  ;;  %v381_v39 = vmul.f32 0.03125, %v313_v11 }
 0x13d   :  { %v895_v26 = vpop.eup %894  ;;  %v775_v25 = vpack.c.bf16 %v544_v15, %v544_v15  ;;  %v507_v34 = vmul.f32 %v1403_v3, %v468_v51  ;;  %908 = vrsqrt.f32 %v412_v36  ;;  %v382_v35 = vmul.f32 0.03125, %v316_v19 }
 0x13e   :  { %v897_v2 = vpop.eup %896  ;;  %704 = vst.msk [vmem:[%s1637_s3 + $0x4] sm:$0xf] %vm702_vm1, %v774_v20  ;;  %v545_v1 = vadd.f32 %v1409_v56, %v506_v30  ;;  %v469_v40 = vmul.f32 %v895_v26, %v1208_v4  ;;  %v413_v41 = vadd.f32 1e-05, %v381_v39 }
 0x13f   :  { %705 = vst.msk [vmem:[%s1637_s3 + $0x8] sm:$0xf] %vm702_vm1, %v775_v25  ;;  %v546_v44 = vadd.f32 %v1409_v56, %v507_v34  ;;  %v470_v45 = vmul.f32 %v897_v2, %v1218_v6  ;;  %v414_v16 = vadd.f32 1e-05, %v382_v35  ;;  %v319_v54 = vpop.xlane.xlu1 %318  ;;  %v322_v49 = vpop.xlane.xlu0 %321 }
 0x140   :  { %v776_v0 = vpack.c.bf16 %v545_v1, %v545_v1  ;;  %v508_v61 = vmul.f32 %v1403_v3, %v469_v40  ;;  %910 = vrsqrt.f32 %v413_v41  ;;  %v383_v5 = vmul.f32 0.03125, %v319_v54 }
 0x141   :  { %v899_v31 = vpop.eup %898  ;;  %v777_v4 = vpack.c.bf16 %v546_v44, %v546_v44  ;;  %v509_v46 = vmul.f32 %v1403_v3, %v470_v45  ;;  %912 = vrsqrt.f32 %v414_v16  ;;  %v384_v50 = vmul.f32 0.03125, %v322_v49 }
 0x142   :  { %v901_v59 = vpop.eup %900  ;;  %706 = vst.msk [vmem:[%s1637_s3 + $0xc] sm:$0xf] %vm702_vm1, %v776_v0  ;;  %v547_v6 = vadd.f32 %v1409_v56, %v508_v61  ;;  %v471_v60 = vmul.f32 %v899_v31, %v1222_v12  ;;  %v415_v7 = vadd.f32 1e-05, %v383_v5 }
 0x143   :  { %707 = vst.msk [vmem:[%s1637_s3 + $0x10] sm:$0xf] %vm702_vm1, %v777_v4  ;;  %v548_v9 = vadd.f32 %v1409_v56, %v509_v46  ;;  %v472_v21 = vmul.f32 %v901_v59, %v1232_v13  ;;  %v416_v55 = vadd.f32 1e-05, %v384_v50  ;;  %v325_v29 = vpop.xlane.xlu1 %324  ;;  %v328_v8 = vpop.xlane.xlu0 %327 }
 0x144   :  { %v778_v15 = vpack.c.bf16 %v547_v6, %v547_v6  ;;  %v510_v51 = vmul.f32 %v1403_v3, %v471_v60  ;;  %914 = vrsqrt.f32 %v415_v7  ;;  %v385_v36 = vmul.f32 0.03125, %v325_v29 }
 0x145   :  { %v903_v11 = vpop.eup %902  ;;  %v779_v12 = vpack.c.bf16 %v548_v9, %v548_v9  ;;  %v511_v19 = vmul.f32 %v1403_v3, %v472_v21  ;;  %916 = vrsqrt.f32 %v416_v55  ;;  %v386_v20 = vmul.f32 0.03125, %v328_v8 }
 0x146   :  { %v905_v30 = vpop.eup %904  ;;  %708 = vst.msk [vmem:[%s1637_s3 + $0x14] sm:$0xf] %vm702_vm1, %v778_v15  ;;  %v549_v13 = vadd.f32 %v1409_v56, %v510_v51  ;;  %v473_v39 = vmul.f32 %v903_v11, %v1236_v17  ;;  %v417_v26 = vadd.f32 1e-05, %v385_v36 }
 0x147   :  { %709 = vst.msk [vmem:[%s1637_s3 + $0x18] sm:$0xf] %vm702_vm1, %v779_v12  ;;  %v550_v25 = vadd.f32 %v1409_v56, %v511_v19  ;;  %v474_v34 = vmul.f32 %v905_v30, %v1246_v18  ;;  %v418_v35 = vadd.f32 1e-05, %v386_v20  ;;  %v331_v2 = vpop.xlane.xlu1 %330  ;;  %v334_v1 = vpop.xlane.xlu0 %333 }
 0x148   :  { %v780_v40 = vpack.c.bf16 %v549_v13, %v549_v13  ;;  %v512_v41 = vmul.f32 %v1403_v3, %v473_v39  ;;  %918 = vrsqrt.f32 %v417_v26  ;;  %v387_v44 = vmul.f32 0.03125, %v331_v2 }
 0x149   :  { %v907_v45 = vpop.eup %906  ;;  %v781_v17 = vpack.c.bf16 %v550_v25, %v550_v25  ;;  %v513_v16 = vmul.f32 %v1403_v3, %v474_v34  ;;  %920 = vrsqrt.f32 %v418_v35  ;;  %v388_v54 = vmul.f32 0.03125, %v334_v1 }
 0x14a   :  { %v909_v49 = vpop.eup %908  ;;  %710 = vst.msk [vmem:[%s1637_s3 + $0x1c] sm:$0xf] %vm702_vm1, %v780_v40  ;;  %v551_v18 = vadd.f32 %v1409_v56, %v512_v41  ;;  %v475_v0 = vmul.f32 %v907_v45, %v1250_v22  ;;  %v419_v61 = vadd.f32 1e-05, %v387_v44 }
 0x14b   :  { %711 = vst.msk [vmem:[%s1637_s3 + $0x20] sm:$0xf] %vm702_vm1, %v781_v17  ;;  %v552_v5 = vadd.f32 %v1409_v56, %v513_v16  ;;  %v476_v31 = vmul.f32 %v909_v49, %v1260_v23  ;;  %v420_v4 = vadd.f32 1e-05, %v388_v54  ;;  %v337_v46 = vpop.xlane.xlu1 %336  ;;  %v340_v50 = vpop.xlane.xlu0 %339 }
 0x14c   :  { %v782_v59 = vpack.c.bf16 %v551_v18, %v551_v18  ;;  %v514_v6 = vmul.f32 %v1403_v3, %v475_v0  ;;  %922 = vrsqrt.f32 %v419_v61  ;;  %v389_v60 = vmul.f32 0.03125, %v337_v46 }
 0x14d   :  { %v911_v7 = vpop.eup %910  ;;  %v783_v22 = vpack.c.bf16 %v552_v5, %v552_v5  ;;  %v515_v9 = vmul.f32 %v1403_v3, %v476_v31  ;;  %924 = vrsqrt.f32 %v420_v4  ;;  %v390_v21 = vmul.f32 0.03125, %v340_v50 }
 0x14e   :  { %v913_v55 = vpop.eup %912  ;;  %712 = vst.msk [vmem:[%s1637_s3 + $0x24] sm:$0xf] %vm702_vm1, %v782_v59  ;;  %v553_v23 = vadd.f32 %v1409_v56, %v514_v6  ;;  %v477_v29 = vmul.f32 %v911_v7, %v1264_v27  ;;  %v421_v8 = vadd.f32 1e-05, %v389_v60 }
 0x14f   :  { %713 = vst.msk [vmem:[%s1637_s3 + $0x28] sm:$0xf] %vm702_vm1, %v783_v22  ;;  %v554_v15 = vadd.f32 %v1409_v56, %v515_v9  ;;  %v478_v51 = vmul.f32 %v913_v55, %v1274_v28  ;;  %v422_v36 = vadd.f32 1e-05, %v390_v21  ;;  %v343_v11 = vpop.xlane.xlu1 %342  ;;  %v346_v12 = vpop.xlane.xlu0 %345 }
 0x150   :  { %v784_v19 = vpack.c.bf16 %v553_v23, %v553_v23  ;;  %v516_v20 = vmul.f32 %v1403_v3, %v477_v29  ;;  %926 = vrsqrt.f32 %v421_v8  ;;  %v391_v30 = vmul.f32 0.03125, %v343_v11 }
 0x151   :  { %v915_v13 = vpop.eup %914  ;;  %v785_v27 = vpack.c.bf16 %v554_v15, %v554_v15  ;;  %v517_v39 = vmul.f32 %v1403_v3, %v478_v51  ;;  %928 = vrsqrt.f32 %v422_v36  ;;  %v392_v26 = vmul.f32 0.03125, %v346_v12 }
 0x152   :  { %v917_v25 = vpop.eup %916  ;;  %714 = vst.msk [vmem:[%s1637_s3 + $0x2c] sm:$0xf] %vm702_vm1, %v784_v19  ;;  %v555_v28 = vadd.f32 %v1409_v56, %v516_v20  ;;  %v479_v34 = vmul.f32 %v915_v13, %v1278_v32  ;;  %v423_v35 = vadd.f32 1e-05, %v391_v30 }
 0x153   :  { %715 = vst.msk [vmem:[%s1637_s3 + $0x30] sm:$0xf] %vm702_vm1, %v785_v27  ;;  %v556_v2 = vadd.f32 %v1409_v56, %v517_v39  ;;  %v480_v1 = vmul.f32 %v917_v25, %v1288_v33  ;;  %v424_v40 = vadd.f32 1e-05, %v392_v26  ;;  %v349_v41 = vpop.xlane.xlu1 %348  ;;  %v352_v44 = vpop.xlane.xlu0 %351 }
 0x154   :  { %v786_v45 = vpack.c.bf16 %v555_v28, %v555_v28  ;;  %v518_v17 = vmul.f32 %v1403_v3, %v479_v34  ;;  %930 = vrsqrt.f32 %v423_v35  ;;  %v393_v16 = vmul.f32 0.03125, %v349_v41 }
 0x155   :  { %v919_v54 = vpop.eup %918  ;;  %v787_v32 = vpack.c.bf16 %v556_v2, %v556_v2  ;;  %v519_v49 = vmul.f32 %v1403_v3, %v480_v1  ;;  %932 = vrsqrt.f32 %v424_v40  ;;  %v394_v18 = vmul.f32 0.03125, %v352_v44 }
 0x156   :  { %v921_v0 = vpop.eup %920  ;;  %716 = vst.msk [vmem:[%s1637_s3 + $0x34] sm:$0xf] %vm702_vm1, %v786_v45  ;;  %v557_v33 = vadd.f32 %v1409_v56, %v518_v17  ;;  %v481_v61 = vmul.f32 %v919_v54, %v1292_v37  ;;  %v425_v5 = vadd.f32 1e-05, %v393_v16 }
 0x157   :  { %717 = vst.msk [vmem:[%s1637_s3 + $0x38] sm:$0xf] %vm702_vm1, %v787_v32  ;;  %v558_v31 = vadd.f32 %v1409_v56, %v519_v49  ;;  %v482_v4 = vmul.f32 %v921_v0, %v1302_v38  ;;  %v426_v46 = vadd.f32 1e-05, %v394_v18  ;;  %v355_v50 = vpop.xlane.xlu1 %354  ;;  %v358_v59 = vpop.xlane.xlu0 %357 }
 0x158   :  { %v788_v6 = vpack.c.bf16 %v557_v33, %v557_v33  ;;  %v520_v60 = vmul.f32 %v1403_v3, %v481_v61  ;;  %934 = vrsqrt.f32 %v425_v5  ;;  %v395_v7 = vmul.f32 0.03125, %v355_v50 }
 0x159   :  { %v923_v22 = vpop.eup %922  ;;  %v789_v37 = vpack.c.bf16 %v558_v31, %v558_v31  ;;  %v521_v9 = vmul.f32 %v1403_v3, %v482_v4  ;;  %936 = vrsqrt.f32 %v426_v46  ;;  %v396_v21 = vmul.f32 0.03125, %v358_v59 }
 0x15a   :  { %v925_v55 = vpop.eup %924  ;;  %718 = vst.msk [vmem:[%s1637_s3 + $0x3c] sm:$0xf] %vm702_vm1, %v788_v6  ;;  %v559_v38 = vadd.f32 %v1409_v56, %v520_v60  ;;  %v483_v23 = vmul.f32 %v923_v22, %v1306_v42  ;;  %v427_v29 = vadd.f32 1e-05, %v395_v7 }
 0x15b   :  { %719 = vst.msk [vmem:[%s1637_s3 + $0x40] sm:$0xf] %vm702_vm1, %v789_v37  ;;  %v560_v8 = vadd.f32 %v1409_v56, %v521_v9  ;;  %v484_v15 = vmul.f32 %v925_v55, %v1316_v43  ;;  %v428_v51 = vadd.f32 1e-05, %v396_v21  ;;  %v361_v36 = vpop.xlane.xlu1 %360  ;;  %v364_v11 = vpop.xlane.xlu0 %363 }
 0x15c   :  { %v790_v12 = vpack.c.bf16 %v559_v38, %v559_v38  ;;  %v522_v19 = vmul.f32 %v1403_v3, %v483_v23  ;;  %938 = vrsqrt.f32 %v427_v29  ;;  %v397_v20 = vmul.f32 0.03125, %v361_v36 }
 0x15d   :  { %v927_v30 = vpop.eup %926  ;;  %v791_v42 = vpack.c.bf16 %v560_v8, %v560_v8  ;;  %v523_v13 = vmul.f32 %v1403_v3, %v484_v15  ;;  %940 = vrsqrt.f32 %v428_v51  ;;  %v398_v27 = vmul.f32 0.03125, %v364_v11 }
 0x15e   :  { %v929_v39 = vpop.eup %928  ;;  %720 = vst.msk [vmem:[%s1637_s3 + $0x44] sm:$0xf] %vm702_vm1, %v790_v12  ;;  %v561_v43 = vadd.f32 %v1409_v56, %v522_v19  ;;  %v485_v26 = vmul.f32 %v927_v30, %v1320_v47  ;;  %v429_v25 = vadd.f32 1e-05, %v397_v20 }
 0x15f   :  { %721 = vst.msk [vmem:[%s1637_s3 + $0x48] sm:$0xf] %vm702_vm1, %v791_v42  ;;  %v562_v28 = vadd.f32 %v1409_v56, %v523_v13  ;;  %v486_v34 = vmul.f32 %v929_v39, %v1330_v48  ;;  %v430_v35 = vadd.f32 1e-05, %v398_v27  ;;  %v367_v2 = vpop.xlane.xlu1 %366 }
 0x160   :  { %v792_v1 = vpack.c.bf16 %v561_v43, %v561_v43  ;;  %v524_v40 = vmul.f32 %v1403_v3, %v485_v26  ;;  %942 = vrsqrt.f32 %v429_v25  ;;  %v399_v41 = vmul.f32 0.03125, %v367_v2 }
 0x161   :  { %v931_v44 = vpop.eup %930  ;;  %v793_v45 = vpack.c.bf16 %v562_v28, %v562_v28  ;;  %v525_v47 = vmul.f32 %v1403_v3, %v486_v34  ;;  %944 = vrsqrt.f32 %v430_v35 }
 0x162   :  { %v933_v17 = vpop.eup %932  ;;  %722 = vst.msk [vmem:[%s1637_s3 + $0x4c] sm:$0xf] %vm702_vm1, %v792_v1  ;;  %v563_v48 = vadd.f32 %v1409_v56, %v524_v40  ;;  %v487_v16 = vmul.f32 %v931_v44, %v1334_v52  ;;  %v431_v54 = vadd.f32 1e-05, %v399_v41 }
 0x163   :  { %723 = vst.msk [vmem:[%s1637_s3 + $0x50] sm:$0xf] %vm702_vm1, %v793_v45  ;;  %v564_v32 = vadd.f32 %v1409_v56, %v525_v47  ;;  %v488_v49 = vmul.f32 %v933_v17, %v1344_v53 }
 0x164   :  { %v794_v18 = vpack.c.bf16 %v563_v48, %v563_v48  ;;  %v526_v0 = vmul.f32 %v1403_v3, %v487_v16  ;;  %946 = vrsqrt.f32 %v431_v54 }
 0x165   :  { %v935_v33 = vpop.eup %934  ;;  %v795_v61 = vpack.c.bf16 %v564_v32, %v564_v32  ;;  %v527_v5 = vmul.f32 %v1403_v3, %v488_v49 }
 0x166   :  { %v937_v31 = vpop.eup %936  ;;  %724 = vst.msk [vmem:[%s1637_s3 + $0x54] sm:$0xf] %vm702_vm1, %v794_v18  ;;  %v565_v52 = vadd.f32 %v1409_v56, %v526_v0  ;;  %v489_v4 = vmul.f32 %v935_v33, %v1348_v57 }
 0x167   :  { %725 = vst.msk [vmem:[%s1637_s3 + $0x58] sm:$0xf] %vm702_vm1, %v795_v61  ;;  %v566_v53 = vadd.f32 %v1409_v56, %v527_v5  ;;  %v490_v46 = vmul.f32 %v937_v31, %v1358_v58 }
 0x168   :  { %v796_v50 = vpack.c.bf16 %v565_v52, %v565_v52  ;;  %v528_v59 = vmul.f32 %v1403_v3, %v489_v4 }
 0x169   :  { %v939_v6 = vpop.eup %938  ;;  %v797_v60 = vpack.c.bf16 %v566_v53, %v566_v53  ;;  %v529_v7 = vmul.f32 %v1403_v3, %v490_v46 }
 0x16a   :  { %v941_v22 = vpop.eup %940  ;;  %726 = vst.msk [vmem:[%s1637_s3 + $0x5c] sm:$0xf] %vm702_vm1, %v796_v50  ;;  %v567_v57 = vadd.f32 %v1409_v56, %v528_v59  ;;  %v491_v37 = vmul.f32 %v939_v6, %v1362_v62 }
 0x16b   :  { %727 = vst.msk [vmem:[%s1637_s3 + $0x60] sm:$0xf] %vm702_vm1, %v797_v60  ;;  %v568_v58 = vadd.f32 %v1409_v56, %v529_v7  ;;  %v492_v9 = vmul.f32 %v941_v22, %v1372_v63 }
 0x16c   :  { %v798_v21 = vpack.c.bf16 %v567_v57, %v567_v57  ;;  %v530_v55 = vmul.f32 %v1403_v3, %v491_v37 }
 0x16d   :  { %v943_v38 = vpop.eup %942  ;;  %v799_v23 = vpack.c.bf16 %v568_v58, %v568_v58  ;;  %v531_v29 = vmul.f32 %v1403_v3, %v492_v9 }
 0x16e   :  { %v945_v8 = vpop.eup %944  ;;  %728 = vst.msk [vmem:[%s1637_s3 + $0x64] sm:$0xf] %vm702_vm1, %v798_v21  ;;  %v569_v62 = vadd.f32 %v1409_v56, %v530_v55  ;;  %v493_v15 = vmul.f32 %v943_v38, %v1376_v10 }
 0x16f   :  { %729 = vst.msk [vmem:[%s1637_s3 + $0x68] sm:$0xf] %vm702_vm1, %v799_v23  ;;  %v570_v63 = vadd.f32 %v1409_v56, %v531_v29  ;;  %v494_v51 = vmul.f32 %v945_v8, %v1386_v14 }
 0x170   :  { %v800_v36 = vpack.c.bf16 %v569_v62, %v569_v62  ;;  %v532_v11 = vmul.f32 %v1403_v3, %v493_v15 }
 0x171   :  { %v947_v12 = vpop.eup %946  ;;  %v801_v19 = vpack.c.bf16 %v570_v63, %v570_v63  ;;  %v533_v20 = vmul.f32 %v1403_v3, %v494_v51 }
 0x172   :  { %730 = vst.msk [vmem:[%s1637_s3 + $0x6c] sm:$0xf] %vm702_vm1, %v800_v36  ;;  %v571_v10 = vadd.f32 %v1409_v56, %v532_v11  ;;  %v495_v30 = vmul.f32 %v947_v12, %v1390_v24 }
 0x173   :  { %731 = vst.msk [vmem:[%s1637_s3 + $0x70] sm:$0xf] %vm702_vm1, %v801_v19  ;;  %v572_v14 = vadd.f32 %v1409_v56, %v533_v20 }
 0x174   :  { %v802_v42 = vpack.c.bf16 %v571_v10, %v571_v10  ;;  %v534_v13 = vmul.f32 %v1403_v3, %v495_v30 }
 0x175   :  { %v803_v27 = vpack.c.bf16 %v572_v14, %v572_v14 }
 0x176   :  { %732 = vst.msk [vmem:[%s1637_s3 + $0x74] sm:$0xf] %vm702_vm1, %v802_v42  ;;  %v573_v39 = vadd.f32 %v1409_v56, %v534_v13 }
 0x177   :  { %733 = vst.msk [vmem:[%s1637_s3 + $0x78] sm:$0xf] %vm702_vm1, %v803_v27 }
 0x178   :  { %v804_v24 = vpack.c.bf16 %v573_v39, %v573_v39 }
 0x17a   :  { %734 = vst.msk [vmem:[%s1637_s3 + $0x7c] sm:$0xf] %vm702_vm1, %v804_v24 }

// kernel: _lambda_.16
= control target key start
LH: loop header
LB: loop body
LE: loop exit
PB: predicated region body
PF: predicated region fallthrough
CT: control target
= control target key end

     0   :  { %v121_v48 = vlaneseq  ;;  %v1574_v58 = vmov 0.0   ;;  %s2222_s0 = inlined_call_operand.vmem [shape: bf16[256,128], index: 0, kind: input, shape index: {}]   ;;  %s2223_s1 = inlined_call_operand.vmem [shape: bf16[128,128], index: 1, kind: input, shape index: {}]   ;;  %s2224_s2 = inlined_call_operand.vmem [shape: f32[1,128], index: 2, kind: input, shape index: {}]   ;;  %s2225_s3 = inlined_call_operand.vmem [shape: f32[1,128], index: 3, kind: input, shape index: {}]   ;;  %s2226_s4 = inlined_call_operand.vmem [shape: f32[1,128], index: 4, kind: input, shape index: {}]   ;;  %s2227_s5 = inlined_call_operand.vmem [shape: bf16[256,128], index: 5, kind: output, shape index: {}]  }
   0x1   :  { %v1608_v0 = vld [vmem:[%s2222_s0] sm:$0xff]   ;;  %v1626_v6 = vld [vmem:[%s2222_s0 + $0x8] sm:$0xff]   ;;  %v1648_v12 = vld [vmem:[%s2222_s0 + $0x10] sm:$0xff]  }
   0x2   :  { %v1613_v1 = vld [vmem:[%s2222_s0 + $0x40] sm:$0xff]   ;;  %v1241_v2 = vunpack.c.l.bf16 %v1608_v0  ;;  %v1242_v4 = vunpack.c.h.bf16 %v1608_v0  ;;  %v1245_v7 = vunpack.c.l.bf16 %v1626_v6  ;;  %v1246_v8 = vunpack.c.h.bf16 %v1626_v6  ;;  %v1637_v9 = vld [vmem:[%s2222_s0 + $0x48] sm:$0xff]   ;;  %v1659_v15 = vld [vmem:[%s2222_s0 + $0x50] sm:$0xff]  }
   0x3   :  { %v1273_v3 = vunpack.c.l.bf16 %v1613_v1  ;;  %v1274_v5 = vunpack.c.h.bf16 %v1613_v1  ;;  %v1277_v10 = vunpack.c.l.bf16 %v1637_v9  ;;  %v1278_v11 = vunpack.c.h.bf16 %v1637_v9  ;;  %v1670_v18 = vld [vmem:[%s2222_s0 + $0x18] sm:$0xff]   ;;  %v1692_v24 = vld [vmem:[%s2222_s0 + $0x20] sm:$0xff]   ;;  %v1714_v30 = vld [vmem:[%s2222_s0 + $0x28] sm:$0xff]  }
   0x4   :  { %126 = vadd.xlane.f32.xlu0 %v1241_v2  ;;  %v1249_v13 = vunpack.c.l.bf16 %v1648_v12  ;;  %v1250_v14 = vunpack.c.h.bf16 %v1648_v12  ;;  %v1281_v16 = vunpack.c.l.bf16 %v1659_v15  ;;  %v1282_v17 = vunpack.c.h.bf16 %v1659_v15  ;;  %v1681_v21 = vld [vmem:[%s2222_s0 + $0x58] sm:$0xff]   ;;  %v1703_v27 = vld [vmem:[%s2222_s0 + $0x60] sm:$0xff]   ;;  %v1725_v33 = vld [vmem:[%s2222_s0 + $0x68] sm:$0xff]  }
   0x5   :  { %158 = vadd.xlane.f32.xlu1 %v1273_v3  ;;  %v1253_v19 = vunpack.c.l.bf16 %v1670_v18  ;;  %v1254_v20 = vunpack.c.h.bf16 %v1670_v18  ;;  %v1285_v22 = vunpack.c.l.bf16 %v1681_v21  ;;  %v1286_v23 = vunpack.c.h.bf16 %v1681_v21  ;;  %v1736_v36 = vld [vmem:[%s2222_s0 + $0x30] sm:$0xff]   ;;  %v1758_v42 = vld [vmem:[%s2222_s0 + $0x38] sm:$0xff]  }
   0x6   :  { %v1257_v25 = vunpack.c.l.bf16 %v1692_v24  ;;  %v1258_v26 = vunpack.c.h.bf16 %v1692_v24  ;;  %v1289_v28 = vunpack.c.l.bf16 %v1703_v27  ;;  %v1290_v29 = vunpack.c.h.bf16 %v1703_v27  ;;  %v1747_v39 = vld [vmem:[%s2222_s0 + $0x70] sm:$0xff]   ;;  %v1769_v45 = vld [vmem:[%s2222_s0 + $0x78] sm:$0xff]  }
   0x7   :  { %v1261_v31 = vunpack.c.l.bf16 %v1714_v30  ;;  %v1262_v32 = vunpack.c.h.bf16 %v1714_v30  ;;  %v1293_v34 = vunpack.c.l.bf16 %v1725_v33  ;;  %v1294_v35 = vunpack.c.h.bf16 %v1725_v33 }
   0x8   :  { %128 = vadd.xlane.f32.xlu0 %v1242_v4  ;;  %v1265_v37 = vunpack.c.l.bf16 %v1736_v36  ;;  %v1266_v38 = vunpack.c.h.bf16 %v1736_v36  ;;  %v1297_v40 = vunpack.c.l.bf16 %v1747_v39  ;;  %v1298_v41 = vunpack.c.h.bf16 %v1747_v39 }
   0x9   :  { %160 = vadd.xlane.f32.xlu1 %v1274_v5  ;;  %v1269_v43 = vunpack.c.l.bf16 %v1758_v42  ;;  %v1270_v44 = vunpack.c.h.bf16 %v1758_v42  ;;  %v1301_v46 = vunpack.c.l.bf16 %v1769_v45  ;;  %v1302_v47 = vunpack.c.h.bf16 %v1769_v45 }
   0xa   :  { %v122_v49 = vand.u32 127, %v121_v48 }
   0xc   :  { %130 = vadd.xlane.f32.xlu0 %v1245_v7  ;;  %vm123_vm0 = vcmp.lt.s32.totalorder %v122_v49, 32 }
   0xd   :  { %132 = vadd.xlane.f32.xlu1 %v1246_v8  ;;  %v1789_v59 = vsel %vm123_vm0, 1.0, %v1574_v58 }
  0x10   :  { %162 = vadd.xlane.f32.xlu0 %v1277_v10 }
  0x11   :  { %164 = vadd.xlane.f32.xlu1 %v1278_v11 }
  0x14   :  { %134 = vadd.xlane.f32.xlu0 %v1249_v13 }
  0x15   :  { %136 = vadd.xlane.f32.xlu1 %v1250_v14 }
  0x18   :  { %166 = vadd.xlane.f32.xlu0 %v1281_v16 }
  0x19   :  { %168 = vadd.xlane.f32.xlu1 %v1282_v17 }
  0x1c   :  { %138 = vadd.xlane.f32.xlu0 %v1253_v19 }
  0x1d   :  { %140 = vadd.xlane.f32.xlu1 %v1254_v20 }
  0x20   :  { %170 = vadd.xlane.f32.xlu0 %v1285_v22 }
  0x21   :  { %172 = vadd.xlane.f32.xlu1 %v1286_v23 }
  0x24   :  { %142 = vadd.xlane.f32.xlu0 %v1257_v25 }
  0x25   :  { %144 = vadd.xlane.f32.xlu1 %v1258_v26 }
  0x28   :  { %174 = vadd.xlane.f32.xlu0 %v1289_v28 }
  0x29   :  { %176 = vadd.xlane.f32.xlu1 %v1290_v29 }
  0x2c   :  { %146 = vadd.xlane.f32.xlu0 %v1261_v31 }
  0x2d   :  { %148 = vadd.xlane.f32.xlu1 %v1262_v32 }
  0x30   :  { %178 = vadd.xlane.f32.xlu0 %v1293_v34 }
  0x31   :  { %180 = vadd.xlane.f32.xlu1 %v1294_v35 }
  0x34   :  { %150 = vadd.xlane.f32.xlu0 %v1265_v37 }
  0x35   :  { %152 = vadd.xlane.f32.xlu1 %v1266_v38 }
  0x38   :  { %182 = vadd.xlane.f32.xlu0 %v1297_v40 }
  0x39   :  { %184 = vadd.xlane.f32.xlu1 %v1298_v41 }
  0x3c   :  { %154 = vadd.xlane.f32.xlu0 %v1269_v43 }
  0x3d   :  { %156 = vadd.xlane.f32.xlu1 %v1270_v44 }
  0x40   :  { %186 = vadd.xlane.f32.xlu0 %v1301_v46 }
  0x41   :  { %188 = vadd.xlane.f32.xlu1 %v1302_v47 }
  0x8d   :  { %v127_v50 = vpop.xlane.xlu0 %126 }
  0x8e   :  { %v159_v51 = vpop.xlane.xlu1 %158  ;;  %v190_v52 = vmul.f32 0.03125, %v127_v50 }
  0x8f   :  { %v206_v53 = vmul.f32 0.03125, %v159_v51 }
  0x90   :  { %v1783_v54 = vsub.f32 %v1241_v2, %v190_v52 }
  0x91   :  { %v1787_v55 = vsub.f32 %v1273_v3, %v206_v53  ;;  %v129_v56 = vpop.xlane.xlu0 %128 }
  0x92   :  { %v161_v57 = vpop.xlane.xlu1 %160  ;;  %v191_v60 = vmul.f32 0.03125, %v129_v56  ;;  %v254_v62 = vmul.f32 %v1783_v54, %v1783_v54 }
  0x93   :  { %v207_v61 = vmul.f32 0.03125, %v161_v57  ;;  %v270_v63 = vmul.f32 %v1787_v55, %v1787_v55 }
  0x94   :  { %v1797_v2 = vsub.f32 %v1242_v4, %v191_v60  ;;  %v286_v48 = vmul.f32 %v1789_v59, %v254_v62 }
  0x95   :  { %v1801_v3 = vsub.f32 %v1274_v5, %v207_v61  ;;  %v131_v49 = vpop.xlane.xlu0 %130  ;;  %v302_v51 = vmul.f32 %v1789_v59, %v270_v63 }
  0x96   :  { %v133_v50 = vpop.xlane.xlu1 %132  ;;  %v192_v52 = vmul.f32 0.03125, %v131_v49  ;;  %318 = vadd.xlane.f32.xlu0 %v286_v48  ;;  %v255_v56 = vmul.f32 %v1797_v2, %v1797_v2 }
  0x97   :  { %v193_v53 = vmul.f32 0.03125, %v133_v50  ;;  %v271_v0 = vmul.f32 %v1801_v3, %v1801_v3 }
  0x98   :  { %v1811_v1 = vsub.f32 %v1245_v7, %v192_v52  ;;  %v287_v5 = vmul.f32 %v1789_v59, %v255_v56 }
  0x99   :  { %v1815_v4 = vsub.f32 %v1246_v8, %v193_v53  ;;  %v163_v57 = vpop.xlane.xlu0 %162  ;;  %v303_v60 = vmul.f32 %v1789_v59, %v271_v0 }
  0x9a   :  { %v165_v58 = vpop.xlane.xlu1 %164  ;;  %v208_v61 = vmul.f32 0.03125, %v163_v57  ;;  %350 = vadd.xlane.f32.xlu0 %v302_v51  ;;  %320 = vadd.xlane.f32.xlu1 %v287_v5  ;;  %v256_v63 = vmul.f32 %v1811_v1, %v1811_v1 }
  0x9b   :  { %v209_v62 = vmul.f32 0.03125, %v165_v58  ;;  %v257_v7 = vmul.f32 %v1815_v4, %v1815_v4 }
  0x9c   :  { %v1825_v6 = vsub.f32 %v1277_v10, %v208_v61  ;;  %v288_v48 = vmul.f32 %v1789_v59, %v256_v63 }
  0x9d   :  { %v1829_v8 = vsub.f32 %v1278_v11, %v209_v62  ;;  %v135_v49 = vpop.xlane.xlu0 %134  ;;  %v289_v51 = vmul.f32 %v1789_v59, %v257_v7 }
  0x9e   :  { %v137_v50 = vpop.xlane.xlu1 %136  ;;  %v194_v52 = vmul.f32 0.03125, %v135_v49  ;;  %352 = vadd.xlane.f32.xlu1 %v303_v60  ;;  %322 = vadd.xlane.f32.xlu0 %v288_v48  ;;  %v272_v56 = vmul.f32 %v1825_v6, %v1825_v6 }
  0x9f   :  { %v195_v53 = vmul.f32 0.03125, %v137_v50  ;;  %v273_v10 = vmul.f32 %v1829_v8, %v1829_v8  ;;  %v1502_v50 = vld [vmem:[%s2223_s1 + $0x38] sm:$0xff]  }
  0xa0   :  { %v1839_v9 = vsub.f32 %v1249_v13, %v194_v52  ;;  %v304_v0 = vmul.f32 %v1789_v59, %v272_v56  ;;  %1437 = vmatprep.subr.bf16.mxu0 %v1502_v50  ;;  %1485 = vmatprep.subr.bf16.mxu1 %v1502_v50 }
  0xa1   :  { %v1843_v11 = vsub.f32 %v1250_v14, %v195_v53  ;;  %v167_v5 = vpop.xlane.xlu0 %166  ;;  %v305_v58 = vmul.f32 %v1789_v59, %v273_v10  ;;  %1438 = vmatpush3.bf16.msra.mxu0 %v1502_v50  ;;  %1493 = vmatpush3.bf16.msra.mxu1 %v1502_v50 }
  0xa2   :  { %v169_v57 = vpop.xlane.xlu1 %168  ;;  %v210_v60 = vmul.f32 0.03125, %v167_v5  ;;  %324 = vadd.xlane.f32.xlu1 %v289_v51  ;;  %354 = vadd.xlane.f32.xlu0 %v304_v0  ;;  %v258_v62 = vmul.f32 %v1839_v9, %v1839_v9 }
  0xa3   :  { %v211_v61 = vmul.f32 0.03125, %v169_v57  ;;  %v259_v13 = vmul.f32 %v1843_v11, %v1843_v11  ;;  %v1503_v57 = vld [vmem:[%s2223_s1 + $0x30] sm:$0xff]  }
  0xa4   :  { %v1853_v12 = vsub.f32 %v1281_v16, %v210_v60  ;;  %v290_v63 = vmul.f32 %v1789_v59, %v258_v62  ;;  %1439 = vmatprep.subr.bf16.mxu0 %v1503_v57  ;;  %1486 = vmatprep.subr.bf16.mxu1 %v1503_v57 }
  0xa5   :  { %v1857_v14 = vsub.f32 %v1282_v17, %v211_v61  ;;  %v139_v7 = vpop.xlane.xlu0 %138  ;;  %v291_v49 = vmul.f32 %v1789_v59, %v259_v13  ;;  %1440 = vmatpush3.bf16.msra.mxu0 %v1503_v57  ;;  %1494 = vmatpush3.bf16.msra.mxu1 %v1503_v57 }
  0xa6   :  { %v141_v48 = vpop.xlane.xlu1 %140  ;;  %v196_v51 = vmul.f32 0.03125, %v139_v7  ;;  %356 = vadd.xlane.f32.xlu1 %v305_v58  ;;  %326 = vadd.xlane.f32.xlu0 %v290_v63  ;;  %v274_v16 = vmul.f32 %v1853_v12, %v1853_v12 }
  0xa7   :  { %v197_v52 = vmul.f32 0.03125, %v141_v48  ;;  %v275_v15 = vmul.f32 %v1857_v14, %v1857_v14  ;;  %v1504_v48 = vld [vmem:[%s2223_s1 + $0x28] sm:$0xff]  }
  0xa8   :  { %v1870_v17 = vsub.f32 %v1253_v19, %v196_v51  ;;  %v306_v56 = vmul.f32 %v1789_v59, %v274_v16  ;;  %1441 = vmatprep.subr.bf16.mxu0 %v1504_v48  ;;  %1487 = vmatprep.subr.bf16.mxu1 %v1504_v48 }
  0xa9   :  { %v1874_v53 = vsub.f32 %v1254_v20, %v197_v52  ;;  %v171_v10 = vpop.xlane.xlu0 %170  ;;  %v307_v5 = vmul.f32 %v1789_v59, %v275_v15  ;;  %1442 = vmatpush3.bf16.msra.mxu0 %v1504_v48  ;;  %1495 = vmatpush3.bf16.msra.mxu1 %v1504_v48 }
  0xaa   :  { %v173_v0 = vpop.xlane.xlu1 %172  ;;  %v212_v58 = vmul.f32 0.03125, %v171_v10  ;;  %328 = vadd.xlane.f32.xlu1 %v291_v49  ;;  %358 = vadd.xlane.f32.xlu0 %v306_v56  ;;  %v260_v18 = vmul.f32 %v1870_v17, %v1870_v17  ;;  %v1505_v10 = vld [vmem:[%s2223_s1 + $0x20] sm:$0xff]  }
  0xab   :  { %v213_v19 = vmul.f32 0.03125, %v173_v0  ;;  %v261_v20 = vmul.f32 %v1874_v53, %v1874_v53  ;;  %1443 = vmatprep.subr.bf16.mxu0 %v1505_v10  ;;  %1488 = vmatprep.subr.bf16.mxu1 %v1505_v10 }
  0xac   :  { %v1887_v60 = vsub.f32 %v1285_v22, %v212_v58  ;;  %v292_v62 = vmul.f32 %v1789_v59, %v260_v18 }
  0xad   :  { %v1891_v61 = vsub.f32 %v1286_v23, %v213_v19  ;;  %v143_v13 = vpop.xlane.xlu0 %142  ;;  %v293_v7 = vmul.f32 %v1789_v59, %v261_v20  ;;  %1444 = vmatpush3.bf16.msra.mxu0 %v1505_v10  ;;  %1496 = vmatpush3.bf16.msra.mxu1 %v1505_v10 }
  0xae   :  { %v145_v63 = vpop.xlane.xlu1 %144  ;;  %v198_v49 = vmul.f32 0.03125, %v143_v13  ;;  %360 = vadd.xlane.f32.xlu1 %v307_v5  ;;  %330 = vadd.xlane.f32.xlu0 %v292_v62  ;;  %v276_v21 = vmul.f32 %v1887_v60, %v1887_v60  ;;  %v1506_v62 = vld [vmem:[%s2223_s1 + $0x18] sm:$0xff]  }
  0xaf   :  { %v199_v22 = vmul.f32 0.03125, %v145_v63  ;;  %v277_v23 = vmul.f32 %v1891_v61, %v1891_v61  ;;  %1445 = vmatprep.subr.bf16.mxu0 %v1506_v62  ;;  %1489 = vmatprep.subr.bf16.mxu1 %v1506_v62 }
  0xb0   :  { %v1904_v50 = vsub.f32 %v1257_v25, %v198_v49  ;;  %v308_v52 = vmul.f32 %v1789_v59, %v276_v21 }
  0xb1   :  { %v1908_v51 = vsub.f32 %v1258_v26, %v199_v22  ;;  %v175_v16 = vpop.xlane.xlu0 %174  ;;  %v309_v56 = vmul.f32 %v1789_v59, %v277_v23  ;;  %1446 = vmatpush3.bf16.msra.mxu0 %v1506_v62  ;;  %v1507_v23 = vld [vmem:[%s2223_s1 + $0x10] sm:$0xff]   ;;  %1497 = vmatpush3.bf16.msra.mxu1 %v1506_v62 }
  0xb2   :  { %v177_v15 = vpop.xlane.xlu1 %176  ;;  %v214_v0 = vmul.f32 0.03125, %v175_v16  ;;  %332 = vadd.xlane.f32.xlu1 %v293_v7  ;;  %362 = vadd.xlane.f32.xlu0 %v308_v52  ;;  %v262_v24 = vmul.f32 %v1904_v50, %v1904_v50 }
  0xb3   :  { %v215_v25 = vmul.f32 0.03125, %v177_v15  ;;  %v263_v26 = vmul.f32 %v1908_v51, %v1908_v51  ;;  %1447 = vmatprep.subr.bf16.mxu0 %v1507_v23  ;;  %1490 = vmatprep.subr.bf16.mxu1 %v1507_v23 }
  0xb4   :  { %v1921_v5 = vsub.f32 %v1289_v28, %v214_v0  ;;  %v294_v58 = vmul.f32 %v1789_v59, %v262_v24  ;;  %v1508_v24 = vld [vmem:[%s2223_s1 + $0x8] sm:$0xff]  }
  0xb5   :  { %v1925_v57 = vsub.f32 %v1290_v29, %v215_v25  ;;  %v147_v19 = vpop.xlane.xlu0 %146  ;;  %v295_v20 = vmul.f32 %v1789_v59, %v263_v26  ;;  %1448 = vmatpush3.bf16.msra.mxu0 %v1507_v23  ;;  %1498 = vmatpush3.bf16.msra.mxu1 %v1507_v23 }
  0xb6   :  { %v149_v18 = vpop.xlane.xlu1 %148  ;;  %v200_v13 = vmul.f32 0.03125, %v147_v19  ;;  %364 = vadd.xlane.f32.xlu1 %v309_v56  ;;  %334 = vadd.xlane.f32.xlu0 %v294_v58  ;;  %v278_v27 = vmul.f32 %v1921_v5, %v1921_v5 }
  0xb7   :  { %v201_v28 = vmul.f32 0.03125, %v149_v18  ;;  %v279_v29 = vmul.f32 %v1925_v57, %v1925_v57  ;;  %1449 = vmatprep.subr.bf16.mxu0 %v1508_v24  ;;  %1491 = vmatprep.subr.bf16.mxu1 %v1508_v24 }
  0xb8   :  { %v1938_v63 = vsub.f32 %v1261_v31, %v200_v13  ;;  %v310_v48 = vmul.f32 %v1789_v59, %v278_v27 }
  0xb9   :  { %v1942_v7 = vsub.f32 %v1262_v32, %v201_v28  ;;  %v179_v49 = vpop.xlane.xlu0 %178  ;;  %v311_v21 = vmul.f32 %v1789_v59, %v279_v29  ;;  %1450 = vmatpush3.bf16.msra.mxu0 %v1508_v24  ;;  %v1509_v28 = vld [vmem:[%s2223_s1] sm:$0xff]   ;;  %1499 = vmatpush3.bf16.msra.mxu1 %v1508_v24 }
  0xba   :  { %v181_v22 = vpop.xlane.xlu1 %180  ;;  %v216_v52 = vmul.f32 0.03125, %v179_v49  ;;  %336 = vadd.xlane.f32.xlu1 %v295_v20  ;;  %366 = vadd.xlane.f32.xlu0 %v310_v48  ;;  %v264_v30 = vmul.f32 %v1938_v63, %v1938_v63 }
  0xbb   :  { %v217_v31 = vmul.f32 0.03125, %v181_v22  ;;  %v265_v32 = vmul.f32 %v1942_v7, %v1942_v7  ;;  %1451 = vmatprep.subr.bf16.mxu0 %v1509_v28  ;;  %1492 = vmatprep.subr.bf16.mxu1 %v1509_v28 }
  0xbc   :  { %v1955_v16 = vsub.f32 %v1293_v34, %v216_v52  ;;  %v296_v56 = vmul.f32 %v1789_v59, %v264_v30 }
  0xbd   :  { %v1959_v15 = vsub.f32 %v1294_v35, %v217_v31  ;;  %v151_v10 = vpop.xlane.xlu0 %150  ;;  %v297_v25 = vmul.f32 %v1789_v59, %v265_v32  ;;  %1452 = vmatpush3.bf16.msra.mxu0 %v1509_v28  ;;  %1500 = vmatpush3.bf16.msra.mxu1 %v1509_v28 }
  0xbe   :  { %v153_v0 = vpop.xlane.xlu1 %152  ;;  %v202_v26 = vmul.f32 0.03125, %v151_v10  ;;  %368 = vadd.xlane.f32.xlu1 %v311_v21  ;;  %338 = vadd.xlane.f32.xlu0 %v296_v56  ;;  %v280_v33 = vmul.f32 %v1955_v16, %v1955_v16 }
  0xbf   :  { %v203_v34 = vmul.f32 0.03125, %v153_v0  ;;  %v281_v35 = vmul.f32 %v1959_v15, %v1959_v15 }
  0xc0   :  { %v1972_v58 = vsub.f32 %v1265_v37, %v202_v26  ;;  %v312_v18 = vmul.f32 %v1789_v59, %v280_v33 }
  0xc1   :  { %v1976_v19 = vsub.f32 %v1266_v38, %v203_v34  ;;  %v183_v20 = vpop.xlane.xlu0 %182  ;;  %v313_v13 = vmul.f32 %v1789_v59, %v281_v35 }
  0xc2   :  { %v185_v62 = vpop.xlane.xlu1 %184  ;;  %v218_v27 = vmul.f32 0.03125, %v183_v20  ;;  %340 = vadd.xlane.f32.xlu1 %v297_v25  ;;  %370 = vadd.xlane.f32.xlu0 %v312_v18  ;;  %v266_v36 = vmul.f32 %v1972_v58, %v1972_v58 }
  0xc3   :  { %v219_v37 = vmul.f32 0.03125, %v185_v62  ;;  %v267_v38 = vmul.f32 %v1976_v19, %v1976_v19 }
  0xc4   :  { %v1989_v29 = vsub.f32 %v1297_v40, %v218_v27  ;;  %v298_v49 = vmul.f32 %v1789_v59, %v266_v36 }
  0xc5   :  { %v1993_v48 = vsub.f32 %v1298_v41, %v219_v37  ;;  %v155_v22 = vpop.xlane.xlu0 %154  ;;  %v299_v23 = vmul.f32 %v1789_v59, %v267_v38 }
  0xc6   :  { %v157_v21 = vpop.xlane.xlu1 %156  ;;  %v204_v52 = vmul.f32 0.03125, %v155_v22  ;;  %372 = vadd.xlane.f32.xlu1 %v313_v13  ;;  %342 = vadd.xlane.f32.xlu0 %v298_v49  ;;  %v282_v40 = vmul.f32 %v1989_v29, %v1989_v29 }
  0xc7   :  { %v205_v31 = vmul.f32 0.03125, %v157_v21  ;;  %v283_v39 = vmul.f32 %v1993_v48, %v1993_v48 }
  0xc8   :  { %v2003_v41 = vsub.f32 %v1269_v43, %v204_v52  ;;  %v314_v32 = vmul.f32 %v1789_v59, %v282_v40 }
  0xc9   :  { %v2007_v30 = vsub.f32 %v1270_v44, %v205_v31  ;;  %v187_v56 = vpop.xlane.xlu0 %186  ;;  %v315_v0 = vmul.f32 %v1789_v59, %v283_v39 }
  0xca   :  { %v189_v10 = vpop.xlane.xlu1 %188  ;;  %v220_v25 = vmul.f32 0.03125, %v187_v56  ;;  %344 = vadd.xlane.f32.xlu1 %v299_v23  ;;  %374 = vadd.xlane.f32.xlu0 %v314_v32  ;;  %v268_v26 = vmul.f32 %v2003_v41, %v2003_v41 }
  0xcb   :  { %v221_v24 = vmul.f32 0.03125, %v189_v10  ;;  %v269_v43 = vmul.f32 %v2007_v30, %v2007_v30 }
  0xcc   :  { %v2017_v42 = vsub.f32 %v1301_v46, %v220_v25  ;;  %v300_v34 = vmul.f32 %v1789_v59, %v268_v26 }
  0xcd   :  { %v2021_v44 = vsub.f32 %v1302_v47, %v221_v24  ;;  %v301_v33 = vmul.f32 %v1789_v59, %v269_v43 }
  0xce   :  { %376 = vadd.xlane.f32.xlu1 %v315_v0  ;;  %346 = vadd.xlane.f32.xlu0 %v300_v34  ;;  %v284_v35 = vmul.f32 %v2017_v42, %v2017_v42 }
  0xcf   :  { %v285_v18 = vmul.f32 %v2021_v44, %v2021_v44 }
  0xd0   :  { %v316_v20 = vmul.f32 %v1789_v59, %v284_v35 }
  0xd1   :  { %v317_v45 = vmul.f32 %v1789_v59, %v285_v18  ;;  %v2035_v18 = vld [vmem:[%s2224_s2] ss:$0 sm:$0xff] }
  0xd2   :  { %348 = vadd.xlane.f32.xlu1 %v301_v33  ;;  %378 = vadd.xlane.f32.xlu0 %v316_v20 }
  0xd6   :  { %380 = vadd.xlane.f32.xlu1 %v317_v45 }
 0x11f   :  { %v319_v46 = vpop.xlane.xlu0 %318 }
 0x120   :  { %v382_v47 = vmul.f32 0.03125, %v319_v46 }
 0x122   :  { %v414_v62 = vadd.f32 1e-05, %v382_v47 }
 0x123   :  { %v321_v13 = vpop.xlane.xlu1 %320  ;;  %v351_v28 = vpop.xlane.xlu0 %350 }
 0x124   :  { %1510 = vrsqrt.f32 %v414_v62  ;;  %v383_v27 = vmul.f32 0.03125, %v321_v13  ;;  %v398_v37 = vmul.f32 0.03125, %v351_v28 }
 0x126   :  { %v415_v36 = vadd.f32 1e-05, %v383_v27  ;;  %v430_v38 = vadd.f32 1e-05, %v398_v37 }
 0x127   :  { %v353_v49 = vpop.xlane.xlu1 %352  ;;  %v323_v22 = vpop.xlane.xlu0 %322 }
 0x128   :  { %1512 = vrsqrt.f32 %v415_v36  ;;  %v399_v21 = vmul.f32 0.03125, %v353_v49  ;;  %v384_v23 = vmul.f32 0.03125, %v323_v22 }
 0x129   :  { %1514 = vrsqrt.f32 %v430_v38 }
 0x12a   :  { %v431_v52 = vadd.f32 1e-05, %v399_v21  ;;  %v416_v31 = vadd.f32 1e-05, %v384_v23 }
 0x12b   :  { %v325_v59 = vpop.xlane.xlu1 %324  ;;  %v355_v40 = vpop.xlane.xlu0 %354 }
 0x12c   :  { %1516 = vrsqrt.f32 %v431_v52  ;;  %v385_v39 = vmul.f32 0.03125, %v325_v59  ;;  %v400_v32 = vmul.f32 0.03125, %v355_v40 }
 0x12d   :  { %1518 = vrsqrt.f32 %v416_v31 }
 0x12e   :  { %v417_v56 = vadd.f32 1e-05, %v385_v39  ;;  %v432_v10 = vadd.f32 1e-05, %v400_v32 }
 0x12f   :  { %v357_v0 = vpop.xlane.xlu1 %356  ;;  %v327_v25 = vpop.xlane.xlu0 %326 }
 0x130   :  { %1520 = vrsqrt.f32 %v417_v56  ;;  %v401_v24 = vmul.f32 0.03125, %v357_v0  ;;  %v386_v26 = vmul.f32 0.03125, %v327_v25 }
 0x131   :  { %v1511_v43 = vpop.eup %1510  ;;  %1522 = vrsqrt.f32 %v432_v10 }
 0x132   :  { %v433_v34 = vadd.f32 1e-05, %v401_v24  ;;  %v418_v33 = vadd.f32 1e-05, %v386_v26  ;;  %v478_v35 = vmul.f32 %v1511_v43, %v1783_v54  ;;  %v2042_v54 = vld [vmem:[%s2225_s3] ss:$0 sm:$0xff] }
 0x133   :  { %v329_v20 = vpop.xlane.xlu1 %328  ;;  %v359_v45 = vpop.xlane.xlu0 %358 }
 0x134   :  { %1524 = vrsqrt.f32 %v433_v34  ;;  %v387_v46 = vmul.f32 0.03125, %v329_v20  ;;  %v402_v47 = vmul.f32 0.03125, %v359_v45  ;;  %v517_v13 = vmul.f32 %v2035_v18, %v478_v35 }
 0x135   :  { %v1513_v62 = vpop.eup %1512  ;;  %1526 = vrsqrt.f32 %v418_v33 }
 0x136   :  { %v1515_v28 = vpop.eup %1514  ;;  %v419_v27 = vadd.f32 1e-05, %v387_v46  ;;  %v434_v37 = vadd.f32 1e-05, %v402_v47  ;;  %v479_v36 = vmul.f32 %v1513_v62, %v1797_v2  ;;  %v556_v59 = vadd.f32 %v2042_v54, %v517_v13 }
 0x137   :  { %v361_v38 = vpop.xlane.xlu1 %360  ;;  %v331_v49 = vpop.xlane.xlu0 %330  ;;  %v494_v22 = vmul.f32 %v1515_v28, %v1787_v55 }
 0x138   :  { %1528 = vrsqrt.f32 %v419_v27  ;;  %v403_v21 = vmul.f32 0.03125, %v361_v38  ;;  %v388_v23 = vmul.f32 0.03125, %v331_v49  ;;  %v518_v52 = vmul.f32 %v2035_v18, %v479_v36 }
 0x139   :  { %v1517_v31 = vpop.eup %1516  ;;  %1530 = vrsqrt.f32 %v434_v37  ;;  %v533_v55 = vmul.f32 %v2035_v18, %v494_v22 }
 0x13a   :  { %v1519_v40 = vpop.eup %1518  ;;  %v435_v2 = vadd.f32 1e-05, %v403_v21  ;;  %v420_v39 = vadd.f32 1e-05, %v388_v23  ;;  %v557_v32 = vadd.f32 %v2042_v54, %v518_v52  ;;  %v495_v56 = vmul.f32 %v1517_v31, %v1801_v3 }
 0x13b   :  { %v333_v10 = vpop.xlane.xlu1 %332  ;;  %v363_v0 = vpop.xlane.xlu0 %362  ;;  %v480_v25 = vmul.f32 %v1519_v40, %v1811_v1  ;;  %v572_v1 = vadd.f32 %v2042_v54, %v533_v55 }
 0x13c   :  { %1532 = vrsqrt.f32 %v435_v2  ;;  %v389_v24 = vmul.f32 0.03125, %v333_v10  ;;  %v404_v26 = vmul.f32 0.03125, %v363_v0  ;;  %v588_v43 = vpack.c.bf16 %v557_v32, %v556_v59 }
 0x13d   :  { %v1521_v34 = vpop.eup %1520  ;;  %1534 = vrsqrt.f32 %v420_v39  ;;  %v534_v33 = vmul.f32 %v2035_v18, %v495_v56  ;;  %v519_v35 = vmul.f32 %v2035_v18, %v480_v25 }
 0x13e   :  { %v1523_v20 = vpop.eup %1522  ;;  %v421_v45 = vadd.f32 1e-05, %v389_v24  ;;  %v436_v46 = vadd.f32 1e-05, %v404_v26  ;;  %1453 = vmatprep.mubr.bf16.mxu0 %v588_v43  ;;  %v481_v3 = vmul.f32 %v1521_v34, %v1815_v4 }
 0x13f   :  { %v365_v47 = vpop.xlane.xlu1 %364  ;;  %v335_v62 = vpop.xlane.xlu0 %334  ;;  %v573_v13 = vadd.f32 %v2042_v54, %v534_v33  ;;  %v496_v28 = vmul.f32 %v1523_v20, %v1825_v6  ;;  %v558_v22 = vadd.f32 %v2042_v54, %v519_v35 }
 0x140   :  { %1536 = vrsqrt.f32 %v421_v45  ;;  %v405_v27 = vmul.f32 0.03125, %v365_v47  ;;  %v390_v37 = vmul.f32 0.03125, %v335_v62  ;;  %v520_v36 = vmul.f32 %v2035_v18, %v481_v3 }
 0x141   :  { %v1525_v38 = vpop.eup %1524  ;;  %1538 = vrsqrt.f32 %v436_v46  ;;  %v596_v49 = vpack.c.bf16 %v573_v13, %v572_v1  ;;  %v535_v40 = vmul.f32 %v2035_v18, %v496_v28 }
 0x142   :  { %v1527_v21 = vpop.eup %1526  ;;  %v437_v4 = vadd.f32 1e-05, %v405_v27  ;;  %v422_v23 = vadd.f32 1e-05, %v390_v37  ;;  %v559_v52 = vadd.f32 %v2042_v54, %v520_v36  ;;  %v497_v31 = vmul.f32 %v1525_v38, %v1829_v8 }
 0x143   :  { %1469 = vmatprep.mubr.bf16.mxu1 %v596_v49  ;;  %v337_v59 = vpop.xlane.xlu1 %336  ;;  %v367_v6 = vpop.xlane.xlu0 %366  ;;  %v482_v2 = vmul.f32 %v1527_v21, %v1839_v9  ;;  %v574_v9 = vadd.f32 %v2042_v54, %v535_v40 }
 0x144   :  { %1540 = vrsqrt.f32 %v437_v4  ;;  %v391_v39 = vmul.f32 0.03125, %v337_v59  ;;  %v406_v32 = vmul.f32 0.03125, %v367_v6  ;;  %v589_v56 = vpack.c.bf16 %v559_v52, %v558_v22 }
 0x145   :  { %v1529_v10 = vpop.eup %1528  ;;  %1542 = vrsqrt.f32 %v422_v23  ;;  %v536_v0 = vmul.f32 %v2035_v18, %v497_v31  ;;  %v521_v55 = vmul.f32 %v2035_v18, %v482_v2 }
 0x146   :  { %v1531_v25 = vpop.eup %1530  ;;  %v423_v24 = vadd.f32 1e-05, %v391_v39  ;;  %v438_v8 = vadd.f32 1e-05, %v406_v32  ;;  %1454 = vmatmul.mubr.bf16.vlgmr.msra.gmra.mxu0 %v589_v56  ;;  %v483_v26 = vmul.f32 %v1529_v10, %v1843_v11 }
 0x147   :  { %v369_v43 = vpop.xlane.xlu1 %368  ;;  %v339_v34 = vpop.xlane.xlu0 %338  ;;  %v575_v33 = vadd.f32 %v2042_v54, %v536_v0  ;;  %v498_v35 = vmul.f32 %v1531_v25, %v1853_v12  ;;  %v560_v62 = vadd.f32 %v2042_v54, %v521_v55 }
 0x148   :  { %1544 = vrsqrt.f32 %v423_v24  ;;  %v407_v20 = vmul.f32 0.03125, %v369_v43  ;;  %v392_v45 = vmul.f32 0.03125, %v339_v34  ;;  %v522_v46 = vmul.f32 %v2035_v18, %v483_v26 }
 0x149   :  { %v1533_v3 = vpop.eup %1532  ;;  %1546 = vrsqrt.f32 %v438_v8  ;;  %v597_v47 = vpack.c.bf16 %v575_v33, %v574_v9  ;;  %v537_v36 = vmul.f32 %v2035_v18, %v498_v35 }
 0x14a   :  { %v1535_v1 = vpop.eup %1534  ;;  %v439_v11 = vadd.f32 1e-05, %v407_v20  ;;  %v424_v13 = vadd.f32 1e-05, %v392_v45  ;;  %v561_v28 = vadd.f32 %v2042_v54, %v522_v46  ;;  %v499_v27 = vmul.f32 %v1533_v3, %v1857_v14 }
 0x14b   :  { %1470 = vmatmul.mubr.bf16.vlgmr.msra.gmra.mxu1 %v597_v47  ;;  %v341_v37 = vpop.xlane.xlu1 %340  ;;  %v371_v12 = vpop.xlane.xlu0 %370  ;;  %v484_v38 = vmul.f32 %v1535_v1, %v1870_v17  ;;  %v576_v17 = vadd.f32 %v2042_v54, %v537_v36 }
 0x14c   :  { %1548 = vrsqrt.f32 %v439_v11  ;;  %v393_v49 = vmul.f32 0.03125, %v341_v37  ;;  %v408_v22 = vmul.f32 0.03125, %v371_v12  ;;  %v590_v21 = vpack.c.bf16 %v561_v28, %v560_v62 }
 0x14d   :  { %v1537_v4 = vpop.eup %1536  ;;  %1550 = vrsqrt.f32 %v424_v13  ;;  %v538_v23 = vmul.f32 %v2035_v18, %v499_v27  ;;  %v523_v52 = vmul.f32 %v2035_v18, %v484_v38 }
 0x14e   :  { %v1539_v31 = vpop.eup %1538  ;;  %v425_v59 = vadd.f32 1e-05, %v393_v49  ;;  %v440_v14 = vadd.f32 1e-05, %v408_v22  ;;  %1457 = vmatprep.mubr.bf16.mxu0 %v590_v21  ;;  %v485_v6 = vmul.f32 %v1537_v4, %v1874_v53 }
 0x14f   :  { %v373_v40 = vpop.xlane.xlu1 %372  ;;  %v343_v2 = vpop.xlane.xlu0 %342  ;;  %v577_v39 = vadd.f32 %v2042_v54, %v538_v23  ;;  %v500_v32 = vmul.f32 %v1539_v31, %v1887_v60  ;;  %v562_v24 = vadd.f32 %v2042_v54, %v523_v52 }
 0x150   :  { %1552 = vrsqrt.f32 %v425_v59  ;;  %v409_v56 = vmul.f32 0.03125, %v373_v40  ;;  %v394_v10 = vmul.f32 0.03125, %v343_v2  ;;  %v524_v0 = vmul.f32 %v2035_v18, %v485_v6 }
 0x151   :  { %v1541_v55 = vpop.eup %1540  ;;  %1554 = vrsqrt.f32 %v440_v14  ;;  %v598_v25 = vpack.c.bf16 %v577_v39, %v576_v17  ;;  %v539_v33 = vmul.f32 %v2035_v18, %v500_v32 }
 0x152   :  { %v1543_v8 = vpop.eup %1542  ;;  %v441_v53 = vadd.f32 1e-05, %v409_v56  ;;  %v426_v26 = vadd.f32 1e-05, %v394_v10  ;;  %v563_v43 = vadd.f32 %v2042_v54, %v524_v0  ;;  %v501_v34 = vmul.f32 %v1541_v55, %v1891_v61 }
 0x153   :  { %1473 = vmatprep.mubr.bf16.mxu1 %v598_v25  ;;  %v345_v9 = vpop.xlane.xlu1 %344  ;;  %v375_v60 = vpop.xlane.xlu0 %374  ;;  %v486_v35 = vmul.f32 %v1543_v8, %v1904_v50  ;;  %v578_v50 = vadd.f32 %v2042_v54, %v539_v33 }
 0x154   :  { %1556 = vrsqrt.f32 %v441_v53  ;;  %v395_v20 = vmul.f32 0.03125, %v345_v9  ;;  %v410_v45 = vmul.f32 0.03125, %v375_v60  ;;  %v591_v46 = vpack.c.bf16 %v563_v43, %v562_v24 }
 0x155   :  { %v1545_v3 = vpop.eup %1544  ;;  %1558 = vrsqrt.f32 %v426_v26  ;;  %v540_v47 = vmul.f32 %v2035_v18, %v501_v34  ;;  %v525_v62 = vmul.f32 %v2035_v18, %v486_v35 }
 0x156   :  { %v1547_v1 = vpop.eup %1546  ;;  %v427_v11 = vadd.f32 1e-05, %v395_v20  ;;  %v442_v61 = vadd.f32 1e-05, %v410_v45  ;;  %1458 = vmatmul.mubr.bf16.gmra.mxu0 %v591_v46  ;;  %v487_v13 = vmul.f32 %v1545_v3, %v1908_v51 }
 0x157   :  { %v377_v28 = vpop.xlane.xlu1 %376  ;;  %v347_v27 = vpop.xlane.xlu0 %346  ;;  %v579_v37 = vadd.f32 %v2042_v54, %v540_v47  ;;  %v502_v12 = vmul.f32 %v1547_v1, %v1921_v5  ;;  %v564_v4 = vadd.f32 %v2042_v54, %v525_v62 }
 0x158   :  { %1560 = vrsqrt.f32 %v427_v11  ;;  %v411_v36 = vmul.f32 0.03125, %v377_v28  ;;  %v396_v38 = vmul.f32 0.03125, %v347_v27  ;;  %v526_v49 = vmul.f32 %v2035_v18, %v487_v13 }
 0x159   :  { %v1549_v22 = vpop.eup %1548  ;;  %1562 = vrsqrt.f32 %v442_v61  ;;  %v599_v21 = vpack.c.bf16 %v579_v37, %v578_v50  ;;  %v541_v6 = vmul.f32 %v2035_v18, %v502_v12 }
 0x15a   :  { %v1551_v23 = vpop.eup %1550  ;;  %v443_v51 = vadd.f32 1e-05, %v411_v36  ;;  %v428_v52 = vadd.f32 1e-05, %v396_v38  ;;  %v565_v31 = vadd.f32 %v2042_v54, %v526_v49  ;;  %v503_v59 = vmul.f32 %v1549_v22, %v1925_v57 }
 0x15b   :  { %1474 = vmatmul.mubr.bf16.gmra.mxu1 %v599_v21  ;;  %v349_v14 = vpop.xlane.xlu1 %348  ;;  %v379_v5 = vpop.xlane.xlu0 %378  ;;  %v488_v40 = vmul.f32 %v1551_v23, %v1938_v63  ;;  %v580_v8 = vadd.f32 %v2042_v54, %v541_v6 }
 0x15c   :  { %1564 = vrsqrt.f32 %v443_v51  ;;  %v397_v2 = vmul.f32 0.03125, %v349_v14  ;;  %v412_v17 = vmul.f32 0.03125, %v379_v5  ;;  %v592_v39 = vpack.c.bf16 %v565_v31, %v564_v4 }
 0x15d   :  { %v1553_v32 = vpop.eup %1552  ;;  %1566 = vrsqrt.f32 %v428_v52  ;;  %v542_v56 = vmul.f32 %v2035_v18, %v503_v59  ;;  %v527_v10 = vmul.f32 %v2035_v18, %v488_v40 }
 0x15e   :  { %v1555_v0 = vpop.eup %1554  ;;  %v429_v55 = vadd.f32 1e-05, %v397_v2  ;;  %v444_v57 = vadd.f32 1e-05, %v412_v17  ;;  %1461 = vmatprep.mubr.bf16.mxu0 %v592_v39  ;;  %v489_v25 = vmul.f32 %v1553_v32, %v1942_v7 }
 0x15f   :  { %v381_v24 = vpop.xlane.xlu1 %380  ;;  %v581_v63 = vadd.f32 %v2042_v54, %v542_v56  ;;  %v504_v53 = vmul.f32 %v1555_v0, %v1955_v16  ;;  %v566_v60 = vadd.f32 %v2042_v54, %v527_v10  ;;  %v2140_v56 = vld [vmem:[%s2226_s4] ss:$0 sm:$0xff] }
 0x160   :  { %1568 = vrsqrt.f32 %v429_v55  ;;  %v413_v26 = vmul.f32 0.03125, %v381_v24  ;;  %v528_v43 = vmul.f32 %v2035_v18, %v489_v25 }
 0x161   :  { %v1557_v34 = vpop.eup %1556  ;;  %1570 = vrsqrt.f32 %v444_v57  ;;  %v600_v9 = vpack.c.bf16 %v581_v63, %v580_v8  ;;  %v543_v45 = vmul.f32 %v2035_v18, %v504_v53 }
 0x162   :  { %v1559_v33 = vpop.eup %1558  ;;  %v445_v35 = vadd.f32 1e-05, %v413_v26  ;;  %v567_v7 = vadd.f32 %v2042_v54, %v528_v43  ;;  %v505_v20 = vmul.f32 %v1557_v34, %v1959_v15 }
 0x163   :  { %1477 = vmatprep.mubr.bf16.mxu1 %v600_v9  ;;  %v490_v16 = vmul.f32 %v1559_v33, %v1972_v58  ;;  %v582_v1 = vadd.f32 %v2042_v54, %v543_v45 }
 0x164   :  { %1572 = vrsqrt.f32 %v445_v35  ;;  %v593_v46 = vpack.c.bf16 %v567_v7, %v566_v60  ;;  %v544_v3 = vmul.f32 %v2035_v18, %v505_v20 }
 0x165   :  { %v1561_v47 = vpop.eup %1560  ;;  %v529_v15 = vmul.f32 %v2035_v18, %v490_v16 }
 0x166   :  { %v1563_v62 = vpop.eup %1562  ;;  %1462 = vmatmul.mubr.bf16.gmra.mxu0 %v593_v46  ;;  %v583_v11 = vadd.f32 %v2042_v54, %v544_v3  ;;  %v491_v61 = vmul.f32 %v1561_v47, %v1976_v19 }
 0x167   :  { %v506_v13 = vmul.f32 %v1563_v62, %v1989_v29  ;;  %v568_v37 = vadd.f32 %v2042_v54, %v529_v15 }
 0x168   :  { %v601_v28 = vpack.c.bf16 %v583_v11, %v582_v1  ;;  %v530_v58 = vmul.f32 %v2035_v18, %v491_v61 }
 0x169   :  { %v1565_v27 = vpop.eup %1564  ;;  %v545_v38 = vmul.f32 %v2035_v18, %v506_v13 }
 0x16a   :  { %v1567_v50 = vpop.eup %1566  ;;  %1478 = vmatmul.mubr.bf16.gmra.mxu1 %v601_v28  ;;  %v569_v12 = vadd.f32 %v2042_v54, %v530_v58  ;;  %v507_v36 = vmul.f32 %v1565_v27, %v1993_v48 }
 0x16b   :  { %v492_v19 = vmul.f32 %v1567_v50, %v2003_v41  ;;  %v584_v4 = vadd.f32 %v2042_v54, %v545_v38 }
 0x16c   :  { %v594_v49 = vpack.c.bf16 %v569_v12, %v568_v37  ;;  %v546_v22 = vmul.f32 %v2035_v18, %v507_v36 }
 0x16d   :  { %v1569_v29 = vpop.eup %1568  ;;  %v531_v52 = vmul.f32 %v2035_v18, %v492_v19 }
 0x16e   :  { %v1571_v21 = vpop.eup %1570  ;;  %1465 = vmatprep.mubr.bf16.mxu0 %v594_v49  ;;  %v585_v23 = vadd.f32 %v2042_v54, %v546_v22  ;;  %v493_v51 = vmul.f32 %v1569_v29, %v2007_v30 }
 0x16f   :  { %v508_v48 = vmul.f32 %v1571_v21, %v2017_v42  ;;  %v570_v14 = vadd.f32 %v2042_v54, %v531_v52 }
 0x170   :  { %v602_v31 = vpack.c.bf16 %v585_v23, %v584_v4  ;;  %v532_v59 = vmul.f32 %v2035_v18, %v493_v51 }
 0x171   :  { %v1573_v41 = vpop.eup %1572  ;;  %v547_v40 = vmul.f32 %v2035_v18, %v508_v48 }
 0x172   :  { %1481 = vmatprep.mubr.bf16.mxu1 %v602_v31  ;;  %v571_v5 = vadd.f32 %v2042_v54, %v532_v59  ;;  %v509_v6 = vmul.f32 %v1573_v41, %v2021_v44 }
 0x173   :  { %v586_v17 = vadd.f32 %v2042_v54, %v547_v40 }
 0x174   :  { %v595_v2 = vpack.c.bf16 %v571_v5, %v570_v14  ;;  %v548_v30 = vmul.f32 %v2035_v18, %v509_v6 }
 0x176   :  { %1466 = vmatmul.mubr.bf16.gmra.mxu0 %v595_v2  ;;  %v587_v42 = vadd.f32 %v2042_v54, %v548_v30 }
 0x178   :  { %v603_v39 = vpack.c.bf16 %v587_v42, %v586_v17 }
 0x17a   :  { %1482 = vmatmul.mubr.bf16.gmra.mxu1 %v603_v39 }
 0x206   :  { %v1455_v32 = vpop.f32.mrf.mxu0 }
 0x207   :  { %v969_v0 = vadd.f32 %v1455_v32, %v2140_v56 }
 0x208   :  { %v734_v10 = vpop.f32.mrf.mxu0 }
 0x209   :  { %v967_v25 = vadd.f32 %v2140_v56, %v734_v10 }
 0x20a   :  { %v1456_v44 = vpop.f32.mrf.mxu0 }
 0x20b   :  { %v970_v55 = vadd.f32 %v1456_v44, %v2140_v56  ;;  %v1471_v18 = vpop.f32.mrf.mxu1 }
 0x20c   :  { %v737_v57 = vpop.f32.mrf.mxu0  ;;  %v985_v26 = vadd.f32 %v1471_v18, %v2140_v56 }
 0x20d   :  { %v1311_v24 = vpack.c.bf16 %v970_v55, %v969_v0  ;;  %v968_v54 = vadd.f32 %v2140_v56, %v737_v57  ;;  %v798_v8 = vpop.f32.mrf.mxu1 }
 0x20e   :  { %v983_v9 = vadd.f32 %v2140_v56, %v798_v8 }
 0x20f   :  { %1398 = vst [vmem:[%s2227_s5 + $0x8] sm:$0xff] %v1311_v24   ;;  %v1306_v63 = vpack.c.bf16 %v968_v54, %v967_v25  ;;  %v1472_v53 = vpop.f32.mrf.mxu1 }
 0x210   :  { %v986_v43 = vadd.f32 %v1472_v53, %v2140_v56 }
 0x211   :  { %1307 = vst [vmem:[%s2227_s5] sm:$0xff] %v1306_v63   ;;  %v801_v34 = vpop.f32.mrf.mxu1 }
 0x212   :  { %v1351_v60 = vpack.c.bf16 %v986_v43, %v985_v26  ;;  %v984_v33 = vadd.f32 %v2140_v56, %v801_v34 }
 0x214   :  { %1406 = vst [vmem:[%s2227_s5 + $0x48] sm:$0xff] %v1351_v60   ;;  %v1346_v35 = vpack.c.bf16 %v984_v33, %v983_v9 }
 0x216   :  { %1405 = vst [vmem:[%s2227_s5 + $0x40] sm:$0xff] %v1346_v35   ;;  %v1459_v7 = vpop.f32.mrf.mxu0 }
 0x217   :  { %v973_v16 = vadd.f32 %v1459_v7, %v2140_v56 }
 0x218   :  { %v750_v20 = vpop.f32.mrf.mxu0 }
 0x219   :  { %v971_v62 = vadd.f32 %v2140_v56, %v750_v20 }
 0x21a   :  { %v1460_v45 = vpop.f32.mrf.mxu0 }
 0x21b   :  { %v974_v46 = vadd.f32 %v1460_v45, %v2140_v56  ;;  %v1475_v3 = vpop.f32.mrf.mxu1 }
 0x21c   :  { %v753_v47 = vpop.f32.mrf.mxu0  ;;  %v989_v28 = vadd.f32 %v1475_v3, %v2140_v56 }
 0x21d   :  { %v1321_v1 = vpack.c.bf16 %v974_v46, %v973_v16  ;;  %v972_v11 = vadd.f32 %v2140_v56, %v753_v47  ;;  %v814_v61 = vpop.f32.mrf.mxu1 }
 0x21e   :  { %v987_v50 = vadd.f32 %v2140_v56, %v814_v61 }
 0x21f   :  { %1400 = vst [vmem:[%s2227_s5 + $0x18] sm:$0xff] %v1321_v1   ;;  %v1316_v15 = vpack.c.bf16 %v972_v11, %v971_v62  ;;  %v1476_v13 = vpop.f32.mrf.mxu1 }
 0x220   :  { %v990_v58 = vadd.f32 %v1476_v13, %v2140_v56 }
 0x221   :  { %1399 = vst [vmem:[%s2227_s5 + $0x10] sm:$0xff] %v1316_v15   ;;  %v817_v27 = vpop.f32.mrf.mxu1 }
 0x222   :  { %v1361_v37 = vpack.c.bf16 %v990_v58, %v989_v28  ;;  %v988_v12 = vadd.f32 %v2140_v56, %v817_v27 }
 0x224   :  { %1408 = vst [vmem:[%s2227_s5 + $0x58] sm:$0xff] %v1361_v37   ;;  %v1356_v36 = vpack.c.bf16 %v988_v12, %v987_v50 }
 0x226   :  { %1407 = vst [vmem:[%s2227_s5 + $0x50] sm:$0xff] %v1356_v36   ;;  %v1463_v38 = vpop.f32.mrf.mxu0 }
 0x227   :  { %v977_v29 = vadd.f32 %v1463_v38, %v2140_v56 }
 0x228   :  { %v766_v19 = vpop.f32.mrf.mxu0 }
 0x229   :  { %v975_v51 = vadd.f32 %v2140_v56, %v766_v19 }
 0x22a   :  { %v1464_v49 = vpop.f32.mrf.mxu0  ;;  %v1479_v22 = vpop.f32.mrf.mxu1 }
 0x22b   :  { %v978_v21 = vadd.f32 %v1464_v49, %v2140_v56  ;;  %v993_v59 = vadd.f32 %v1479_v22, %v2140_v56 }
 0x22c   :  { %v769_v4 = vpop.f32.mrf.mxu0  ;;  %v830_v23 = vpop.f32.mrf.mxu1 }
 0x22d   :  { %v1331_v52 = vpack.c.bf16 %v978_v21, %v977_v29  ;;  %v976_v48 = vadd.f32 %v2140_v56, %v769_v4  ;;  %v991_v6 = vadd.f32 %v2140_v56, %v830_v23 }
 0x22e   :  { %v1480_v31 = vpop.f32.mrf.mxu1 }
 0x22f   :  { %1402 = vst [vmem:[%s2227_s5 + $0x28] sm:$0xff] %v1331_v52   ;;  %v1326_v41 = vpack.c.bf16 %v976_v48, %v975_v51  ;;  %v994_v14 = vadd.f32 %v1480_v31, %v2140_v56 }
 0x230   :  { %v833_v5 = vpop.f32.mrf.mxu1 }
 0x231   :  { %1401 = vst [vmem:[%s2227_s5 + $0x20] sm:$0xff] %v1326_v41   ;;  %v1371_v40 = vpack.c.bf16 %v994_v14, %v993_v59  ;;  %v992_v2 = vadd.f32 %v2140_v56, %v833_v5 }
 0x233   :  { %1410 = vst [vmem:[%s2227_s5 + $0x68] sm:$0xff] %v1371_v40   ;;  %v1366_v30 = vpack.c.bf16 %v992_v2, %v991_v6 }
 0x235   :  { %1409 = vst [vmem:[%s2227_s5 + $0x60] sm:$0xff] %v1366_v30  }
 0x236   :  { %v1467_v17 = vpop.f32.mrf.mxu0 }
 0x237   :  { %v981_v10 = vadd.f32 %v1467_v17, %v2140_v56 }
 0x238   :  { %v782_v42 = vpop.f32.mrf.mxu0 }
 0x239   :  { %v979_v18 = vadd.f32 %v2140_v56, %v782_v42 }
 0x23a   :  { %v1468_v39 = vpop.f32.mrf.mxu0  ;;  %v1483_v32 = vpop.f32.mrf.mxu1 }
 0x23b   :  { %v982_v44 = vadd.f32 %v1468_v39, %v2140_v56  ;;  %v997_v54 = vadd.f32 %v1483_v32, %v2140_v56 }
 0x23c   :  { %v785_v0 = vpop.f32.mrf.mxu0  ;;  %v846_v55 = vpop.f32.mrf.mxu1 }
 0x23d   :  { %v1341_v57 = vpack.c.bf16 %v982_v44, %v981_v10  ;;  %v980_v25 = vadd.f32 %v2140_v56, %v785_v0  ;;  %v995_v26 = vadd.f32 %v2140_v56, %v846_v55 }
 0x23e   :  { %v1484_v24 = vpop.f32.mrf.mxu1 }
 0x23f   :  { %1404 = vst [vmem:[%s2227_s5 + $0x38] sm:$0xff] %v1341_v57   ;;  %v1336_v8 = vpack.c.bf16 %v980_v25, %v979_v18  ;;  %v998_v63 = vadd.f32 %v1484_v24, %v2140_v56 }
 0x240   :  { %v849_v53 = vpop.f32.mrf.mxu1 }
 0x241   :  { %1403 = vst [vmem:[%s2227_s5 + $0x30] sm:$0xff] %v1336_v8   ;;  %v1381_v43 = vpack.c.bf16 %v998_v63, %v997_v54  ;;  %v996_v34 = vadd.f32 %v2140_v56, %v849_v53 }
 0x243   :  { %1412 = vst [vmem:[%s2227_s5 + $0x78] sm:$0xff] %v1381_v43   ;;  %v1376_v9 = vpack.c.bf16 %v996_v34, %v995_v26 }
 0x245   :  { %1411 = vst [vmem:[%s2227_s5 + $0x70] sm:$0xff] %v1376_v9  }

// kernel: _lambda_.17
= control target key start
LH: loop header
LB: loop body
LE: loop exit
PB: predicated region body
PF: predicated region fallthrough
CT: control target
= control target key end

     0   :  { %s2067_s12 = smov 0   ;;  %s2069_s13 = smov 0   ;;  %s2686_s0 = inlined_call_operand.vmem [shape: bf16[8,128,8], index: 0, kind: input, shape index: {}]   ;;  %s2687_s1 = inlined_call_operand.vmem [shape: bf16[8,128,8], index: 1, kind: input, shape index: {}]   ;;  %s2688_s2 = inlined_call_operand.vmem [shape: bf16[8,128,8], index: 2, kind: input, shape index: {}]   ;;  %s2689_s3 = inlined_call_operand.vmem [shape: bf16[8,128,8], index: 3, kind: output, shape index: {}]  }
   0x1   :  { %s2071_s14 = smov 0  }
   0x2 LB: > { %s32_s15 = sadd.s32 1, %s2038_s13  ;;  %p1664_p0 = scmp.ge.s32.totalorder %s2042_s14, 1  ;;  %s2042_s14 = sphi %s2071_s14, %s13_s14   ;;  %s2038_s13 = sphi %s2069_s13, %s2708_s13   ;;  %s2034_s12 = sphi %s2067_s12, %s2707_s12  }
   0x3   : > { %p34_p1 = scmp.ge.s32.totalorder %s32_s15, 8  ;;  %p199_p2 = scmp.lt.s32.totalorder %s2042_s14, 9 }
   0x5   : > { %s2710_s15 = smov (%p34_p1, %s32_s15), 0  ;;  %p200_p3 = pnand %p1664_p0, %p199_p2 }
   0x6   : > { %p250_p4 = scmp.lt.s32.totalorder (!%p200_p3), %s2034_s12, 7 }
   0x7   : > { %203 = sbr.rel (%p200_p3) target bundleno = 899 (0x383), region = 32 }
   0xc   : > { %s2712_s12 = smov (!%p250_p4, %s2034_s12), 7  ;;  %vm327_vm0 = vcmask 64512   ;;  %vm294_vm1 = vcmask 7168   ;;  %v2044_v24 = vmov -1e+30   ;;  %v619_v25 = vlaneseq }
   0xd   : > { %s2085_s16 = sshll.u32 %s2712_s12, 6  ;;  %297 = vst.msk [vmem:[#allocation2 + $0x10] sm:$0xff] %vm294_vm1, %v2044_v24  ;;  %295 = vst.msk [vmem:[#allocation2] sm:$0xff] %vm294_vm1, %v2044_v24  ;;  %v2045_v40 = vmov 0   ;;  %v2046_v53 = vmov 0.0   ;;  %vm1517_vm4 = vcmask 60416  }
   0xe   : > { %s2091_s19 = scalar_lea.vmem %s2687_s1, %s2085_s16  ;;  %s2102_s22 = scalar_lea.vmem %s2686_s0, %s2085_s16  ;;  %296 = vst.msk [vmem:[#allocation2 + $0x8] sm:$0xff] %vm294_vm1, %v2044_v24  ;;  %298 = vst.msk [vmem:[#allocation2 + $0x18] sm:$0xff] %vm294_vm1, %v2044_v24  ;;  %v2155_v26 = vand.u32 127, %v619_v25  ;;  %1899 = vset.pattern.permute.xlu1 %v2045_v40  ;;  %1898 = vset.pattern.permute.xlu0 %v2045_v40 }
   0xf   : > { %v1900_v0 = vld [vmem:[%s2091_s19 + $0x38] sm:$0xff]   ;;  %v1901_v1 = vld [vmem:[%s2091_s19 + $0x30] sm:$0xff]   ;;  %v1902_v3 = vld [vmem:[%s2091_s19 + $0x28] sm:$0xff]   ;;  %299 = vst.msk [vmem:[#allocation2 + $0x20] sm:$0xff] %vm294_vm1, %v2044_v24  ;;  %s2274_s25 = scalar_lea.vmem %s2688_s2, %s2085_s16  ;;  %s2643_s28 = scalar_lea.vmem %s2689_s3, %s2085_s16 }
  0x10   : > { %1863 = vmatprep.subr.msk.bf16.mxu0 %vm327_vm0, %v1900_v0  ;;  %v519_v2 = vsel %vm327_vm0, %v1900_v0, 0  ;;  %v516_v4 = vsel %vm327_vm0, %v1901_v1, 0  ;;  %v1908_v5 = vld [vmem:[%s2102_s22] sm:$0xff]   ;;  %v513_v6 = vsel %vm327_vm0, %v1902_v3, 0  ;;  %v1904_v9 = vld [vmem:[%s2091_s19 + $0x18] sm:$0xff]   ;;  %v1905_v11 = vld [vmem:[%s2091_s19 + $0x10] sm:$0xff]  }
  0x11   : > { %1800 = vmatpush3.bf16.xpose.msra.mxu0 %v519_v2  ;;  %1815 = vmatprep.mubr.msk.bf16.mxu0 %vm327_vm0, %v1908_v5  ;;  %v1903_v7 = vld [vmem:[%s2091_s19 + $0x20] sm:$0xff]   ;;  %v507_v10 = vsel %vm327_vm0, %v1904_v9, 0  ;;  %v504_v12 = vsel %vm327_vm0, %v1905_v11, 0  ;;  %v1906_v13 = vld [vmem:[%s2091_s19 + $0x8] sm:$0xff]   ;;  %v1910_v18 = vld [vmem:[%s2102_s22 + $0x10] sm:$0xff]   ;;  %300 = vst.msk [vmem:[#allocation2 + $0x28] sm:$0xff] %vm294_vm1, %v2044_v24 }
  0x12   : > { %1864 = vmatprep.subr.msk.bf16.mxu0 %vm327_vm0, %v1901_v1  ;;  %v510_v8 = vsel %vm327_vm0, %v1903_v7, 0  ;;  %v501_v14 = vsel %vm327_vm0, %v1906_v13, 0  ;;  %v1907_v15 = vld [vmem:[%s2091_s19] sm:$0xff]   ;;  %v1909_v17 = vld [vmem:[%s2102_s22 + $0x8] sm:$0xff]   ;;  %v1911_v19 = vld [vmem:[%s2102_s22 + $0x18] sm:$0xff]   ;;  %301 = vst.msk [vmem:[#allocation2 + $0x30] sm:$0xff] %vm294_vm1, %v2044_v24 }
  0x13   : > { %v498_v16 = vsel %vm327_vm0, %v1907_v15, 0  ;;  %v1912_v20 = vld [vmem:[%s2102_s22 + $0x20] sm:$0xff]   ;;  %v1913_v21 = vld [vmem:[%s2102_s22 + $0x28] sm:$0xff]   ;;  %v1914_v22 = vld [vmem:[%s2102_s22 + $0x30] sm:$0xff]   ;;  %302 = vst.msk [vmem:[#allocation2 + $0x38] sm:$0xff] %vm294_vm1, %v2044_v24  ;;  %vm623_vm2 = vcmp.lt.s32.totalorder %v2155_v26, 5 }
  0x14   : > { %v1915_v23 = vld [vmem:[%s2102_s22 + $0x38] sm:$0xff]   ;;  %303 = vst.msk [vmem:[#allocation2 + $0x40] sm:$0xff] %vm294_vm1, %v2044_v24  ;;  %304 = vst.msk [vmem:[#allocation2 + $0x48] sm:$0xff] %vm294_vm1, %v2044_v24  ;;  %v2277_v62 = vld [vmem:[#allocation2 + $0x10] sm:$0xff] }
  0x15   : > { %305 = vst.msk [vmem:[#allocation2 + $0x50] sm:$0xff] %vm294_vm1, %v2044_v24  ;;  %306 = vst.msk [vmem:[#allocation2 + $0x58] sm:$0xff] %vm294_vm1, %v2044_v24  ;;  %v1916_v61 = vld [vmem:[%s2274_s25 + $0x38] sm:$0xff]   ;;  %v1917_v63 = vld [vmem:[%s2274_s25 + $0x30] sm:$0xff]  }
  0x16   : > { %307 = vst.msk [vmem:[#allocation2 + $0x60] sm:$0xff] %vm294_vm1, %v2044_v24  ;;  %308 = vst.msk [vmem:[#allocation2 + $0x68] sm:$0xff] %vm294_vm1, %v2044_v24  ;;  %1831 = vmatprep.subr.bf16.mxu1 %v1916_v61  ;;  %v2280_v1 = vld [vmem:[#allocation2] sm:$0xff]  ;;  %v1918_v5 = vld [vmem:[%s2274_s25 + $0x28] sm:$0xff]  }
  0x17   : > { %309 = vst.msk [vmem:[#allocation2 + $0x70] sm:$0xff] %vm294_vm1, %v2044_v24  ;;  %310 = vst.msk [vmem:[#allocation2 + $0x78] sm:$0xff] %vm294_vm1, %v2044_v24  ;;  %1832 = vmatpush3.bf16.msra.mxu1 %v1916_v61 }
  0x18   : > { %313 = vst.msk [vmem:[#allocation3 + $0x10] sm:$0xff] %vm294_vm1, %v2046_v53  ;;  %311 = vst.msk [vmem:[#allocation3] sm:$0xff] %vm294_vm1, %v2046_v53  ;;  %1833 = vmatprep.subr.bf16.mxu1 %v1917_v63 }
  0x19   : > { %1802 = vmatpush3.bf16.xpose.msra.mxu0 %v516_v4  ;;  %312 = vst.msk [vmem:[#allocation3 + $0x8] sm:$0xff] %vm294_vm1, %v2046_v53  ;;  %314 = vst.msk [vmem:[#allocation3 + $0x18] sm:$0xff] %vm294_vm1, %v2046_v53  ;;  %v2285_v4 = vld [vmem:[#allocation2 + $0x18] sm:$0xff] }
  0x1a   : > { %1865 = vmatprep.subr.msk.bf16.mxu0 %vm327_vm0, %v1902_v3  ;;  %315 = vst.msk [vmem:[#allocation3 + $0x20] sm:$0xff] %vm294_vm1, %v2046_v53  ;;  %316 = vst.msk [vmem:[#allocation3 + $0x28] sm:$0xff] %vm294_vm1, %v2046_v53 }
  0x1b   : > { %317 = vst.msk [vmem:[#allocation3 + $0x30] sm:$0xff] %vm294_vm1, %v2046_v53  ;;  %318 = vst.msk [vmem:[#allocation3 + $0x38] sm:$0xff] %vm294_vm1, %v2046_v53  ;;  %1834 = vmatpush3.bf16.msra.mxu1 %v1917_v63  ;;  %v2377_v63 = vld [vmem:[#allocation2 + $0x48] sm:$0xff] }
  0x1c   : > { %319 = vst.msk [vmem:[#allocation3 + $0x40] sm:$0xff] %vm294_vm1, %v2046_v53  ;;  %320 = vst.msk [vmem:[#allocation3 + $0x48] sm:$0xff] %vm294_vm1, %v2046_v53  ;;  %1835 = vmatprep.subr.bf16.mxu1 %v1918_v5 }
  0x1d   : > { %321 = vst.msk [vmem:[#allocation3 + $0x50] sm:$0xff] %vm294_vm1, %v2046_v53  ;;  %322 = vst.msk [vmem:[#allocation3 + $0x58] sm:$0xff] %vm294_vm1, %v2046_v53 }
  0x1e   : > { %323 = vst.msk [vmem:[#allocation3 + $0x60] sm:$0xff] %vm294_vm1, %v2046_v53  ;;  %324 = vst.msk [vmem:[#allocation3 + $0x68] sm:$0xff] %vm294_vm1, %v2046_v53 }
  0x1f   : > { %325 = vst.msk [vmem:[#allocation3 + $0x70] sm:$0xff] %vm294_vm1, %v2046_v53  ;;  %326 = vst.msk [vmem:[#allocation3 + $0x78] sm:$0xff] %vm294_vm1, %v2046_v53  ;;  %1836 = vmatpush3.bf16.msra.mxu1 %v1918_v5 }
  0x20   : > { %328 = vst.msk [vmem:[#allocation4] sm:$0xff] %vm327_vm0, %v2046_v53  ;;  %329 = vst.msk [vmem:[#allocation4 + $0x8] sm:$0xff] %vm327_vm0, %v2046_v53 }
  0x21   : > { %1804 = vmatpush3.bf16.xpose.msra.mxu0 %v513_v6  ;;  %330 = vst.msk [vmem:[#allocation4 + $0x10] sm:$0xff] %vm327_vm0, %v2046_v53  ;;  %331 = vst.msk [vmem:[#allocation4 + $0x18] sm:$0xff] %vm327_vm0, %v2046_v53 }
  0x22   : > { %1866 = vmatprep.subr.msk.bf16.mxu0 %vm327_vm0, %v1903_v7  ;;  %332 = vst.msk [vmem:[#allocation4 + $0x20] sm:$0xff] %vm327_vm0, %v2046_v53  ;;  %333 = vst.msk [vmem:[#allocation4 + $0x28] sm:$0xff] %vm327_vm0, %v2046_v53 }
  0x23   : > { %334 = vst.msk [vmem:[#allocation4 + $0x30] sm:$0xff] %vm327_vm0, %v2046_v53  ;;  %335 = vst.msk [vmem:[#allocation4 + $0x38] sm:$0xff] %vm327_vm0, %v2046_v53 }
  0x24   : > { %336 = vst.msk [vmem:[#allocation4 + $0x40] sm:$0xff] %vm327_vm0, %v2046_v53  ;;  %337 = vst.msk [vmem:[#allocation4 + $0x48] sm:$0xff] %vm327_vm0, %v2046_v53 }
  0x25   : > { %338 = vst.msk [vmem:[#allocation4 + $0x50] sm:$0xff] %vm327_vm0, %v2046_v53  ;;  %339 = vst.msk [vmem:[#allocation4 + $0x58] sm:$0xff] %vm327_vm0, %v2046_v53 }
  0x26   : > { %340 = vst.msk [vmem:[#allocation4 + $0x60] sm:$0xff] %vm327_vm0, %v2046_v53  ;;  %341 = vst.msk [vmem:[#allocation4 + $0x68] sm:$0xff] %vm327_vm0, %v2046_v53 }
  0x27   : > { %342 = vst.msk [vmem:[#allocation4 + $0x70] sm:$0xff] %vm327_vm0, %v2046_v53  ;;  %343 = vst.msk [vmem:[#allocation4 + $0x78] sm:$0xff] %vm327_vm0, %v2046_v53 }
  0x28   : > { %vm2464_vm3 = vmpackc.low %vm623_vm2, %vm623_vm2 }
  0x29   : > { %1806 = vmatpush3.bf16.xpose.msra.mxu0 %v510_v8 }
  0x2a   : > { %1867 = vmatprep.subr.msk.bf16.mxu0 %vm327_vm0, %v1904_v9  ;;  %v2296_v9 = vld [vmem:[#allocation2 + $0x8] sm:$0xff] }
  0x31   : > { %1808 = vmatpush3.bf16.xpose.msra.mxu0 %v507_v10 }
  0x32   : > { %1868 = vmatprep.subr.msk.bf16.mxu0 %vm327_vm0, %v1905_v11 }
  0x39   : > { %1810 = vmatpush3.bf16.xpose.msra.mxu0 %v504_v12 }
  0x3a   : > { %1869 = vmatprep.subr.msk.bf16.mxu0 %vm327_vm0, %v1906_v13  ;;  %v1919_v13 = vld [vmem:[%s2274_s25 + $0x20] sm:$0xff]  }
  0x3b   : > { %1837 = vmatprep.subr.bf16.mxu1 %v1919_v13 }
  0x3c   : > { %1838 = vmatpush3.bf16.msra.mxu1 %v1919_v13 }
  0x41   : > { %1812 = vmatpush3.bf16.xpose.msra.mxu0 %v501_v14 }
  0x42   : > { %1870 = vmatprep.subr.msk.bf16.mxu0 %vm327_vm0, %v1907_v15 }
  0x49   : > { %1814 = vmatpush3.bf16.xpose.msra.mxu0 %v498_v16  ;;  %v2315_v16 = vld [vmem:[#allocation2 + $0x20] sm:$0xff] }
  0x50   : > { %1816 = vmatmul.mubr.msk.bf16.vlgmr.msra.gmra.mxu0 %vm327_vm0, %v1909_v17 }
  0x51   : > { %1819 = vmatprep.mubr.msk.bf16.mxu0 %vm327_vm0, %v1910_v18 }
  0x58   : > { %1820 = vmatmul.mubr.msk.bf16.gmra.mxu0 %vm327_vm0, %v1911_v19  ;;  %v2321_v19 = vld [vmem:[#allocation2 + $0x38] sm:$0xff] }
  0x59   : > { %1823 = vmatprep.mubr.msk.bf16.mxu0 %vm327_vm0, %v1912_v20  ;;  %v1920_v20 = vld [vmem:[%s2274_s25 + $0x18] sm:$0xff]  }
  0x5a   : > { %1839 = vmatprep.subr.bf16.mxu1 %v1920_v20 }
  0x5b   : > { %1840 = vmatpush3.bf16.msra.mxu1 %v1920_v20 }
  0x60   : > { %1824 = vmatmul.mubr.msk.bf16.gmra.mxu0 %vm327_vm0, %v1913_v21 }
  0x61   : > { %1827 = vmatprep.mubr.msk.bf16.mxu0 %vm327_vm0, %v1914_v22 }
  0x68   : > { %1828 = vmatmul.mubr.msk.bf16.gmra.mxu0 %vm327_vm0, %v1915_v23  ;;  %v2328_v23 = vld [vmem:[#allocation2 + $0x30] sm:$0xff] }
 0x110   : > { %v1817_v27 = vpop.f32.mrf.mxu0 }
 0x111   : > { %v2160_v28 = vsel %vm623_vm2, %v1817_v27, -1e+30 }
 0x112   : > { %660 = vmax.xlane.f32.xlu1 %v2160_v28  ;;  %v555_v29 = vpop.f32.mrf.mxu0 }
 0x113   : > { %v2165_v30 = vsel %vm623_vm2, %v555_v29, -1e+30  ;;  %v2337_v29 = vld [vmem:[#allocation2 + $0x28] sm:$0xff] }
 0x114   : > { %656 = vmax.xlane.f32.xlu0 %v2165_v30  ;;  %v1818_v31 = vpop.f32.mrf.mxu0 }
 0x115   : > { %v2170_v32 = vsel %vm623_vm2, %v1818_v31, -1e+30  ;;  %v1921_v31 = vld [vmem:[%s2274_s25 + $0x10] sm:$0xff]  }
 0x116   : > { %662 = vmax.xlane.f32.xlu1 %v2170_v32  ;;  %v558_v33 = vpop.f32.mrf.mxu0  ;;  %1841 = vmatprep.subr.bf16.mxu1 %v1921_v31 }
 0x117   : > { %v2175_v34 = vsel %vm623_vm2, %v558_v33, -1e+30  ;;  %1842 = vmatpush3.bf16.msra.mxu1 %v1921_v31 }
 0x118   : > { %658 = vmax.xlane.f32.xlu0 %v2175_v34  ;;  %v1821_v35 = vpop.f32.mrf.mxu0 }
 0x119   : > { %v2190_v42 = vsel %vm623_vm2, %v1821_v35, -1e+30 }
 0x11a   : > { %v571_v36 = vpop.f32.mrf.mxu0 }
 0x11b   : > { %v2180_v37 = vsel %vm623_vm2, %v571_v36, -1e+30 }
 0x11c   : > { %664 = vmax.xlane.f32.xlu0 %v2180_v37  ;;  %v1822_v38 = vpop.f32.mrf.mxu0 }
 0x11d   : > { %v2185_v39 = vsel %vm623_vm2, %v1822_v38, -1e+30  ;;  %v2347_v38 = vld [vmem:[#allocation2 + $0x40] sm:$0xff] }
 0x11e   : > { %670 = vmax.xlane.f32.xlu1 %v2185_v39  ;;  %v574_v41 = vpop.f32.mrf.mxu0 }
 0x11f   : > { %v2195_v44 = vsel %vm623_vm2, %v574_v41, -1e+30 }
 0x120   : > { %668 = vmax.xlane.f32.xlu0 %v2190_v42  ;;  %v1825_v43 = vpop.f32.mrf.mxu0 }
 0x121   : > { %v2209_v49 = vsel %vm623_vm2, %v1825_v43, -1e+30 }
 0x122   : > { %666 = vmax.xlane.f32.xlu1 %v2195_v44  ;;  %v587_v45 = vpop.f32.mrf.mxu0 }
 0x123   : > { %v2200_v46 = vsel %vm623_vm2, %v587_v45, -1e+30  ;;  %v2357_v45 = vld [vmem:[#allocation2 + $0x58] sm:$0xff] }
 0x124   : > { %672 = vmax.xlane.f32.xlu0 %v2200_v46  ;;  %v1826_v47 = vpop.f32.mrf.mxu0 }
 0x125   : > { %v2205_v48 = vsel %vm623_vm2, %v1826_v47, -1e+30  ;;  %v1922_v47 = vld [vmem:[%s2274_s25 + $0x8] sm:$0xff]  }
 0x126   : > { %678 = vmax.xlane.f32.xlu1 %v2205_v48  ;;  %v590_v50 = vpop.f32.mrf.mxu0  ;;  %1843 = vmatprep.subr.bf16.mxu1 %v1922_v47 }
 0x127   : > { %v2215_v52 = vsel %vm623_vm2, %v590_v50, -1e+30  ;;  %1844 = vmatpush3.bf16.msra.mxu1 %v1922_v47 }
 0x128   : > { %676 = vmax.xlane.f32.xlu0 %v2209_v49  ;;  %v1829_v51 = vpop.f32.mrf.mxu0 }
 0x129   : > { %v2261_v58 = vsel %vm623_vm2, %v1829_v51, -1e+30 }
 0x12a   : > { %674 = vmax.xlane.f32.xlu1 %v2215_v52  ;;  %v603_v54 = vpop.f32.mrf.mxu0 }
 0x12b   : > { %v2252_v55 = vsel %vm623_vm2, %v603_v54, -1e+30  ;;  %v2367_v54 = vld [vmem:[#allocation2 + $0x50] sm:$0xff] }
 0x12c   : > { %680 = vmax.xlane.f32.xlu0 %v2252_v55  ;;  %v1830_v56 = vpop.f32.mrf.mxu0 }
 0x12d   : > { %v2257_v57 = vsel %vm623_vm2, %v1830_v56, -1e+30 }
 0x12e   : > { %686 = vmax.xlane.f32.xlu1 %v2257_v57  ;;  %v606_v59 = vpop.f32.mrf.mxu0 }
 0x12f   : > { %v2267_v60 = vsel %vm623_vm2, %v606_v59, -1e+30 }
 0x130   : > { %684 = vmax.xlane.f32.xlu0 %v2261_v58 }
 0x132   : > { %682 = vmax.xlane.f32.xlu1 %v2267_v60 }
 0x19b   : > { %v661_v0 = vpop.xlane.xlu1 %660 }
 0x19c   : > { %v2283_v2 = vmax.f32 %v2277_v62, %v661_v0  ;;  %v1923_v0 = vld [vmem:[%s2274_s25] sm:$0xff]  }
 0x19d   : > { %v657_v3 = vpop.xlane.xlu0 %656  ;;  %1845 = vmatprep.subr.bf16.mxu1 %v1923_v0 }
 0x19e   : > { %1292 = vst.msk [vmem:[#allocation2 + $0x10] sm:$0xff] %vm294_vm1, %v2283_v2  ;;  %v2293_v7 = vmax.f32 %v2280_v1, %v657_v3  ;;  %764 = vperm.xlu1 %1899, %v2283_v2   ;;  %1846 = vmatpush3.bf16.msra.mxu1 %v1923_v0  ;;  %v2417_v0 = vld [vmem:[#allocation2 + $0x68] sm:$0xff] }
 0x19f   : > { %v663_v8 = vpop.xlane.xlu1 %662 }
 0x1a0   : > { %1290 = vst.msk [vmem:[#allocation2] sm:$0xff] %vm294_vm1, %v2293_v7  ;;  %v2303_v11 = vmax.f32 %v2285_v4, %v663_v8  ;;  %754 = vperm.xlu0 %1898, %v2293_v7  }
 0x1a1   : > { %v659_v12 = vpop.xlane.xlu0 %658 }
 0x1a2   : > { %1293 = vst.msk [vmem:[#allocation2 + $0x18] sm:$0xff] %vm294_vm1, %v2303_v11  ;;  %v2312_v15 = vmax.f32 %v2296_v9, %v659_v12  ;;  %769 = vperm.xlu1 %1899, %v2303_v11   ;;  %v2387_v12 = vld [vmem:[#allocation2 + $0x60] sm:$0xff]  ;;  %v2695_v26 = vsub.f32 %v2285_v4, %v2303_v11 }
 0x1a4   : > { %v705_v17 = vsub.f32 %v2296_v9, %v2312_v15  ;;  %1291 = vst.msk [vmem:[#allocation2 + $0x8] sm:$0xff] %vm294_vm1, %v2312_v15 }
 0x1a5   : > { %v665_v18 = vpop.xlane.xlu0 %664 }
 0x1a6   : > { %v2325_v21 = vmax.f32 %v2315_v16, %v665_v18  ;;  %759 = vperm.xlu1 %1899, %v2312_v15  }
 0x1a7   : > { %v671_v22 = vpop.xlane.xlu1 %670 }
 0x1a8   : > { %1294 = vst.msk [vmem:[#allocation2 + $0x20] sm:$0xff] %vm294_vm1, %v2325_v21  ;;  %v2335_v25 = vmax.f32 %v2321_v19, %v671_v22  ;;  %v2397_v22 = vld [vmem:[#allocation2 + $0x78] sm:$0xff]  ;;  %v2694_v9 = vsub.f32 %v2315_v16, %v2325_v21 }
 0x1a9   : > { %v669_v27 = vpop.xlane.xlu0 %668 }
 0x1aa   : > { %1297 = vst.msk [vmem:[#allocation2 + $0x38] sm:$0xff] %vm294_vm1, %v2335_v25  ;;  %v2345_v35 = vmax.f32 %v2328_v23, %v669_v27  ;;  %v728_v15 = vmul.f32 1.442695, %v2694_v9  ;;  %v2699_v4 = vsub.f32 %v2321_v19, %v2335_v25 }
 0x1ab   : > { %v667_v36 = vpop.xlane.xlu1 %666 }
 0x1ac   : > { %1296 = vst.msk [vmem:[#allocation2 + $0x30] sm:$0xff] %vm294_vm1, %v2345_v35  ;;  %v2354_v41 = vmax.f32 %v2337_v29, %v667_v36  ;;  %784 = vperm.xlu1 %1899, %v2345_v35   ;;  %v734_v11 = vmul.f32 1.442695, %v2699_v4  ;;  %v901_v4 = vld [vmem:[#allocation3 + $0x28] sm:$0xff] }
 0x1ad   : > { %v673_v43 = vpop.xlane.xlu0 %672 }
 0x1ae   : > { %1295 = vst.msk [vmem:[#allocation2 + $0x28] sm:$0xff] %vm294_vm1, %v2354_v41  ;;  %v2365_v51 = vmax.f32 %v2347_v38, %v673_v43  ;;  %v2407_v43 = vld [vmem:[#allocation2 + $0x70] sm:$0xff] }
 0x1af   : > { %v679_v53 = vpop.xlane.xlu1 %678 }
 0x1b0   : > { %1298 = vst.msk [vmem:[#allocation2 + $0x40] sm:$0xff] %vm294_vm1, %v2365_v51  ;;  %v2374_v59 = vmax.f32 %v2357_v45, %v679_v53  ;;  %774 = vperm.xlu1 %1899, %v2325_v21   ;;  %v2698_v16 = vsub.f32 %v2347_v38, %v2365_v51 }
 0x1b1   : > { %v677_v61 = vpop.xlane.xlu0 %676 }
 0x1b2   : > { %1301 = vst.msk [vmem:[#allocation2 + $0x58] sm:$0xff] %vm294_vm1, %v2374_v59  ;;  %v2385_v5 = vmax.f32 %v2367_v54, %v677_v61  ;;  %v736_v21 = vmul.f32 1.442695, %v2698_v16 }
 0x1b3   : > { %v675_v8 = vpop.xlane.xlu1 %674 }
 0x1b4   : > { %1300 = vst.msk [vmem:[#allocation2 + $0x50] sm:$0xff] %vm294_vm1, %v2385_v5  ;;  %v2394_v18 = vmax.f32 %v2377_v63, %v675_v8  ;;  %779 = vperm.xlu1 %1899, %v2354_v41  }
 0x1b5   : > { %v681_v20 = vpop.xlane.xlu0 %680 }
 0x1b6   : > { %1299 = vst.msk [vmem:[#allocation2 + $0x48] sm:$0xff] %vm294_vm1, %v2394_v18  ;;  %v2404_v31 = vmax.f32 %v2387_v12, %v681_v20  ;;  %799 = vperm.xlu0 %1898, %v2394_v18   ;;  %v2701_v38 = vsub.f32 %v2377_v63, %v2394_v18 }
 0x1b7   : > { %v687_v36 = vpop.xlane.xlu1 %686 }
 0x1b8   : > { %1302 = vst.msk [vmem:[#allocation2 + $0x60] sm:$0xff] %vm294_vm1, %v2404_v31  ;;  %v2414_v53 = vmax.f32 %v2397_v22, %v687_v36  ;;  %789 = vperm.xlu1 %1899, %v2335_v25   ;;  %v2702_v19 = vsub.f32 %v2387_v12, %v2404_v31 }
 0x1b9   : > { %v685_v61 = vpop.xlane.xlu0 %684 }
 0x1ba   : > { %1305 = vst.msk [vmem:[#allocation2 + $0x78] sm:$0xff] %vm294_vm1, %v2414_v53  ;;  %v2424_v20 = vmax.f32 %v2407_v43, %v685_v61  ;;  %809 = vperm.xlu0 %1898, %v2374_v59   ;;  %v744_v25 = vmul.f32 1.442695, %v2702_v19  ;;  %v907_v19 = vld [vmem:[#allocation3 + $0x58] sm:$0xff] }
 0x1bb   : > { %v683_v3 = vpop.xlane.xlu1 %682 }
 0x1bc   : > { %1304 = vst.msk [vmem:[#allocation2 + $0x70] sm:$0xff] %vm294_vm1, %v2424_v20  ;;  %v2432_v47 = vmax.f32 %v2417_v0, %v683_v3  ;;  %794 = vperm.xlu1 %1899, %v2365_v51   ;;  %v2704_v63 = vsub.f32 %v2407_v43, %v2424_v20 }
 0x1be   : > { %1303 = vst.msk [vmem:[#allocation2 + $0x68] sm:$0xff] %vm294_vm1, %v2432_v47  ;;  %819 = vperm.xlu0 %1898, %v2432_v47   ;;  %v748_v18 = vmul.f32 1.442695, %v2704_v63  ;;  %v2705_v12 = vsub.f32 %v2417_v0, %v2432_v47 }
 0x1c0   : > { %804 = vperm.xlu1 %1899, %v2385_v5  }
 0x1c2   : > { %829 = vperm.xlu0 %1898, %v2414_v53  }
 0x1c4   : > { %814 = vperm.xlu1 %1899, %v2404_v31   ;;  %v746_v31 = vmul.f32 1.442695, %v2705_v12 }
 0x1c8   : > { %824 = vperm.xlu1 %1899, %v2424_v20  }
 0x219   : > { %v765_v3 = vpop.permute.xlu1 %764 }
 0x21a   : > { %v834_v61 = vsub.f32 %v2160_v28, %v765_v3 }
 0x21b   : > { %v755_v36 = vpop.permute.xlu0 %754 }
 0x21c   : > { %v852_v27 = vmul.f32 1.442695, %v834_v61  ;;  %v832_v8 = vsub.f32 %v2165_v30, %v755_v36 }
 0x21d   : > { %v770_v13 = vpop.permute.xlu1 %769 }
 0x21e   : > { %1924 = vpow2.f32 %v852_v27  ;;  %v848_v33 = vmul.f32 1.442695, %v832_v8  ;;  %v835_v56 = vsub.f32 %v2170_v32, %v770_v13 }
 0x220   : > { %1926 = vpow2.f32 %v848_v33  ;;  %v854_v50 = vmul.f32 1.442695, %v835_v56 }
 0x221   : > { %v760_v40 = vpop.permute.xlu1 %759 }
 0x222   : > { %1928 = vpow2.f32 %v854_v50  ;;  %v833_v14 = vsub.f32 %v2175_v34, %v760_v40 }
 0x224   : > { %v850_v24 = vmul.f32 1.442695, %v833_v14 }
 0x226   : > { %1930 = vpow2.f32 %v850_v24 }
 0x227   : > { %v785_v10 = vpop.permute.xlu1 %784 }
 0x228   : > { %v838_v28 = vsub.f32 %v2190_v42, %v785_v10 }
 0x22a   : > { %v860_v3 = vmul.f32 1.442695, %v838_v28 }
 0x22b   : > { %v1925_v61 = vpop.eup %1924  ;;  %v775_v6 = vpop.permute.xlu1 %774 }
 0x22c   : > { %1932 = vpow2.f32 %v860_v3  ;;  %v836_v30 = vsub.f32 %v2180_v37, %v775_v6  ;;  %v882_v32 = vsel %vm623_vm2, %v1925_v61, 0.0 }
 0x22d   : > { %v1927_v33 = vpop.eup %1926  ;;  %932 = vadd.xlane.f32.xlu0 %v882_v32 }
 0x22e   : > { %v856_v56 = vmul.f32 1.442695, %v836_v30  ;;  %v880_v34 = vsel %vm623_vm2, %v1927_v33, 0.0 }
 0x22f   : > { %v1929_v14 = vpop.eup %1928  ;;  %928 = vadd.xlane.f32.xlu1 %v880_v34  ;;  %v780_v24 = vpop.permute.xlu1 %779 }
 0x230   : > { %1934 = vpow2.f32 %v856_v56  ;;  %v837_v42 = vsub.f32 %v2195_v44, %v780_v24  ;;  %v883_v37 = vsel %vm623_vm2, %v1929_v14, 0.0  ;;  %v1709_v30 = vpack.c.bf16 %v1929_v14, %v1925_v61 }
 0x231   : > { %v800_v10 = vpop.permute.xlu0 %799  ;;  %v2693_v44 = vsub.f32 %v2280_v1, %v2293_v7  ;;  %v2697_v1 = vsub.f32 %v2337_v29, %v2354_v41  ;;  %v738_v41 = vmul.f32 1.442695, %v2701_v38 }
 0x232   : > { %v858_v40 = vmul.f32 1.442695, %v837_v42  ;;  %v841_v50 = vsub.f32 %v2215_v52, %v800_v10 }
 0x233   : > { %v1931_v6 = vpop.eup %1930  ;;  %934 = vadd.xlane.f32.xlu1 %v883_v37  ;;  %v790_v13 = vpop.permute.xlu1 %789  ;;  %v730_v7 = vmul.f32 1.442695, %v2697_v1  ;;  %v903_v1 = vld [vmem:[#allocation3 + $0x38] sm:$0xff] }
 0x234   : > { %1936 = vpow2.f32 %v858_v40  ;;  %v839_v27 = vsub.f32 %v2185_v39, %v790_v13  ;;  %v881_v8 = vsel %vm623_vm2, %v1931_v6, 0.0  ;;  %v1706_v28 = vpack.c.bf16 %v1931_v6, %v1927_v33 }
 0x235   : > { %v810_v36 = vpop.permute.xlu0 %809  ;;  %930 = vadd.xlane.f32.xlu0 %v881_v8  ;;  %v866_v32 = vmul.f32 1.442695, %v841_v50 }
 0x236   : > { %v862_v3 = vmul.f32 1.442695, %v839_v27  ;;  %v843_v52 = vsub.f32 %v2205_v48, %v810_v36  ;;  %1847 = vmatprep.mubr.msk.bf16.mxu1 %vm2464_vm3, %v1706_v28 }
 0x237   : > { %v795_v39 = vpop.permute.xlu1 %794  ;;  %1848 = vmatmul.mubr.msk.bf16.vlgmr.msra.gmra.mxu1 %vm2464_vm3, %v1709_v30 }
 0x238   : > { %1938 = vpow2.f32 %v862_v3  ;;  %v840_v56 = vsub.f32 %v2200_v46, %v795_v39  ;;  %v870_v42 = vmul.f32 1.442695, %v843_v52 }
 0x239   : > { %v1933_v34 = vpop.eup %1932  ;;  %v820_v24 = vpop.permute.xlu0 %819  ;;  %1940 = vpow2.f32 %v866_v32 }
 0x23a   : > { %v864_v10 = vmul.f32 1.442695, %v840_v56  ;;  %v886_v33 = vsel %vm623_vm2, %v1933_v34, 0.0  ;;  %v845_v48 = vsub.f32 %v2267_v60, %v820_v24 }
 0x23b   : > { %940 = vadd.xlane.f32.xlu0 %v886_v33  ;;  %v805_v61 = vpop.permute.xlu1 %804 }
 0x23c   : > { %1942 = vpow2.f32 %v864_v10  ;;  %v842_v14 = vsub.f32 %v2209_v49, %v805_v61  ;;  %v874_v13 = vmul.f32 1.442695, %v845_v48 }
 0x23d   : > { %v1935_v40 = vpop.eup %1934  ;;  %v830_v37 = vpop.permute.xlu0 %829  ;;  %1944 = vpow2.f32 %v870_v42 }
 0x23e   : > { %v868_v6 = vmul.f32 1.442695, %v842_v14  ;;  %v847_v46 = vsub.f32 %v2257_v57, %v830_v37  ;;  %v884_v50 = vsel %vm623_vm2, %v1935_v40, 0.0 }
 0x23f   : > { %936 = vadd.xlane.f32.xlu0 %v884_v50  ;;  %v815_v27 = vpop.permute.xlu1 %814 }
 0x240   : > { %1946 = vpow2.f32 %v868_v6  ;;  %v844_v60 = vsub.f32 %v2252_v55, %v815_v27  ;;  %v878_v36 = vmul.f32 1.442695, %v847_v46 }
 0x241   : > { %v1937_v8 = vpop.eup %1936  ;;  %1948 = vpow2.f32 %v874_v13 }
 0x242   : > { %v872_v28 = vmul.f32 1.442695, %v844_v60  ;;  %v1712_v3 = vpack.c.bf16 %v1937_v8, %v1935_v40 }
 0x243   : > { %v825_v49 = vpop.permute.xlu1 %824 }
 0x244   : > { %1950 = vpow2.f32 %v872_v28  ;;  %v846_v52 = vsub.f32 %v2261_v58, %v825_v49  ;;  %1851 = vmatprep.mubr.msk.bf16.mxu1 %vm2464_vm3, %v1712_v3  ;;  %v885_v58 = vsel %vm623_vm2, %v1937_v8, 0.0  ;;  %v722_v8 = vmul.f32 1.442695, %v705_v17 }
 0x245   : > { %v1939_v57 = vpop.eup %1938  ;;  %1952 = vpow2.f32 %v878_v36  ;;  %v2692_v3 = vsub.f32 %v2277_v62, %v2283_v2  ;;  %v726_v17 = vmul.f32 1.442695, %v2695_v26  ;;  %v2696_v62 = vsub.f32 %v2328_v23, %v2345_v35 }
 0x246   : > { %v876_v30 = vmul.f32 1.442695, %v846_v52  ;;  %v887_v32 = vsel %vm623_vm2, %v1939_v57, 0.0  ;;  %v1715_v39 = vpack.c.bf16 %v1939_v57, %v1933_v34  ;;  %v1941_v55 = vpop.eup %1940  ;;  %v720_v52 = vmul.f32 1.442695, %v2693_v44 }
 0x247   : > { %942 = vadd.xlane.f32.xlu1 %v887_v32  ;;  %v889_v40 = vsel %vm623_vm2, %v1941_v55, 0.0  ;;  %v724_v49 = vmul.f32 1.442695, %v2692_v3  ;;  %v732_v2 = vmul.f32 1.442695, %v2696_v62  ;;  %v2700_v23 = vsub.f32 %v2367_v54, %v2385_v5 }
 0x248   : > { %1954 = vpow2.f32 %v876_v30  ;;  %1852 = vmatmul.mubr.msk.bf16.gmra.mxu1 %vm2464_vm3, %v1715_v39  ;;  %v2703_v54 = vsub.f32 %v2357_v45, %v2374_v59  ;;  %v2706_v59 = vsub.f32 %v2397_v22, %v2414_v53 }
 0x249   : > { %v1943_v56 = vpop.eup %1942  ;;  %1956 = vpow2.f32 %v722_v8  ;;  %v740_v29 = vmul.f32 1.442695, %v2700_v23 }
 0x24a   : > { %v1718_v24 = vpack.c.bf16 %v1941_v55, %v1943_v56  ;;  %v1945_v42 = vpop.eup %1944  ;;  %v888_v37 = vsel %vm623_vm2, %v1943_v56, 0.0  ;;  %1958 = vpow2.f32 %v724_v49  ;;  %v742_v5 = vmul.f32 1.442695, %v2703_v54 }
 0x24b   : > { %938 = vadd.xlane.f32.xlu1 %v885_v58  ;;  %v891_v34 = vsel %vm623_vm2, %v1945_v42, 0.0  ;;  %1960 = vpow2.f32 %v720_v52  ;;  %v750_v56 = vmul.f32 1.442695, %v2706_v59  ;;  %v900_v52 = vld [vmem:[#allocation3 + $0x20] sm:$0xff] }
 0x24c   : > { %1855 = vmatprep.mubr.msk.bf16.mxu1 %vm2464_vm3, %v1718_v24  ;;  %1962 = vpow2.f32 %v728_v15 }
 0x24d   : > { %v1947_v10 = vpop.eup %1946  ;;  %1964 = vpow2.f32 %v726_v17 }
 0x24e   : > { %v890_v33 = vsel %vm623_vm2, %v1947_v10, 0.0  ;;  %v1721_v48 = vpack.c.bf16 %v1945_v42, %v1947_v10  ;;  %v1949_v61 = vpop.eup %1948  ;;  %1966 = vpow2.f32 %v732_v2  ;;  %v898_v42 = vld [vmem:[#allocation3 + $0x10] sm:$0xff]  ;;  %v896_v10 = vld [vmem:[#allocation3] sm:$0xff] }
 0x24f   : > { %950 = vadd.xlane.f32.xlu1 %v891_v34  ;;  %948 = vadd.xlane.f32.xlu0 %v890_v33  ;;  %v893_v36 = vsel %vm623_vm2, %v1949_v61, 0.0  ;;  %1968 = vpow2.f32 %v730_v7 }
 0x250   : > { %1856 = vmatmul.mubr.msk.bf16.gmra.mxu1 %vm2464_vm3, %v1721_v48  ;;  %1970 = vpow2.f32 %v736_v21 }
 0x251   : > { %v1951_v14 = vpop.eup %1950  ;;  %1972 = vpow2.f32 %v734_v11 }
 0x252   : > { %v1724_v6 = vpack.c.bf16 %v1949_v61, %v1951_v14  ;;  %v1953_v46 = vpop.eup %1952  ;;  %v892_v27 = vsel %vm623_vm2, %v1951_v14, 0.0  ;;  %1974 = vpow2.f32 %v740_v29 }
 0x253   : > { %946 = vadd.xlane.f32.xlu1 %v889_v40  ;;  %944 = vadd.xlane.f32.xlu0 %v888_v37  ;;  %v895_v13 = vsel %vm623_vm2, %v1953_v46, 0.0  ;;  %1976 = vpow2.f32 %v738_v41  ;;  %v899_v40 = vld [vmem:[#allocation3 + $0x18] sm:$0xff] }
 0x254   : > { %1859 = vmatprep.mubr.msk.bf16.mxu1 %vm2464_vm3, %v1724_v6  ;;  %1978 = vpow2.f32 %v744_v25  ;;  %v897_v6 = vld [vmem:[#allocation3 + $0x8] sm:$0xff] }
 0x255   : > { %v1955_v50 = vpop.eup %1954  ;;  %1980 = vpow2.f32 %v742_v5 }
 0x256   : > { %v1727_v60 = vpack.c.bf16 %v1953_v46, %v1955_v50  ;;  %v894_v28 = vsel %vm623_vm2, %v1955_v50, 0.0  ;;  %v2539_v57 = vpop.eup %1956  ;;  %1982 = vpow2.f32 %v748_v18  ;;  %v904_v18 = vld [vmem:[#allocation3 + $0x40] sm:$0xff] }
 0x257   : > { %958 = vadd.xlane.f32.xlu1 %v895_v13  ;;  %952 = vadd.xlane.f32.xlu0 %v892_v27  ;;  %v1959_v35 = vpop.eup %1958  ;;  %1984 = vpow2.f32 %v746_v31  ;;  %v913_v27 = vmul.f32 %v2539_v57, %v897_v6  ;;  %v909_v6 = vld [vmem:[#allocation3 + $0x68] sm:$0xff] }
 0x258   : > { %1860 = vmatmul.mubr.msk.bf16.gmra.mxu1 %vm2464_vm3, %v1727_v60  ;;  %v1961_v51 = vpop.eup %1960  ;;  %1986 = vpow2.f32 %v750_v56  ;;  %v914_v34 = vmul.f32 %v1959_v35, %v898_v42  ;;  %v908_v42 = vld [vmem:[#allocation3 + $0x60] sm:$0xff] }
 0x259   : > { %v2554_v30 = vpop.eup %1962  ;;  %v912_v61 = vmul.f32 %v1961_v51, %v896_v10  ;;  %v911_v10 = vld [vmem:[#allocation3 + $0x78] sm:$0xff] }
 0x25a   : > { %v1965_v32 = vpop.eup %1964  ;;  %v916_v26 = vmul.f32 %v2554_v30, %v900_v52 }
 0x25b   : > { %954 = vadd.xlane.f32.xlu1 %v893_v36  ;;  %956 = vadd.xlane.f32.xlu0 %v894_v28  ;;  %v1967_v39 = vpop.eup %1966  ;;  %v915_v46 = vmul.f32 %v1965_v32, %v899_v40  ;;  %v902_v36 = vld [vmem:[#allocation3 + $0x30] sm:$0xff] }
 0x25c   : > { %v2566_v55 = vpop.eup %1968  ;;  %v918_v49 = vmul.f32 %v1967_v39, %v902_v36 }
 0x25d   : > { %v2569_v45 = vpop.eup %1970 }
 0x25e   : > { %v1973_v43 = vpop.eup %1972  ;;  %v920_v59 = vmul.f32 %v2569_v45, %v904_v18 }
 0x25f   : > { %v2575_v20 = vpop.eup %1974  ;;  %v919_v21 = vmul.f32 %v1973_v43, %v903_v1 }
 0x260   : > { %v2577_v47 = vpop.eup %1976 }
 0x261   : > { %v2581_v0 = vpop.eup %1978 }
 0x262   : > { %v2583_v58 = vpop.eup %1980 }
 0x263   : > { %v2587_v22 = vpop.eup %1982  ;;  %v923_v54 = vmul.f32 %v2583_v58, %v907_v19  ;;  %v994_v19 = vld [vmem:[#allocation4 + $0x8] sm:$0xff] }
 0x264   : > { %v2589_v53 = vpop.eup %1984 }
 0x265   : > { %v2593_v24 = vpop.eup %1986 }
 0x26c   : > { %1016 = vperm.xlu1 %1899, %v2539_v57  }
 0x270   : > { %1021 = vperm.xlu1 %1899, %v1959_v35   ;;  %v917_v35 = vmul.f32 %v2566_v55, %v901_v4  ;;  %v993_v4 = vld [vmem:[#allocation4] sm:$0xff] }
 0x271   : > { %1011 = vperm.xlu0 %1898, %v1961_v51   ;;  %v906_v51 = vld [vmem:[#allocation3 + $0x50] sm:$0xff] }
 0x274   : > { %1031 = vperm.xlu1 %1899, %v2554_v30   ;;  %v922_v30 = vmul.f32 %v2575_v20, %v906_v51 }
 0x275   : > { %1026 = vperm.xlu0 %1898, %v1965_v32  }
 0x278   : > { %1041 = vperm.xlu1 %1899, %v1967_v39   ;;  %v905_v39 = vld [vmem:[#allocation3 + $0x48] sm:$0xff] }
 0x279   : > { %1036 = vperm.xlu0 %1898, %v2566_v55   ;;  %v921_v56 = vmul.f32 %v2577_v47, %v905_v39 }
 0x27c   : > { %1051 = vperm.xlu1 %1899, %v2569_v45   ;;  %v927_v45 = vmul.f32 %v2593_v24, %v911_v10 }
 0x27d   : > { %1046 = vperm.xlu0 %1898, %v1973_v43  }
 0x280   : > { %1061 = vperm.xlu1 %1899, %v2575_v20  }
 0x281   : > { %1056 = vperm.xlu0 %1898, %v2577_v47  }
 0x284   : > { %1071 = vperm.xlu1 %1899, %v2581_v0  }
 0x285   : > { %1066 = vperm.xlu0 %1898, %v2583_v58  }
 0x288   : > { %1081 = vperm.xlu1 %1899, %v2587_v22  }
 0x289   : > { %1076 = vperm.xlu0 %1898, %v2589_v53  }
 0x28d   : > { %1086 = vperm.xlu0 %1898, %v2593_v24  }
 0x2b6   : > { %v933_v33 = vpop.xlane.xlu0 %932 }
 0x2b7   : > { %v962_v48 = vadd.f32 %v933_v33, %v914_v34 }
 0x2b8   : > { %v929_v14 = vpop.xlane.xlu1 %928 }
 0x2b9   : > { %979 = vst.msk [vmem:[#allocation3 + $0x10] sm:$0xff] %vm294_vm1, %v962_v48  ;;  %v960_v37 = vadd.f32 %v929_v14, %v912_v61  ;;  %v924_v61 = vmul.f32 %v2581_v0, %v908_v42  ;;  %v925_v0 = vmul.f32 %v2589_v53, %v909_v6  ;;  %v997_v42 = vld [vmem:[#allocation4 + $0x20] sm:$0xff] }
 0x2bb   : > { %977 = vst.msk [vmem:[#allocation3] sm:$0xff] %vm294_vm1, %v960_v37  ;;  %v910_v37 = vld [vmem:[#allocation3 + $0x70] sm:$0xff] }
 0x2bc   : > { %v935_v50 = vpop.xlane.xlu1 %934 }
 0x2bd   : > { %v963_v13 = vadd.f32 %v935_v50, %v915_v46 }
 0x2be   : > { %v931_v60 = vpop.xlane.xlu0 %930 }
 0x2bf   : > { %980 = vst.msk [vmem:[#allocation3 + $0x18] sm:$0xff] %vm294_vm1, %v963_v13  ;;  %v961_v8 = vadd.f32 %v931_v60, %v913_v27  ;;  %v926_v60 = vmul.f32 %v2587_v22, %v910_v37 }
 0x2c0   : > { %v1311_v28 = vld [vmem:[#allocation3 + $0x10] sm:$0xff] }
 0x2c1   : > { %978 = vst.msk [vmem:[#allocation3 + $0x8] sm:$0xff] %vm294_vm1, %v961_v8  ;;  %1988 = vrcp.f32 %v1311_v28 }
 0x2c2   : > { %v1309_v3 = vld [vmem:[#allocation3] sm:$0xff] }
 0x2c3   : > { %1990 = vrcp.f32 %v1309_v3 }
 0x2c4   : > { %v941_v44 = vpop.xlane.xlu0 %940 }
 0x2c5   : > { %v966_v9 = vadd.f32 %v941_v44, %v918_v49 }
 0x2c6   : > { %v1312_v15 = vld [vmem:[#allocation3 + $0x18] sm:$0xff] }
 0x2c7   : > { %983 = vst.msk [vmem:[#allocation3 + $0x30] sm:$0xff] %vm294_vm1, %v966_v9  ;;  %1992 = vrcp.f32 %v1312_v15 }
 0x2c8   : > { %v937_v17 = vpop.xlane.xlu0 %936  ;;  %v1310_v62 = vld [vmem:[#allocation3 + $0x8] sm:$0xff] }
 0x2c9   : > { %v964_v2 = vadd.f32 %v937_v17, %v916_v26  ;;  %1994 = vrcp.f32 %v1310_v62 }
 0x2cb   : > { %981 = vst.msk [vmem:[#allocation3 + $0x20] sm:$0xff] %vm294_vm1, %v964_v2 }
 0x2ce   : > { %v1989_v7 = vpop.eup %1988  ;;  %v1315_v16 = vld [vmem:[#allocation3 + $0x30] sm:$0xff] }
 0x2cf   : > { %1369 = vperm.xlu1 %1899, %v1989_v7   ;;  %1996 = vrcp.f32 %v1315_v16  ;;  %v995_v16 = vld [vmem:[#allocation4 + $0x10] sm:$0xff] }
 0x2d0   : > { %v943_v57 = vpop.xlane.xlu1 %942  ;;  %v1991_v23 = vpop.eup %1990 }
 0x2d1   : > { %v967_v11 = vadd.f32 %v943_v57, %v919_v21 }
 0x2d2   : > { %v1313_v29 = vld [vmem:[#allocation3 + $0x20] sm:$0xff] }
 0x2d3   : > { %984 = vst.msk [vmem:[#allocation3 + $0x38] sm:$0xff] %vm294_vm1, %v967_v11  ;;  %1359 = vperm.xlu1 %1899, %v1991_v23   ;;  %1998 = vrcp.f32 %v1313_v29 }
 0x2d4   : > { %v1993_v38 = vpop.eup %1992  ;;  %v939_v41 = vpop.xlane.xlu1 %938 }
 0x2d5   : > { %v965_v25 = vadd.f32 %v939_v41, %v917_v35  ;;  %1374 = vperm.xlu0 %1898, %v1993_v38   ;;  %v996_v35 = vld [vmem:[#allocation4 + $0x18] sm:$0xff] }
 0x2d6   : > { %v1995_v5 = vpop.eup %1994 }
 0x2d7   : > { %982 = vst.msk [vmem:[#allocation3 + $0x28] sm:$0xff] %vm294_vm1, %v965_v25 }
 0x2d8   : > { %v949_v32 = vpop.xlane.xlu0 %948  ;;  %v951_v63 = vpop.xlane.xlu1 %950 }
 0x2d9   : > { %v970_v12 = vadd.f32 %v949_v32, %v922_v30  ;;  %v971_v31 = vadd.f32 %v951_v63, %v923_v54  ;;  %1364 = vperm.xlu0 %1898, %v1995_v5  }
 0x2da   : > { %v1316_v55 = vld [vmem:[#allocation3 + $0x38] sm:$0xff] }
 0x2db   : > { %987 = vst.msk [vmem:[#allocation3 + $0x50] sm:$0xff] %vm294_vm1, %v970_v12  ;;  %988 = vst.msk [vmem:[#allocation3 + $0x58] sm:$0xff] %vm294_vm1, %v971_v31  ;;  %2000 = vrcp.f32 %v1316_v55 }
 0x2dc   : > { %v1997_v43 = vpop.eup %1996  ;;  %v945_v20 = vpop.xlane.xlu0 %944 }
 0x2dd   : > { %v947_v58 = vpop.xlane.xlu1 %946  ;;  %v968_v34 = vadd.f32 %v945_v20, %v920_v59  ;;  %1389 = vperm.xlu1 %1899, %v1997_v43  }
 0x2de   : > { %v969_v33 = vadd.f32 %v947_v58, %v921_v56  ;;  %v1314_v48 = vld [vmem:[#allocation3 + $0x28] sm:$0xff]  ;;  %v999_v58 = vld [vmem:[#allocation4 + $0x30] sm:$0xff] }
 0x2df   : > { %985 = vst.msk [vmem:[#allocation3 + $0x40] sm:$0xff] %vm294_vm1, %v968_v34  ;;  %2002 = vrcp.f32 %v1314_v48 }
 0x2e0   : > { %986 = vst.msk [vmem:[#allocation3 + $0x48] sm:$0xff] %vm294_vm1, %v969_v33  ;;  %v1999_v47 = vpop.eup %1998  ;;  %v953_v14 = vpop.xlane.xlu0 %952  ;;  %v1000_v33 = vld [vmem:[#allocation4 + $0x38] sm:$0xff] }
 0x2e1   : > { %v959_v40 = vpop.xlane.xlu1 %958  ;;  %v972_v46 = vadd.f32 %v953_v14, %v924_v61  ;;  %1379 = vperm.xlu1 %1899, %v1999_v47   ;;  %v998_v14 = vld [vmem:[#allocation4 + $0x28] sm:$0xff] }
 0x2e2   : > { %v975_v50 = vadd.f32 %v959_v40, %v927_v45  ;;  %v1319_v13 = vld [vmem:[#allocation3 + $0x50] sm:$0xff]  ;;  %v1320_v27 = vld [vmem:[#allocation3 + $0x58] sm:$0xff] }
 0x2e3   : > { %989 = vst.msk [vmem:[#allocation3 + $0x60] sm:$0xff] %vm294_vm1, %v972_v46  ;;  %2004 = vrcp.f32 %v1319_v13  ;;  %v1003_v46 = vld [vmem:[#allocation4 + $0x50] sm:$0xff] }
 0x2e4   : > { %992 = vst.msk [vmem:[#allocation3 + $0x78] sm:$0xff] %vm294_vm1, %v975_v50  ;;  %v957_v24 = vpop.xlane.xlu0 %956  ;;  %2006 = vrcp.f32 %v1320_v27 }
 0x2e5   : > { %v955_v8 = vpop.xlane.xlu1 %954  ;;  %v974_v36 = vadd.f32 %v957_v24, %v926_v60 }
 0x2e6   : > { %v973_v28 = vadd.f32 %v955_v8, %v925_v0  ;;  %v1317_v3 = vld [vmem:[#allocation3 + $0x40] sm:$0xff] }
 0x2e7   : > { %v1318_v49 = vld [vmem:[#allocation3 + $0x48] sm:$0xff]  ;;  %991 = vst.msk [vmem:[#allocation3 + $0x70] sm:$0xff] %vm294_vm1, %v974_v36  ;;  %2008 = vrcp.f32 %v1317_v3  ;;  %v1001_v0 = vld [vmem:[#allocation4 + $0x40] sm:$0xff]  ;;  %v1004_v3 = vld [vmem:[#allocation4 + $0x58] sm:$0xff] }
 0x2e8   : > { %990 = vst.msk [vmem:[#allocation3 + $0x68] sm:$0xff] %vm294_vm1, %v973_v28  ;;  %v2001_v44 = vpop.eup %2000  ;;  %2010 = vrcp.f32 %v1318_v49 }
 0x2e9   : > { %1394 = vperm.xlu0 %1898, %v2001_v44   ;;  %v1017_v52 = vpop.permute.xlu1 %1016 }
 0x2ea   : > { %v1321_v22 = vld [vmem:[#allocation3 + $0x60] sm:$0xff]  ;;  %v1090_v12 = vmul.f32 %v1017_v52, %v994_v19 }
 0x2eb   : > { %2012 = vrcp.f32 %v1321_v22  ;;  %v1324_v1 = vld [vmem:[#allocation3 + $0x78] sm:$0xff]  ;;  %v1002_v22 = vld [vmem:[#allocation4 + $0x48] sm:$0xff] }
 0x2ec   : > { %v2003_v53 = vpop.eup %2002  ;;  %v1012_v9 = vpop.permute.xlu0 %1011 }
 0x2ed   : > { %1384 = vperm.xlu0 %1898, %v2003_v53   ;;  %v1022_v62 = vpop.permute.xlu1 %1021  ;;  %v1089_v41 = vmul.f32 %v1012_v9, %v993_v4 }
 0x2ee   : > { %v1323_v15 = vld [vmem:[#allocation3 + $0x70] sm:$0xff]  ;;  %v1091_v23 = vmul.f32 %v1022_v62, %v995_v16  ;;  %v1005_v16 = vld [vmem:[#allocation4 + $0x60] sm:$0xff] }
 0x2ef   : > { %v1322_v26 = vld [vmem:[#allocation3 + $0x68] sm:$0xff]  ;;  %2014 = vrcp.f32 %v1323_v15 }
 0x2f0   : > { %v2005_v17 = vpop.eup %2004  ;;  %2016 = vrcp.f32 %v1322_v26  ;;  %v1027_v21 = vpop.permute.xlu0 %1026 }
 0x2f1   : > { %v2007_v2 = vpop.eup %2006  ;;  %1409 = vperm.xlu1 %1899, %v2005_v17   ;;  %2018 = vrcp.f32 %v1324_v1  ;;  %v1032_v11 = vpop.permute.xlu1 %1031  ;;  %v1092_v54 = vmul.f32 %v1027_v21, %v996_v35  ;;  %v1007_v17 = vld [vmem:[#allocation4 + $0x70] sm:$0xff] }
 0x2f2   : > { %1414 = vperm.xlu0 %1898, %v2007_v2   ;;  %v1093_v45 = vmul.f32 %v1032_v11, %v997_v42  ;;  %v1008_v11 = vld [vmem:[#allocation4 + $0x78] sm:$0xff] }
 0x2f4   : > { %v2009_v7 = vpop.eup %2008  ;;  %v1037_v25 = vpop.permute.xlu0 %1036 }
 0x2f5   : > { %v2011_v57 = vpop.eup %2010  ;;  %1399 = vperm.xlu1 %1899, %v2009_v7   ;;  %v1042_v63 = vpop.permute.xlu1 %1041  ;;  %v1094_v27 = vmul.f32 %v1037_v25, %v998_v14 }
 0x2f6   : > { %1404 = vperm.xlu0 %1898, %v2011_v57   ;;  %v1095_v34 = vmul.f32 %v1042_v63, %v999_v58 }
 0x2f7   : > { %v1849_v38 = vpop.f32.mrf.mxu1 }
 0x2f8   : > { %v2013_v29 = vpop.eup %2012  ;;  %v1260_v51 = vadd.f32 %v1849_v38, %v1091_v23  ;;  %v1047_v56 = vpop.permute.xlu0 %1046 }
 0x2f9   : > { %1419 = vperm.xlu1 %1899, %v2013_v29   ;;  %v1195_v30 = vpop.f32.mrf.mxu1  ;;  %v1052_v20 = vpop.permute.xlu1 %1051  ;;  %v1096_v37 = vmul.f32 %v1047_v56, %v1000_v33 }
 0x2fa   : > { %1276 = vst.msk [vmem:[#allocation4 + $0x10] sm:$0xff] %vm327_vm0, %v1260_v51  ;;  %v1258_v5 = vadd.f32 %v1195_v30, %v1089_v41  ;;  %v1097_v44 = vmul.f32 %v1052_v20, %v1001_v0  ;;  %v1006_v41 = vld [vmem:[#allocation4 + $0x68] sm:$0xff] }
 0x2fb   : > { %v1850_v18 = vpop.f32.mrf.mxu1 }
 0x2fc   : > { %v2015_v32 = vpop.eup %2014  ;;  %1274 = vst.msk [vmem:[#allocation4] sm:$0xff] %vm327_vm0, %v1258_v5  ;;  %v1261_v31 = vadd.f32 %v1850_v18, %v1092_v54  ;;  %v1057_v10 = vpop.permute.xlu0 %1056 }
 0x2fd   : > { %v2017_v39 = vpop.eup %2016  ;;  %1429 = vperm.xlu1 %1899, %v2015_v32   ;;  %v1198_v55 = vpop.f32.mrf.mxu1  ;;  %v1098_v1 = vmul.f32 %v1057_v10, %v1002_v22 }
 0x2fe   : > { %1424 = vperm.xlu0 %1898, %v2017_v39   ;;  %1277 = vst.msk [vmem:[#allocation4 + $0x18] sm:$0xff] %vm327_vm0, %v1261_v31  ;;  %v1259_v59 = vadd.f32 %v1198_v55, %v1090_v12  ;;  %v2019_v43 = vpop.eup %2018  ;;  %v1062_v48 = vpop.permute.xlu1 %1061 }
 0x2ff   : > { %v1099_v36 = vmul.f32 %v1062_v48, %v1003_v46 }
 0x300   : > { %1275 = vst.msk [vmem:[#allocation4 + $0x8] sm:$0xff] %vm327_vm0, %v1259_v59  ;;  %v1067_v50 = vpop.permute.xlu0 %1066 }
 0x301   : > { %v1100_v15 = vmul.f32 %v1067_v50, %v1004_v3  ;;  %v1343_v18 = vld [vmem:[#allocation4 + $0x10] sm:$0xff] }
 0x302   : > { %1434 = vperm.xlu0 %1898, %v2019_v43   ;;  %v1072_v24 = vpop.permute.xlu1 %1071 }
 0x303   : > { %v1101_v35 = vmul.f32 %v1072_v24, %v1005_v16  ;;  %v1341_v55 = vld [vmem:[#allocation4] sm:$0xff] }
 0x304   : > { %v1077_v53 = vpop.permute.xlu0 %1076 }
 0x305   : > { %v1102_v54 = vmul.f32 %v1077_v53, %v1006_v41  ;;  %v1344_v43 = vld [vmem:[#allocation4 + $0x18] sm:$0xff] }
 0x306   : > { %v1082_v62 = vpop.permute.xlu1 %1081 }
 0x307   : > { %v1103_v57 = vmul.f32 %v1082_v62, %v1007_v17  ;;  %v1342_v33 = vld [vmem:[#allocation4 + $0x8] sm:$0xff] }
 0x308   : > { %v1853_v61 = vpop.f32.mrf.mxu1  ;;  %v1087_v23 = vpop.permute.xlu0 %1086 }
 0x309   : > { %v1264_v47 = vadd.f32 %v1853_v61, %v1095_v34  ;;  %v1104_v19 = vmul.f32 %v1087_v23, %v1008_v11 }
 0x30a   : > { %v1211_v40 = vpop.f32.mrf.mxu1 }
 0x30b   : > { %1280 = vst.msk [vmem:[#allocation4 + $0x30] sm:$0xff] %vm327_vm0, %v1264_v47  ;;  %v1262_v6 = vadd.f32 %v1211_v40, %v1093_v45 }
 0x30c   : > { %v1854_v13 = vpop.f32.mrf.mxu1 }
 0x30d   : > { %1278 = vst.msk [vmem:[#allocation4 + $0x20] sm:$0xff] %vm327_vm0, %v1262_v6  ;;  %v1265_v60 = vadd.f32 %v1854_v13, %v1096_v37 }
 0x30e   : > { %v1214_v8 = vpop.f32.mrf.mxu1 }
 0x30f   : > { %1281 = vst.msk [vmem:[#allocation4 + $0x38] sm:$0xff] %vm327_vm0, %v1265_v60  ;;  %v1263_v28 = vadd.f32 %v1214_v8, %v1094_v27 }
 0x310   : > { %v1857_v49 = vpop.f32.mrf.mxu1 }
 0x311   : > { %1279 = vst.msk [vmem:[#allocation4 + $0x28] sm:$0xff] %vm327_vm0, %v1263_v28  ;;  %v1268_v52 = vadd.f32 %v1857_v49, %v1099_v36 }
 0x312   : > { %v1227_v9 = vpop.f32.mrf.mxu1  ;;  %v1347_v45 = vld [vmem:[#allocation4 + $0x30] sm:$0xff] }
 0x313   : > { %1284 = vst.msk [vmem:[#allocation4 + $0x50] sm:$0xff] %vm327_vm0, %v1268_v52  ;;  %v1266_v26 = vadd.f32 %v1227_v9, %v1097_v44 }
 0x314   : > { %v1858_v2 = vpop.f32.mrf.mxu1  ;;  %v1345_v37 = vld [vmem:[#allocation4 + $0x20] sm:$0xff] }
 0x315   : > { %1282 = vst.msk [vmem:[#allocation4 + $0x40] sm:$0xff] %vm327_vm0, %v1266_v26  ;;  %v1269_v7 = vadd.f32 %v1858_v2, %v1100_v15 }
 0x316   : > { %v1230_v21 = vpop.f32.mrf.mxu1  ;;  %v1348_v13 = vld [vmem:[#allocation4 + $0x38] sm:$0xff] }
 0x317   : > { %1285 = vst.msk [vmem:[#allocation4 + $0x58] sm:$0xff] %vm327_vm0, %v1269_v7  ;;  %v1267_v4 = vadd.f32 %v1230_v21, %v1098_v1 }
 0x318   : > { %v1861_v29 = vpop.f32.mrf.mxu1  ;;  %v1346_v24 = vld [vmem:[#allocation4 + $0x28] sm:$0xff] }
 0x319   : > { %1283 = vst.msk [vmem:[#allocation4 + $0x48] sm:$0xff] %vm327_vm0, %v1267_v4  ;;  %v1272_v38 = vadd.f32 %v1861_v29, %v1103_v57 }
 0x31a   : > { %v1243_v51 = vpop.f32.mrf.mxu1  ;;  %v1351_v3 = vld [vmem:[#allocation4 + $0x50] sm:$0xff] }
 0x31b   : > { %1288 = vst.msk [vmem:[#allocation4 + $0x70] sm:$0xff] %vm327_vm0, %v1272_v38  ;;  %v1270_v25 = vadd.f32 %v1243_v51, %v1101_v35 }
 0x31c   : > { %v1862_v30 = vpop.f32.mrf.mxu1  ;;  %v1349_v26 = vld [vmem:[#allocation4 + $0x40] sm:$0xff] }
 0x31d   : > { %1286 = vst.msk [vmem:[#allocation4 + $0x60] sm:$0xff] %vm327_vm0, %v1270_v25  ;;  %v1273_v5 = vadd.f32 %v1862_v30, %v1104_v19 }
 0x31e   : > { %v1246_v32 = vpop.f32.mrf.mxu1  ;;  %v1352_v44 = vld [vmem:[#allocation4 + $0x58] sm:$0xff] }
 0x31f   : > { %1289 = vst.msk [vmem:[#allocation4 + $0x78] sm:$0xff] %vm327_vm0, %v1273_v5  ;;  %v1271_v63 = vadd.f32 %v1246_v32, %v1102_v54 }
 0x320   : > { %v1350_v62 = vld [vmem:[#allocation4 + $0x48] sm:$0xff] }
 0x321   : > { %1287 = vst.msk [vmem:[#allocation4 + $0x68] sm:$0xff] %vm327_vm0, %v1271_v63 }
 0x322   : > { %v1355_v29 = vld [vmem:[#allocation4 + $0x70] sm:$0xff] }
 0x324   : > { %v1353_v57 = vld [vmem:[#allocation4 + $0x60] sm:$0xff] }
 0x326   : > { %v1356_v54 = vld [vmem:[#allocation4 + $0x78] sm:$0xff] }
 0x328   : > { %v1354_v38 = vld [vmem:[#allocation4 + $0x68] sm:$0xff] }
 0x34a   : > { %v1370_v39 = vpop.permute.xlu1 %1369 }
 0x34b   : > { %v1439_v12 = vmul.f32 %v1370_v39, %v1343_v18 }
 0x34d   : > { %v1753_v31 = vpack.c.bf16 %v1439_v12, %v1439_v12 }
 0x34e   : > { %v1360_v59 = vpop.permute.xlu1 %1359 }
 0x34f   : > { %1520 = vst.msk [vmem:[%s2643_s28 + $0x8] sm:$0xf] %vm1517_vm4, %v1753_v31  ;;  %v1437_v56 = vmul.f32 %v1360_v59, %v1341_v55 }
 0x350   : > { %v1375_v20 = vpop.permute.xlu0 %1374 }
 0x351   : > { %v1751_v58 = vpack.c.bf16 %v1437_v56, %v1437_v56  ;;  %v1440_v42 = vmul.f32 %v1375_v20, %v1344_v43 }
 0x353   : > { %1518 = vst.msk [vmem:[%s2643_s28] sm:$0xf] %vm1517_vm4, %v1751_v58  ;;  %v1754_v10 = vpack.c.bf16 %v1440_v42, %v1440_v42 }
 0x354   : > { %v1365_v34 = vpop.permute.xlu0 %1364 }
 0x355   : > { %1521 = vst.msk [vmem:[%s2643_s28 + $0xc] sm:$0xf] %vm1517_vm4, %v1754_v10  ;;  %v1438_v48 = vmul.f32 %v1365_v34, %v1342_v33 }
 0x357   : > { %v1752_v61 = vpack.c.bf16 %v1438_v48, %v1438_v48 }
 0x358   : > { %v1390_v47 = vpop.permute.xlu1 %1389 }
 0x359   : > { %1519 = vst.msk [vmem:[%s2643_s28 + $0x4] sm:$0xf] %vm1517_vm4, %v1752_v61  ;;  %v1443_v14 = vmul.f32 %v1390_v47, %v1347_v45 }
 0x35b   : > { %v1757_v40 = vpack.c.bf16 %v1443_v14, %v1443_v14 }
 0x35c   : > { %v1380_v6 = vpop.permute.xlu1 %1379 }
 0x35d   : > { %1524 = vst.msk [vmem:[%s2643_s28 + $0x18] sm:$0xf] %vm1517_vm4, %v1757_v40  ;;  %v1441_v46 = vmul.f32 %v1380_v6, %v1345_v37 }
 0x35f   : > { %v1755_v50 = vpack.c.bf16 %v1441_v46, %v1441_v46 }
 0x361   : > { %1522 = vst.msk [vmem:[%s2643_s28 + $0x10] sm:$0xf] %vm1517_vm4, %v1755_v50 }
 0x364   : > { %v1395_v27 = vpop.permute.xlu0 %1394 }
 0x365   : > { %v1444_v60 = vmul.f32 %v1395_v27, %v1348_v13 }
 0x367   : > { %v1758_v0 = vpack.c.bf16 %v1444_v60, %v1444_v60 }
 0x368   : > { %v1385_v8 = vpop.permute.xlu0 %1384 }
 0x369   : > { %1525 = vst.msk [vmem:[%s2643_s28 + $0x1c] sm:$0xf] %vm1517_vm4, %v1758_v0  ;;  %v1442_v36 = vmul.f32 %v1385_v8, %v1346_v24 }
 0x36b   : > { %v1756_v28 = vpack.c.bf16 %v1442_v36, %v1442_v36 }
 0x36c   : > { %v1410_v49 = vpop.permute.xlu1 %1409 }
 0x36d   : > { %1523 = vst.msk [vmem:[%s2643_s28 + $0x14] sm:$0xf] %vm1517_vm4, %v1756_v28  ;;  %v1415_v52 = vpop.permute.xlu0 %1414  ;;  %v1447_v22 = vmul.f32 %v1410_v49, %v1351_v3 }
 0x36e   : > { %v1448_v53 = vmul.f32 %v1415_v52, %v1352_v44 }
 0x36f   : > { %v1761_v9 = vpack.c.bf16 %v1447_v22, %v1447_v22 }
 0x370   : > { %v1762_v15 = vpack.c.bf16 %v1448_v53, %v1448_v53  ;;  %v1400_v17 = vpop.permute.xlu1 %1399 }
 0x371   : > { %1528 = vst.msk [vmem:[%s2643_s28 + $0x28] sm:$0xf] %vm1517_vm4, %v1761_v9  ;;  %v1405_v2 = vpop.permute.xlu0 %1404  ;;  %v1445_v1 = vmul.f32 %v1400_v17, %v1349_v26 }
 0x372   : > { %1529 = vst.msk [vmem:[%s2643_s28 + $0x2c] sm:$0xf] %vm1517_vm4, %v1762_v15  ;;  %v1446_v7 = vmul.f32 %v1405_v2, %v1350_v62 }
 0x373   : > { %v1759_v16 = vpack.c.bf16 %v1445_v1, %v1445_v1 }
 0x374   : > { %v1760_v21 = vpack.c.bf16 %v1446_v7, %v1446_v7  ;;  %v1420_v4 = vpop.permute.xlu1 %1419 }
 0x375   : > { %1526 = vst.msk [vmem:[%s2643_s28 + $0x20] sm:$0xf] %vm1517_vm4, %v1759_v16  ;;  %v1449_v11 = vmul.f32 %v1420_v4, %v1353_v57 }
 0x376   : > { %1527 = vst.msk [vmem:[%s2643_s28 + $0x24] sm:$0xf] %vm1517_vm4, %v1760_v21 }
 0x377   : > { %v1763_v23 = vpack.c.bf16 %v1449_v11, %v1449_v11 }
 0x378   : > { %v1430_v35 = vpop.permute.xlu1 %1429 }
 0x379   : > { %1530 = vst.msk [vmem:[%s2643_s28 + $0x30] sm:$0xf] %vm1517_vm4, %v1763_v23  ;;  %v1425_v41 = vpop.permute.xlu0 %1424  ;;  %v1451_v51 = vmul.f32 %v1430_v35, %v1355_v29 }
 0x37a   : > { %v1450_v19 = vmul.f32 %v1425_v41, %v1354_v38 }
 0x37b   : > { %v1765_v25 = vpack.c.bf16 %v1451_v51, %v1451_v51 }
 0x37c   : > { %v1764_v30 = vpack.c.bf16 %v1450_v19, %v1450_v19 }
 0x37d   : > { %1532 = vst.msk [vmem:[%s2643_s28 + $0x38] sm:$0xf] %vm1517_vm4, %v1765_v25  ;;  %v1435_v5 = vpop.permute.xlu0 %1434 }
 0x37e   : > { %1531 = vst.msk [vmem:[%s2643_s28 + $0x34] sm:$0xf] %vm1517_vm4, %v1764_v30  ;;  %v1452_v32 = vmul.f32 %v1435_v5, %v1356_v54 }
 0x380   : > { %v1766_v63 = vpack.c.bf16 %v1452_v32, %v1452_v32 }
 0x382   : > { %1533 = vst.msk [vmem:[%s2643_s28 + $0x3c] sm:$0xf] %vm1517_vm4, %v1766_v63 }
 0x383 PF: > { %s13_s14 = sadd.s32 1, %s2042_s14   ;;  %s2707_s12 = smov %s2038_s13 }
 0x384   : > { %p10_p5 = scmp.ge.s32.totalorder %s13_s14, 10   ;;  %s2708_s13 = smov %s2710_s15 }
 0x386   :  { %12 = sbr.rel (!%p10_p5) target bundleno = 2 (0x2), region = 76 }

// kernel: _lambda_.18
= control target key start
LH: loop header
LB: loop body
LE: loop exit
PB: predicated region body
PF: predicated region fallthrough
CT: control target
= control target key end

     0   :  { %s1442_s1 = inlined_call_operand.vmem [shape: bf16[128,128], index: 1, kind: input, shape index: {}]   ;;  %s1443_s0 = inlined_call_operand.vmem [shape: bf16[256,128], index: 0, kind: input, shape index: {}]   ;;  %s1444_s2 = inlined_call_operand.vmem [shape: f32[1,128], index: 2, kind: input, shape index: {}]   ;;  %s1445_s3 = inlined_call_operand.vmem [shape: bf16[256,128], index: 3, kind: input, shape index: {}]   ;;  %s1446_s4 = inlined_call_operand.vmem [shape: bf16[256,128], index: 4, kind: output, shape index: {}]  }
   0x1   :  { %v1188_v0 = vld [vmem:[%s1442_s1 + $0x38] sm:$0xff]   ;;  %v1189_v1 = vld [vmem:[%s1442_s1 + $0x30] sm:$0xff]   ;;  %v1190_v2 = vld [vmem:[%s1442_s1 + $0x28] sm:$0xff]  }
   0x2   :  { %1124 = vmatprep.subr.bf16.mxu0 %v1188_v0  ;;  %1172 = vmatprep.subr.bf16.mxu1 %v1188_v0  ;;  %v1191_v3 = vld [vmem:[%s1442_s1 + $0x20] sm:$0xff]   ;;  %v1192_v6 = vld [vmem:[%s1442_s1 + $0x18] sm:$0xff]   ;;  %v1193_v7 = vld [vmem:[%s1442_s1 + $0x10] sm:$0xff]  }
   0x3   :  { %1125 = vmatpush3.bf16.msra.mxu0 %v1188_v0  ;;  %1180 = vmatpush3.bf16.msra.mxu1 %v1188_v0  ;;  %v1196_v4 = vld [vmem:[%s1443_s0] sm:$0xff]   ;;  %v1194_v8 = vld [vmem:[%s1442_s1 + $0x8] sm:$0xff]   ;;  %v1200_v12 = vld [vmem:[%s1443_s0 + $0x10] sm:$0xff]  }
   0x4   :  { %1126 = vmatprep.subr.bf16.mxu0 %v1189_v1  ;;  %1173 = vmatprep.subr.bf16.mxu1 %v1189_v1  ;;  %v1197_v5 = vld [vmem:[%s1443_s0 + $0x40] sm:$0xff]   ;;  %v1198_v10 = vld [vmem:[%s1443_s0 + $0x8] sm:$0xff]   ;;  %v1201_v13 = vld [vmem:[%s1443_s0 + $0x50] sm:$0xff]  }
   0x5   :  { %1140 = vmatprep.mubr.bf16.mxu0 %v1196_v4  ;;  %1156 = vmatprep.mubr.bf16.mxu1 %v1197_v5  ;;  %v1195_v9 = vld [vmem:[%s1442_s1] sm:$0xff]   ;;  %v1199_v11 = vld [vmem:[%s1443_s0 + $0x48] sm:$0xff]   ;;  %v1202_v14 = vld [vmem:[%s1443_s0 + $0x18] sm:$0xff]  }
   0x6   :  { %v1203_v15 = vld [vmem:[%s1443_s0 + $0x58] sm:$0xff]   ;;  %v1204_v16 = vld [vmem:[%s1443_s0 + $0x20] sm:$0xff]   ;;  %v1206_v18 = vld [vmem:[%s1443_s0 + $0x28] sm:$0xff]  }
   0x7   :  { %1127 = vmatpush3.bf16.msra.mxu0 %v1189_v1  ;;  %1181 = vmatpush3.bf16.msra.mxu1 %v1189_v1  ;;  %v1205_v17 = vld [vmem:[%s1443_s0 + $0x60] sm:$0xff]   ;;  %v1207_v19 = vld [vmem:[%s1443_s0 + $0x68] sm:$0xff]   ;;  %v1208_v20 = vld [vmem:[%s1443_s0 + $0x30] sm:$0xff]  }
   0x8   :  { %1128 = vmatprep.subr.bf16.mxu0 %v1190_v2  ;;  %1174 = vmatprep.subr.bf16.mxu1 %v1190_v2  ;;  %v1209_v21 = vld [vmem:[%s1443_s0 + $0x70] sm:$0xff]   ;;  %v1210_v22 = vld [vmem:[%s1443_s0 + $0x38] sm:$0xff]   ;;  %v1312_v24 = vld [vmem:[%s1444_s2] ss:$0 sm:$0xff] }
   0x9   :  { %v1211_v23 = vld [vmem:[%s1443_s0 + $0x78] sm:$0xff]   ;;  %v1070_v25 = vld [vmem:[%s1445_s3 + $0x8] sm:$0xff]   ;;  %v927_v29 = vld [vmem:[%s1445_s3] sm:$0xff]  }
   0xa   :  { %v1078_v26 = vld [vmem:[%s1445_s3 + $0x48] sm:$0xff]   ;;  %v1077_v30 = vld [vmem:[%s1445_s3 + $0x40] sm:$0xff]   ;;  %v932_v32 = vunpack.c.l.bf16 %v1070_v25  ;;  %v933_v37 = vunpack.c.h.bf16 %v1070_v25  ;;  %v928_v40 = vunpack.c.l.bf16 %v927_v29  ;;  %v929_v47 = vunpack.c.h.bf16 %v927_v29  ;;  %v1072_v57 = vld [vmem:[%s1445_s3 + $0x18] sm:$0xff]  }
   0xb   :  { %1129 = vmatpush3.bf16.msra.mxu0 %v1190_v2  ;;  %1182 = vmatpush3.bf16.msra.mxu1 %v1190_v2  ;;  %v964_v34 = vunpack.c.l.bf16 %v1078_v26  ;;  %v965_v38 = vunpack.c.h.bf16 %v1078_v26  ;;  %v960_v42 = vunpack.c.l.bf16 %v1077_v30  ;;  %v961_v48 = vunpack.c.h.bf16 %v1077_v30  ;;  %v1080_v58 = vld [vmem:[%s1445_s3 + $0x58] sm:$0xff]   ;;  %v1079_v4 = vld [vmem:[%s1445_s3 + $0x50] sm:$0xff]  }
   0xc   :  { %1130 = vmatprep.subr.bf16.mxu0 %v1191_v3  ;;  %1175 = vmatprep.subr.bf16.mxu1 %v1191_v3  ;;  %v969_v25 = vunpack.c.h.bf16 %v1079_v4 }
   0xf   :  { %1131 = vmatpush3.bf16.msra.mxu0 %v1191_v3  ;;  %1183 = vmatpush3.bf16.msra.mxu1 %v1191_v3  ;;  %v1071_v3 = vld [vmem:[%s1445_s3 + $0x10] sm:$0xff]  }
  0x10   :  { %1132 = vmatprep.subr.bf16.mxu0 %v1192_v6  ;;  %1176 = vmatprep.subr.bf16.mxu1 %v1192_v6 }
  0x13   :  { %1133 = vmatpush3.bf16.msra.mxu0 %v1192_v6  ;;  %1184 = vmatpush3.bf16.msra.mxu1 %v1192_v6  ;;  %v940_v6 = vunpack.c.l.bf16 %v1072_v57 }
  0x14   :  { %1134 = vmatprep.subr.bf16.mxu0 %v1193_v7  ;;  %1177 = vmatprep.subr.bf16.mxu1 %v1193_v7 }
  0x17   :  { %1135 = vmatpush3.bf16.msra.mxu0 %v1193_v7  ;;  %1185 = vmatpush3.bf16.msra.mxu1 %v1193_v7 }
  0x18   :  { %1136 = vmatprep.subr.bf16.mxu0 %v1194_v8  ;;  %1178 = vmatprep.subr.bf16.mxu1 %v1194_v8 }
  0x1b   :  { %1137 = vmatpush3.bf16.msra.mxu0 %v1194_v8  ;;  %1186 = vmatpush3.bf16.msra.mxu1 %v1194_v8  ;;  %v972_v8 = vunpack.c.l.bf16 %v1080_v58 }
  0x1c   :  { %1138 = vmatprep.subr.bf16.mxu0 %v1195_v9  ;;  %1179 = vmatprep.subr.bf16.mxu1 %v1195_v9 }
  0x1f   :  { %1139 = vmatpush3.bf16.msra.mxu0 %v1195_v9  ;;  %1187 = vmatpush3.bf16.msra.mxu1 %v1195_v9 }
  0x22   :  { %1141 = vmatmul.mubr.bf16.vlgmr.msra.gmra.mxu0 %v1198_v10  ;;  %1157 = vmatmul.mubr.bf16.vlgmr.msra.gmra.mxu1 %v1199_v11 }
  0x23   :  { %1144 = vmatprep.mubr.bf16.mxu0 %v1200_v12  ;;  %1160 = vmatprep.mubr.bf16.mxu1 %v1201_v13  ;;  %v941_v13 = vunpack.c.h.bf16 %v1072_v57 }
  0x2a   :  { %1145 = vmatmul.mubr.bf16.gmra.mxu0 %v1202_v14  ;;  %1161 = vmatmul.mubr.bf16.gmra.mxu1 %v1203_v15  ;;  %v973_v14 = vunpack.c.h.bf16 %v1080_v58 }
  0x2b   :  { %1148 = vmatprep.mubr.bf16.mxu0 %v1204_v16  ;;  %1164 = vmatprep.mubr.bf16.mxu1 %v1205_v17  ;;  %v936_v16 = vunpack.c.l.bf16 %v1071_v3 }
  0x32   :  { %1149 = vmatmul.mubr.bf16.gmra.mxu0 %v1206_v18  ;;  %1165 = vmatmul.mubr.bf16.gmra.mxu1 %v1207_v19  ;;  %v968_v18 = vunpack.c.l.bf16 %v1079_v4 }
  0x33   :  { %1152 = vmatprep.mubr.bf16.mxu0 %v1208_v20  ;;  %1168 = vmatprep.mubr.bf16.mxu1 %v1209_v21 }
  0x3a   :  { %1153 = vmatmul.mubr.bf16.gmra.mxu0 %v1210_v22  ;;  %1169 = vmatmul.mubr.bf16.gmra.mxu1 %v1211_v23  ;;  %v937_v23 = vunpack.c.h.bf16 %v1071_v3 }
  0xe2   :  { %v1142_v27 = vpop.f32.mrf.mxu0  ;;  %v1158_v28 = vpop.f32.mrf.mxu1 }
  0xe3   :  { %v547_v31 = vadd.f32 %v1142_v27, %v1312_v24  ;;  %v563_v33 = vadd.f32 %v1158_v28, %v1312_v24 }
  0xe4   :  { %v312_v35 = vpop.f32.mrf.mxu0  ;;  %v376_v36 = vpop.f32.mrf.mxu1 }
  0xe5   :  { %v545_v39 = vadd.f32 %v1312_v24, %v312_v35  ;;  %v561_v41 = vadd.f32 %v1312_v24, %v376_v36  ;;  %v643_v49 = vadd.f32 %v932_v32, %v547_v31  ;;  %v659_v50 = vadd.f32 %v964_v34, %v563_v33  ;;  %v1074_v34 = vld [vmem:[%s1445_s3 + $0x28] sm:$0xff]  }
  0xe6   :  { %v1143_v43 = vpop.f32.mrf.mxu0  ;;  %v1159_v44 = vpop.f32.mrf.mxu1  ;;  %v1082_v35 = vld [vmem:[%s1445_s3 + $0x68] sm:$0xff]  }
  0xe7   :  { %v548_v45 = vadd.f32 %v1143_v43, %v1312_v24  ;;  %v564_v46 = vadd.f32 %v1159_v44, %v1312_v24  ;;  %v641_v59 = vadd.f32 %v928_v40, %v545_v39  ;;  %v657_v60 = vadd.f32 %v960_v42, %v561_v41  ;;  %v1073_v44 = vld [vmem:[%s1445_s3 + $0x20] sm:$0xff]  }
  0xe8   :  { %v315_v51 = vpop.f32.mrf.mxu0  ;;  %v379_v52 = vpop.f32.mrf.mxu1  ;;  %v944_v57 = vunpack.c.l.bf16 %v1073_v44 }
  0xe9   :  { %v644_v53 = vadd.f32 %v933_v37, %v548_v45  ;;  %v660_v54 = vadd.f32 %v965_v38, %v564_v46  ;;  %v546_v55 = vadd.f32 %v1312_v24, %v315_v51  ;;  %v562_v56 = vadd.f32 %v1312_v24, %v379_v52  ;;  %v1081_v45 = vld [vmem:[%s1445_s3 + $0x60] sm:$0xff]  }
  0xea   :  { %v1146_v61 = vpop.f32.mrf.mxu0  ;;  %v1162_v62 = vpop.f32.mrf.mxu1 }
  0xeb   :  { %v998_v63 = vpack.c.bf16 %v644_v53, %v643_v49  ;;  %v1038_v0 = vpack.c.bf16 %v660_v54, %v659_v50  ;;  %v642_v1 = vadd.f32 %v929_v47, %v546_v55  ;;  %v658_v2 = vadd.f32 %v961_v48, %v562_v56 }
  0xec   :  { %v551_v5 = vadd.f32 %v1146_v61, %v1312_v24  ;;  %v567_v7 = vadd.f32 %v1162_v62, %v1312_v24  ;;  %v328_v9 = vpop.f32.mrf.mxu0  ;;  %v392_v10 = vpop.f32.mrf.mxu1  ;;  %v948_v47 = vunpack.c.l.bf16 %v1074_v34  ;;  %v980_v49 = vunpack.c.l.bf16 %v1082_v35 }
  0xed   :  { %1085 = vst [vmem:[%s1446_s4 + $0x8] sm:$0xff] %v998_v63   ;;  %1093 = vst [vmem:[%s1446_s4 + $0x48] sm:$0xff] %v1038_v0   ;;  %v993_v11 = vpack.c.bf16 %v642_v1, %v641_v59  ;;  %v1033_v12 = vpack.c.bf16 %v658_v2, %v657_v60  ;;  %v549_v15 = vadd.f32 %v1312_v24, %v328_v9  ;;  %v949_v54 = vunpack.c.h.bf16 %v1074_v34 }
  0xee   :  { %v565_v17 = vadd.f32 %v1312_v24, %v392_v10  ;;  %v1147_v19 = vpop.f32.mrf.mxu0  ;;  %v1163_v20 = vpop.f32.mrf.mxu1  ;;  %v647_v26 = vadd.f32 %v940_v6, %v551_v5  ;;  %v663_v27 = vadd.f32 %v972_v8, %v567_v7  ;;  %v981_v55 = vunpack.c.h.bf16 %v1082_v35  ;;  %v1076_v10 = vld [vmem:[%s1445_s3 + $0x38] sm:$0xff]  }
  0xef   :  { %994 = vst [vmem:[%s1446_s4] sm:$0xff] %v993_v11   ;;  %1092 = vst [vmem:[%s1446_s4 + $0x40] sm:$0xff] %v1033_v12   ;;  %v552_v21 = vadd.f32 %v1147_v19, %v1312_v24  ;;  %v568_v22 = vadd.f32 %v1163_v20, %v1312_v24  ;;  %v645_v36 = vadd.f32 %v936_v16, %v549_v15  ;;  %v976_v59 = vunpack.c.l.bf16 %v1081_v45  ;;  %v1084_v11 = vld [vmem:[%s1445_s3 + $0x78] sm:$0xff]   ;;  %v1075_v20 = vld [vmem:[%s1445_s3 + $0x30] sm:$0xff]  }
  0xf0   :  { %v331_v28 = vpop.f32.mrf.mxu0  ;;  %v395_v29 = vpop.f32.mrf.mxu1  ;;  %v661_v37 = vadd.f32 %v968_v18, %v565_v17  ;;  %v945_v0 = vunpack.c.h.bf16 %v1073_v44  ;;  %v977_v1 = vunpack.c.h.bf16 %v1081_v45  ;;  %v952_v34 = vunpack.c.l.bf16 %v1075_v20 }
  0xf1   :  { %v648_v30 = vadd.f32 %v941_v13, %v552_v21  ;;  %v664_v31 = vadd.f32 %v973_v14, %v568_v22  ;;  %v550_v32 = vadd.f32 %v1312_v24, %v331_v28  ;;  %v566_v33 = vadd.f32 %v1312_v24, %v395_v29  ;;  %v1083_v21 = vld [vmem:[%s1445_s3 + $0x70] sm:$0xff]  }
  0xf2   :  { %v1150_v38 = vpop.f32.mrf.mxu0  ;;  %v1166_v39 = vpop.f32.mrf.mxu1 }
  0xf3   :  { %v1008_v40 = vpack.c.bf16 %v648_v30, %v647_v26  ;;  %v1048_v41 = vpack.c.bf16 %v664_v31, %v663_v27  ;;  %v646_v42 = vadd.f32 %v937_v23, %v550_v32  ;;  %v662_v43 = vadd.f32 %v969_v25, %v566_v33 }
  0xf4   :  { %v555_v46 = vadd.f32 %v1150_v38, %v1312_v24  ;;  %v571_v48 = vadd.f32 %v1166_v39, %v1312_v24  ;;  %v344_v50 = vpop.f32.mrf.mxu0  ;;  %v408_v51 = vpop.f32.mrf.mxu1  ;;  %v956_v23 = vunpack.c.l.bf16 %v1076_v10  ;;  %v988_v26 = vunpack.c.l.bf16 %v1084_v11 }
  0xf5   :  { %1087 = vst [vmem:[%s1446_s4 + $0x18] sm:$0xff] %v1008_v40   ;;  %1095 = vst [vmem:[%s1446_s4 + $0x58] sm:$0xff] %v1048_v41   ;;  %v1003_v52 = vpack.c.bf16 %v646_v42, %v645_v36  ;;  %v1043_v53 = vpack.c.bf16 %v662_v43, %v661_v37  ;;  %v553_v56 = vadd.f32 %v1312_v24, %v344_v50  ;;  %v957_v31 = vunpack.c.h.bf16 %v1076_v10 }
  0xf6   :  { %v569_v58 = vadd.f32 %v1312_v24, %v408_v51  ;;  %v1151_v60 = vpop.f32.mrf.mxu0  ;;  %v1167_v61 = vpop.f32.mrf.mxu1  ;;  %v651_v2 = vadd.f32 %v948_v47, %v555_v46  ;;  %v667_v3 = vadd.f32 %v980_v49, %v571_v48  ;;  %v989_v32 = vunpack.c.h.bf16 %v1084_v11 }
  0xf7   :  { %1086 = vst [vmem:[%s1446_s4 + $0x10] sm:$0xff] %v1003_v52   ;;  %1094 = vst [vmem:[%s1446_s4 + $0x50] sm:$0xff] %v1043_v53   ;;  %v556_v62 = vadd.f32 %v1151_v60, %v1312_v24  ;;  %v572_v63 = vadd.f32 %v1167_v61, %v1312_v24  ;;  %v649_v12 = vadd.f32 %v944_v57, %v553_v56  ;;  %v984_v36 = vunpack.c.l.bf16 %v1083_v21 }
  0xf8   :  { %v347_v4 = vpop.f32.mrf.mxu0  ;;  %v411_v5 = vpop.f32.mrf.mxu1  ;;  %v665_v13 = vadd.f32 %v976_v59, %v569_v58  ;;  %v953_v41 = vunpack.c.h.bf16 %v1075_v20  ;;  %v985_v42 = vunpack.c.h.bf16 %v1083_v21 }
  0xf9   :  { %v652_v6 = vadd.f32 %v949_v54, %v556_v62  ;;  %v668_v7 = vadd.f32 %v981_v55, %v572_v63  ;;  %v554_v8 = vadd.f32 %v1312_v24, %v347_v4  ;;  %v570_v9 = vadd.f32 %v1312_v24, %v411_v5 }
  0xfa   :  { %v1154_v14 = vpop.f32.mrf.mxu0  ;;  %v1170_v15 = vpop.f32.mrf.mxu1 }
  0xfb   :  { %v1018_v16 = vpack.c.bf16 %v652_v6, %v651_v2  ;;  %v1058_v17 = vpack.c.bf16 %v668_v7, %v667_v3  ;;  %v650_v18 = vadd.f32 %v945_v0, %v554_v8  ;;  %v666_v19 = vadd.f32 %v977_v1, %v570_v9 }
  0xfc   :  { %v559_v22 = vadd.f32 %v1154_v14, %v1312_v24  ;;  %v575_v25 = vadd.f32 %v1170_v15, %v1312_v24  ;;  %v360_v27 = vpop.f32.mrf.mxu0  ;;  %v424_v28 = vpop.f32.mrf.mxu1 }
  0xfd   :  { %1089 = vst [vmem:[%s1446_s4 + $0x28] sm:$0xff] %v1018_v16   ;;  %1097 = vst [vmem:[%s1446_s4 + $0x68] sm:$0xff] %v1058_v17   ;;  %v1013_v29 = vpack.c.bf16 %v650_v18, %v649_v12  ;;  %v1053_v30 = vpack.c.bf16 %v666_v19, %v665_v13  ;;  %v557_v33 = vadd.f32 %v1312_v24, %v360_v27 }
  0xfe   :  { %v573_v35 = vadd.f32 %v1312_v24, %v424_v28  ;;  %v1155_v37 = vpop.f32.mrf.mxu0  ;;  %v1171_v38 = vpop.f32.mrf.mxu1  ;;  %v655_v43 = vadd.f32 %v956_v23, %v559_v22  ;;  %v671_v44 = vadd.f32 %v988_v26, %v575_v25 }
  0xff   :  { %1088 = vst [vmem:[%s1446_s4 + $0x20] sm:$0xff] %v1013_v29   ;;  %1096 = vst [vmem:[%s1446_s4 + $0x60] sm:$0xff] %v1053_v30   ;;  %v560_v39 = vadd.f32 %v1155_v37, %v1312_v24  ;;  %v576_v40 = vadd.f32 %v1171_v38, %v1312_v24  ;;  %v653_v51 = vadd.f32 %v952_v34, %v557_v33 }
 0x100   :  { %v363_v45 = vpop.f32.mrf.mxu0  ;;  %v427_v46 = vpop.f32.mrf.mxu1  ;;  %v669_v52 = vadd.f32 %v984_v36, %v573_v35 }
 0x101   :  { %v656_v47 = vadd.f32 %v957_v31, %v560_v39  ;;  %v672_v48 = vadd.f32 %v989_v32, %v576_v40  ;;  %v558_v49 = vadd.f32 %v1312_v24, %v363_v45  ;;  %v574_v50 = vadd.f32 %v1312_v24, %v427_v46 }
 0x103   :  { %v1028_v53 = vpack.c.bf16 %v656_v47, %v655_v43  ;;  %v1068_v54 = vpack.c.bf16 %v672_v48, %v671_v44  ;;  %v654_v55 = vadd.f32 %v953_v41, %v558_v49  ;;  %v670_v56 = vadd.f32 %v985_v42, %v574_v50 }
 0x105   :  { %1091 = vst [vmem:[%s1446_s4 + $0x38] sm:$0xff] %v1028_v53   ;;  %1099 = vst [vmem:[%s1446_s4 + $0x78] sm:$0xff] %v1068_v54   ;;  %v1023_v57 = vpack.c.bf16 %v654_v55, %v653_v51  ;;  %v1063_v58 = vpack.c.bf16 %v670_v56, %v669_v52 }
 0x107   :  { %1090 = vst [vmem:[%s1446_s4 + $0x30] sm:$0xff] %v1023_v57   ;;  %1098 = vst [vmem:[%s1446_s4 + $0x70] sm:$0xff] %v1063_v58  }

// kernel: _lambda_.26
= control target key start
LH: loop header
LB: loop body
LE: loop exit
PB: predicated region body
PF: predicated region fallthrough
CT: control target
= control target key end

     0   :  { %v228_v2 = vmov 0.0   ;;  %v25_v5 = vlaneseq  ;;  %vm229_vm1 = vmmov 0   ;;  %s291_s0 = inlined_call_operand.vmem [shape: bf16[8,128], index: 0, kind: input, shape index: {}]   ;;  %s292_s1 = inlined_call_operand.vmem [shape: bf16[128,128], index: 1, kind: input, shape index: {}]   ;;  %s293_s2 = inlined_call_operand.vmem [shape: f32[1,128], index: 2, kind: input, shape index: {}]   ;;  %s294_s3 = inlined_call_operand.vmem [shape: f32[1,128], index: 3, kind: input, shape index: {}]   ;;  %s295_s4 = inlined_call_operand.vmem [shape: bf16[8,128], index: 4, kind: output, shape index: {}]  }
   0x1   :  { %v23_v0 = vld [vmem:[%s291_s0] sm:$0xf]  ;;  %196 = vmatprep.subr.bf16.mxu0 %v228_v2  ;;  %v218_v3 = vld [vmem:[%s292_s1 + $0x38] sm:$0xff]   ;;  %v219_v4 = vld [vmem:[%s292_s1 + $0x30] sm:$0xff]   ;;  %212 = vmatprep.mubr.msk.bf16.mxu0 %vm229_vm1, %v228_v2 }
   0x2   :  { %v24_v1 = vunpack.c.l.bf16 %v23_v0  ;;  %197 = vmatpush3.bf16.msra.mxu0 %v218_v3  ;;  %v26_v6 = vand.u32 127, %v25_v5  ;;  %v220_v13 = vld [vmem:[%s292_s1 + $0x28] sm:$0xff]   ;;  %v221_v14 = vld [vmem:[%s292_s1 + $0x20] sm:$0xff]   ;;  %v222_v15 = vld [vmem:[%s292_s1 + $0x18] sm:$0xff]  }
   0x3   :  { %198 = vmatprep.subr.bf16.mxu0 %v228_v2  ;;  %v223_v16 = vld [vmem:[%s292_s1 + $0x10] sm:$0xff]   ;;  %v224_v17 = vld [vmem:[%s292_s1 + $0x8] sm:$0xff]   ;;  %v225_v18 = vld [vmem:[%s292_s1] sm:$0xff]  }
   0x4   :  { %30 = vadd.xlane.f32.xlu0 %v24_v1  ;;  %vm27_vm0 = vcmp.lt.s32.totalorder %v26_v6, 32  ;;  %v177_v23 = vld [vmem:[%s293_s2] ss:$0 sm:$0xff] }
   0x5   :  { %v176_v10 = vsel %vm27_vm0, 1.0, %v228_v2  ;;  %v178_v25 = vld [vmem:[%s294_s3] ss:$0 sm:$0xff] }
   0x6   :  { %199 = vmatpush3.bf16.msra.mxu0 %v219_v4 }
   0x7   :  { %200 = vmatprep.subr.bf16.mxu0 %v228_v2 }
   0xa   :  { %201 = vmatpush3.bf16.msra.mxu0 %v220_v13 }
   0xb   :  { %202 = vmatprep.subr.bf16.mxu0 %v228_v2 }
   0xe   :  { %203 = vmatpush3.bf16.msra.mxu0 %v221_v14 }
   0xf   :  { %204 = vmatprep.subr.bf16.mxu0 %v228_v2 }
  0x12   :  { %205 = vmatpush3.bf16.msra.mxu0 %v222_v15 }
  0x13   :  { %206 = vmatprep.subr.bf16.mxu0 %v228_v2 }
  0x16   :  { %207 = vmatpush3.bf16.msra.mxu0 %v223_v16 }
  0x17   :  { %208 = vmatprep.subr.bf16.mxu0 %v228_v2 }
  0x1a   :  { %209 = vmatpush3.bf16.msra.mxu0 %v224_v17 }
  0x1b   :  { %210 = vmatprep.subr.bf16.mxu0 %v228_v2 }
  0x1e   :  { %211 = vmatpush3.bf16.msra.mxu0 %v225_v18 }
  0x8d   :  { %v31_v7 = vpop.xlane.xlu0 %30 }
  0x8e   :  { %v32_v8 = vmul.f32 0.03125, %v31_v7 }
  0x90   :  { %v33_v9 = vsub.f32 %v24_v1, %v32_v8 }
  0x92   :  { %v34_v11 = vmul.f32 %v33_v9, %v33_v9 }
  0x94   :  { %v35_v12 = vmul.f32 %v176_v10, %v34_v11 }
  0x96   :  { %36 = vadd.xlane.f32.xlu0 %v35_v12 }
 0x11f   :  { %v37_v19 = vpop.xlane.xlu0 %36 }
 0x120   :  { %v38_v20 = vmul.f32 0.03125, %v37_v19 }
 0x122   :  { %v39_v21 = vadd.f32 1e-05, %v38_v20 }
 0x124   :  { %226 = vrsqrt.f32 %v39_v21 }
 0x131   :  { %v227_v22 = vpop.eup %226 }
 0x132   :  { %v41_v24 = vmul.f32 %v227_v22, %v33_v9 }
 0x134   :  { %v49_v26 = vmul.f32 %v177_v23, %v41_v24 }
 0x136   :  { %v57_v27 = vadd.f32 %v178_v25, %v49_v26 }
 0x138   :  { %v58_v28 = vpack.c.bf16 %v57_v27, %v57_v27 }
 0x13a   :  { %213 = vmatmul.mubr.bf16.vlgmr.msra.gmra.mxu0 %v58_v28 }
 0x1fa   :  { %v158_v29 = vpop.f32.mrf.mxu0 }
 0x1fb   :  { %v170_v30 = vpack.c.bf16 %v158_v29, %v158_v29 }
 0x1fc   :  { %v214_v31 = vpop.f32.mrf.mxu0 }
 0x1fd   :  { %171 = vst [vmem:[%s295_s4] sm:$0xf] %v170_v30 }
 0x1fe   :  { %v161_v32 = vpop.f32.mrf.mxu0 }
 0x200   :  { %v215_v33 = vpop.f32.mrf.mxu0 }

// kernel: _lambda_.19
= control target key start
LH: loop header
LB: loop body
LE: loop exit
PB: predicated region body
PF: predicated region fallthrough
CT: control target
= control target key end

     0   :  { %v121_v48 = vlaneseq  ;;  %v1990_v58 = vmov 0.0   ;;  %s2766_s0 = inlined_call_operand.vmem [shape: bf16[256,128], index: 0, kind: input, shape index: {}]   ;;  %s2767_s1 = inlined_call_operand.vmem [shape: bf16[128,128], index: 1, kind: input, shape index: {}]   ;;  %s2768_s2 = inlined_call_operand.vmem [shape: f32[1,128], index: 2, kind: input, shape index: {}]   ;;  %s2769_s3 = inlined_call_operand.vmem [shape: f32[1,128], index: 3, kind: input, shape index: {}]   ;;  %s2770_s4 = inlined_call_operand.vmem [shape: f32[1,128], index: 4, kind: input, shape index: {}]   ;;  %s2771_s5 = inlined_call_operand.vmem [shape: bf16[256,128], index: 5, kind: output, shape index: {}]  }
   0x1   :  { %v2024_v0 = vld [vmem:[%s2766_s0] sm:$0xff]   ;;  %v2042_v6 = vld [vmem:[%s2766_s0 + $0x8] sm:$0xff]   ;;  %v2064_v12 = vld [vmem:[%s2766_s0 + $0x10] sm:$0xff]  }
   0x2   :  { %v2029_v1 = vld [vmem:[%s2766_s0 + $0x40] sm:$0xff]   ;;  %v1529_v2 = vunpack.c.l.bf16 %v2024_v0  ;;  %v1530_v4 = vunpack.c.h.bf16 %v2024_v0  ;;  %v1533_v7 = vunpack.c.l.bf16 %v2042_v6  ;;  %v1534_v8 = vunpack.c.h.bf16 %v2042_v6  ;;  %v2053_v9 = vld [vmem:[%s2766_s0 + $0x48] sm:$0xff]   ;;  %v2075_v15 = vld [vmem:[%s2766_s0 + $0x50] sm:$0xff]  }
   0x3   :  { %v1561_v3 = vunpack.c.l.bf16 %v2029_v1  ;;  %v1562_v5 = vunpack.c.h.bf16 %v2029_v1  ;;  %v1565_v10 = vunpack.c.l.bf16 %v2053_v9  ;;  %v1566_v11 = vunpack.c.h.bf16 %v2053_v9  ;;  %v2086_v18 = vld [vmem:[%s2766_s0 + $0x18] sm:$0xff]   ;;  %v2108_v24 = vld [vmem:[%s2766_s0 + $0x20] sm:$0xff]   ;;  %v2130_v30 = vld [vmem:[%s2766_s0 + $0x28] sm:$0xff]  }
   0x4   :  { %126 = vadd.xlane.f32.xlu0 %v1529_v2  ;;  %v1537_v13 = vunpack.c.l.bf16 %v2064_v12  ;;  %v1538_v14 = vunpack.c.h.bf16 %v2064_v12  ;;  %v1569_v16 = vunpack.c.l.bf16 %v2075_v15  ;;  %v1570_v17 = vunpack.c.h.bf16 %v2075_v15  ;;  %v2097_v21 = vld [vmem:[%s2766_s0 + $0x58] sm:$0xff]   ;;  %v2119_v27 = vld [vmem:[%s2766_s0 + $0x60] sm:$0xff]   ;;  %v2141_v33 = vld [vmem:[%s2766_s0 + $0x68] sm:$0xff]  }
   0x5   :  { %158 = vadd.xlane.f32.xlu1 %v1561_v3  ;;  %v1541_v19 = vunpack.c.l.bf16 %v2086_v18  ;;  %v1542_v20 = vunpack.c.h.bf16 %v2086_v18  ;;  %v1573_v22 = vunpack.c.l.bf16 %v2097_v21  ;;  %v1574_v23 = vunpack.c.h.bf16 %v2097_v21  ;;  %v2152_v36 = vld [vmem:[%s2766_s0 + $0x30] sm:$0xff]   ;;  %v2174_v42 = vld [vmem:[%s2766_s0 + $0x38] sm:$0xff]  }
   0x6   :  { %v1545_v25 = vunpack.c.l.bf16 %v2108_v24  ;;  %v1546_v26 = vunpack.c.h.bf16 %v2108_v24  ;;  %v1577_v28 = vunpack.c.l.bf16 %v2119_v27  ;;  %v1578_v29 = vunpack.c.h.bf16 %v2119_v27  ;;  %v2163_v39 = vld [vmem:[%s2766_s0 + $0x70] sm:$0xff]   ;;  %v2185_v45 = vld [vmem:[%s2766_s0 + $0x78] sm:$0xff]  }
   0x7   :  { %v1549_v31 = vunpack.c.l.bf16 %v2130_v30  ;;  %v1550_v32 = vunpack.c.h.bf16 %v2130_v30  ;;  %v1581_v34 = vunpack.c.l.bf16 %v2141_v33  ;;  %v1582_v35 = vunpack.c.h.bf16 %v2141_v33 }
   0x8   :  { %128 = vadd.xlane.f32.xlu0 %v1530_v4  ;;  %v1553_v37 = vunpack.c.l.bf16 %v2152_v36  ;;  %v1554_v38 = vunpack.c.h.bf16 %v2152_v36  ;;  %v1585_v40 = vunpack.c.l.bf16 %v2163_v39  ;;  %v1586_v41 = vunpack.c.h.bf16 %v2163_v39 }
   0x9   :  { %160 = vadd.xlane.f32.xlu1 %v1562_v5  ;;  %v1557_v43 = vunpack.c.l.bf16 %v2174_v42  ;;  %v1558_v44 = vunpack.c.h.bf16 %v2174_v42  ;;  %v1589_v46 = vunpack.c.l.bf16 %v2185_v45  ;;  %v1590_v47 = vunpack.c.h.bf16 %v2185_v45 }
   0xa   :  { %v122_v49 = vand.u32 127, %v121_v48 }
   0xc   :  { %130 = vadd.xlane.f32.xlu0 %v1533_v7  ;;  %vm123_vm0 = vcmp.lt.s32.totalorder %v122_v49, 32 }
   0xd   :  { %132 = vadd.xlane.f32.xlu1 %v1534_v8  ;;  %v2205_v59 = vsel %vm123_vm0, 1.0, %v1990_v58 }
  0x10   :  { %162 = vadd.xlane.f32.xlu0 %v1565_v10 }
  0x11   :  { %164 = vadd.xlane.f32.xlu1 %v1566_v11 }
  0x14   :  { %134 = vadd.xlane.f32.xlu0 %v1537_v13 }
  0x15   :  { %136 = vadd.xlane.f32.xlu1 %v1538_v14 }
  0x18   :  { %166 = vadd.xlane.f32.xlu0 %v1569_v16 }
  0x19   :  { %168 = vadd.xlane.f32.xlu1 %v1570_v17 }
  0x1c   :  { %138 = vadd.xlane.f32.xlu0 %v1541_v19 }
  0x1d   :  { %140 = vadd.xlane.f32.xlu1 %v1542_v20 }
  0x20   :  { %170 = vadd.xlane.f32.xlu0 %v1573_v22 }
  0x21   :  { %172 = vadd.xlane.f32.xlu1 %v1574_v23 }
  0x24   :  { %142 = vadd.xlane.f32.xlu0 %v1545_v25 }
  0x25   :  { %144 = vadd.xlane.f32.xlu1 %v1546_v26 }
  0x28   :  { %174 = vadd.xlane.f32.xlu0 %v1577_v28 }
  0x29   :  { %176 = vadd.xlane.f32.xlu1 %v1578_v29 }
  0x2c   :  { %146 = vadd.xlane.f32.xlu0 %v1549_v31 }
  0x2d   :  { %148 = vadd.xlane.f32.xlu1 %v1550_v32 }
  0x30   :  { %178 = vadd.xlane.f32.xlu0 %v1581_v34 }
  0x31   :  { %180 = vadd.xlane.f32.xlu1 %v1582_v35 }
  0x34   :  { %150 = vadd.xlane.f32.xlu0 %v1553_v37 }
  0x35   :  { %152 = vadd.xlane.f32.xlu1 %v1554_v38 }
  0x38   :  { %182 = vadd.xlane.f32.xlu0 %v1585_v40 }
  0x39   :  { %184 = vadd.xlane.f32.xlu1 %v1586_v41 }
  0x3c   :  { %154 = vadd.xlane.f32.xlu0 %v1557_v43 }
  0x3d   :  { %156 = vadd.xlane.f32.xlu1 %v1558_v44 }
  0x40   :  { %186 = vadd.xlane.f32.xlu0 %v1589_v46 }
  0x41   :  { %188 = vadd.xlane.f32.xlu1 %v1590_v47 }
  0x8d   :  { %v127_v50 = vpop.xlane.xlu0 %126 }
  0x8e   :  { %v159_v51 = vpop.xlane.xlu1 %158  ;;  %v190_v52 = vmul.f32 0.03125, %v127_v50 }
  0x8f   :  { %v206_v53 = vmul.f32 0.03125, %v159_v51 }
  0x90   :  { %v2199_v54 = vsub.f32 %v1529_v2, %v190_v52 }
  0x91   :  { %v2203_v55 = vsub.f32 %v1561_v3, %v206_v53  ;;  %v129_v56 = vpop.xlane.xlu0 %128 }
  0x92   :  { %v161_v57 = vpop.xlane.xlu1 %160  ;;  %v191_v60 = vmul.f32 0.03125, %v129_v56  ;;  %v254_v62 = vmul.f32 %v2199_v54, %v2199_v54 }
  0x93   :  { %v207_v61 = vmul.f32 0.03125, %v161_v57  ;;  %v270_v63 = vmul.f32 %v2203_v55, %v2203_v55 }
  0x94   :  { %v2213_v2 = vsub.f32 %v1530_v4, %v191_v60  ;;  %v286_v48 = vmul.f32 %v2205_v59, %v254_v62 }
  0x95   :  { %v2217_v3 = vsub.f32 %v1562_v5, %v207_v61  ;;  %v131_v49 = vpop.xlane.xlu0 %130  ;;  %v302_v51 = vmul.f32 %v2205_v59, %v270_v63 }
  0x96   :  { %v133_v50 = vpop.xlane.xlu1 %132  ;;  %v192_v52 = vmul.f32 0.03125, %v131_v49  ;;  %318 = vadd.xlane.f32.xlu0 %v286_v48  ;;  %v255_v56 = vmul.f32 %v2213_v2, %v2213_v2 }
  0x97   :  { %v193_v53 = vmul.f32 0.03125, %v133_v50  ;;  %v271_v0 = vmul.f32 %v2217_v3, %v2217_v3 }
  0x98   :  { %v2227_v1 = vsub.f32 %v1533_v7, %v192_v52  ;;  %v287_v5 = vmul.f32 %v2205_v59, %v255_v56 }
  0x99   :  { %v2231_v4 = vsub.f32 %v1534_v8, %v193_v53  ;;  %v163_v57 = vpop.xlane.xlu0 %162  ;;  %v303_v60 = vmul.f32 %v2205_v59, %v271_v0 }
  0x9a   :  { %v165_v58 = vpop.xlane.xlu1 %164  ;;  %v208_v61 = vmul.f32 0.03125, %v163_v57  ;;  %350 = vadd.xlane.f32.xlu0 %v302_v51  ;;  %320 = vadd.xlane.f32.xlu1 %v287_v5  ;;  %v256_v63 = vmul.f32 %v2227_v1, %v2227_v1 }
  0x9b   :  { %v209_v62 = vmul.f32 0.03125, %v165_v58  ;;  %v257_v7 = vmul.f32 %v2231_v4, %v2231_v4 }
  0x9c   :  { %v2241_v6 = vsub.f32 %v1565_v10, %v208_v61  ;;  %v288_v48 = vmul.f32 %v2205_v59, %v256_v63 }
  0x9d   :  { %v2245_v8 = vsub.f32 %v1566_v11, %v209_v62  ;;  %v135_v49 = vpop.xlane.xlu0 %134  ;;  %v289_v51 = vmul.f32 %v2205_v59, %v257_v7 }
  0x9e   :  { %v137_v50 = vpop.xlane.xlu1 %136  ;;  %v194_v52 = vmul.f32 0.03125, %v135_v49  ;;  %352 = vadd.xlane.f32.xlu1 %v303_v60  ;;  %322 = vadd.xlane.f32.xlu0 %v288_v48  ;;  %v272_v56 = vmul.f32 %v2241_v6, %v2241_v6 }
  0x9f   :  { %v195_v53 = vmul.f32 0.03125, %v137_v50  ;;  %v273_v10 = vmul.f32 %v2245_v8, %v2245_v8  ;;  %v1790_v50 = vld [vmem:[%s2767_s1 + $0x38] sm:$0xff]  }
  0xa0   :  { %v2255_v9 = vsub.f32 %v1537_v13, %v194_v52  ;;  %v304_v0 = vmul.f32 %v2205_v59, %v272_v56  ;;  %1725 = vmatprep.subr.bf16.mxu0 %v1790_v50  ;;  %1773 = vmatprep.subr.bf16.mxu1 %v1790_v50 }
  0xa1   :  { %v2259_v11 = vsub.f32 %v1538_v14, %v195_v53  ;;  %v167_v5 = vpop.xlane.xlu0 %166  ;;  %v305_v58 = vmul.f32 %v2205_v59, %v273_v10  ;;  %1726 = vmatpush3.bf16.msra.mxu0 %v1790_v50  ;;  %1781 = vmatpush3.bf16.msra.mxu1 %v1790_v50 }
  0xa2   :  { %v169_v57 = vpop.xlane.xlu1 %168  ;;  %v210_v60 = vmul.f32 0.03125, %v167_v5  ;;  %324 = vadd.xlane.f32.xlu1 %v289_v51  ;;  %354 = vadd.xlane.f32.xlu0 %v304_v0  ;;  %v258_v62 = vmul.f32 %v2255_v9, %v2255_v9 }
  0xa3   :  { %v211_v61 = vmul.f32 0.03125, %v169_v57  ;;  %v259_v13 = vmul.f32 %v2259_v11, %v2259_v11  ;;  %v1791_v57 = vld [vmem:[%s2767_s1 + $0x30] sm:$0xff]  }
  0xa4   :  { %v2269_v12 = vsub.f32 %v1569_v16, %v210_v60  ;;  %v290_v63 = vmul.f32 %v2205_v59, %v258_v62  ;;  %1727 = vmatprep.subr.bf16.mxu0 %v1791_v57  ;;  %1774 = vmatprep.subr.bf16.mxu1 %v1791_v57 }
  0xa5   :  { %v2273_v14 = vsub.f32 %v1570_v17, %v211_v61  ;;  %v139_v7 = vpop.xlane.xlu0 %138  ;;  %v291_v49 = vmul.f32 %v2205_v59, %v259_v13  ;;  %1728 = vmatpush3.bf16.msra.mxu0 %v1791_v57  ;;  %1782 = vmatpush3.bf16.msra.mxu1 %v1791_v57 }
  0xa6   :  { %v141_v48 = vpop.xlane.xlu1 %140  ;;  %v196_v51 = vmul.f32 0.03125, %v139_v7  ;;  %356 = vadd.xlane.f32.xlu1 %v305_v58  ;;  %326 = vadd.xlane.f32.xlu0 %v290_v63  ;;  %v274_v16 = vmul.f32 %v2269_v12, %v2269_v12 }
  0xa7   :  { %v197_v52 = vmul.f32 0.03125, %v141_v48  ;;  %v275_v15 = vmul.f32 %v2273_v14, %v2273_v14  ;;  %v1792_v48 = vld [vmem:[%s2767_s1 + $0x28] sm:$0xff]  }
  0xa8   :  { %v2286_v17 = vsub.f32 %v1541_v19, %v196_v51  ;;  %v306_v56 = vmul.f32 %v2205_v59, %v274_v16  ;;  %1729 = vmatprep.subr.bf16.mxu0 %v1792_v48  ;;  %1775 = vmatprep.subr.bf16.mxu1 %v1792_v48 }
  0xa9   :  { %v2290_v53 = vsub.f32 %v1542_v20, %v197_v52  ;;  %v171_v10 = vpop.xlane.xlu0 %170  ;;  %v307_v5 = vmul.f32 %v2205_v59, %v275_v15  ;;  %1730 = vmatpush3.bf16.msra.mxu0 %v1792_v48  ;;  %1783 = vmatpush3.bf16.msra.mxu1 %v1792_v48 }
  0xaa   :  { %v173_v0 = vpop.xlane.xlu1 %172  ;;  %v212_v58 = vmul.f32 0.03125, %v171_v10  ;;  %328 = vadd.xlane.f32.xlu1 %v291_v49  ;;  %358 = vadd.xlane.f32.xlu0 %v306_v56  ;;  %v260_v18 = vmul.f32 %v2286_v17, %v2286_v17  ;;  %v1793_v10 = vld [vmem:[%s2767_s1 + $0x20] sm:$0xff]  }
  0xab   :  { %v213_v19 = vmul.f32 0.03125, %v173_v0  ;;  %v261_v20 = vmul.f32 %v2290_v53, %v2290_v53  ;;  %1731 = vmatprep.subr.bf16.mxu0 %v1793_v10  ;;  %1776 = vmatprep.subr.bf16.mxu1 %v1793_v10 }
  0xac   :  { %v2303_v60 = vsub.f32 %v1573_v22, %v212_v58  ;;  %v292_v62 = vmul.f32 %v2205_v59, %v260_v18 }
  0xad   :  { %v2307_v61 = vsub.f32 %v1574_v23, %v213_v19  ;;  %v143_v13 = vpop.xlane.xlu0 %142  ;;  %v293_v7 = vmul.f32 %v2205_v59, %v261_v20  ;;  %1732 = vmatpush3.bf16.msra.mxu0 %v1793_v10  ;;  %1784 = vmatpush3.bf16.msra.mxu1 %v1793_v10 }
  0xae   :  { %v145_v63 = vpop.xlane.xlu1 %144  ;;  %v198_v49 = vmul.f32 0.03125, %v143_v13  ;;  %360 = vadd.xlane.f32.xlu1 %v307_v5  ;;  %330 = vadd.xlane.f32.xlu0 %v292_v62  ;;  %v276_v21 = vmul.f32 %v2303_v60, %v2303_v60  ;;  %v1794_v62 = vld [vmem:[%s2767_s1 + $0x18] sm:$0xff]  }
  0xaf   :  { %v199_v22 = vmul.f32 0.03125, %v145_v63  ;;  %v277_v23 = vmul.f32 %v2307_v61, %v2307_v61  ;;  %1733 = vmatprep.subr.bf16.mxu0 %v1794_v62  ;;  %1777 = vmatprep.subr.bf16.mxu1 %v1794_v62 }
  0xb0   :  { %v2320_v50 = vsub.f32 %v1545_v25, %v198_v49  ;;  %v308_v52 = vmul.f32 %v2205_v59, %v276_v21 }
  0xb1   :  { %v2324_v51 = vsub.f32 %v1546_v26, %v199_v22  ;;  %v175_v16 = vpop.xlane.xlu0 %174  ;;  %v309_v56 = vmul.f32 %v2205_v59, %v277_v23  ;;  %1734 = vmatpush3.bf16.msra.mxu0 %v1794_v62  ;;  %v1795_v23 = vld [vmem:[%s2767_s1 + $0x10] sm:$0xff]   ;;  %1785 = vmatpush3.bf16.msra.mxu1 %v1794_v62 }
  0xb2   :  { %v177_v15 = vpop.xlane.xlu1 %176  ;;  %v214_v0 = vmul.f32 0.03125, %v175_v16  ;;  %332 = vadd.xlane.f32.xlu1 %v293_v7  ;;  %362 = vadd.xlane.f32.xlu0 %v308_v52  ;;  %v262_v24 = vmul.f32 %v2320_v50, %v2320_v50 }
  0xb3   :  { %v215_v25 = vmul.f32 0.03125, %v177_v15  ;;  %v263_v26 = vmul.f32 %v2324_v51, %v2324_v51  ;;  %1735 = vmatprep.subr.bf16.mxu0 %v1795_v23  ;;  %1778 = vmatprep.subr.bf16.mxu1 %v1795_v23 }
  0xb4   :  { %v2337_v5 = vsub.f32 %v1577_v28, %v214_v0  ;;  %v294_v58 = vmul.f32 %v2205_v59, %v262_v24  ;;  %v1796_v24 = vld [vmem:[%s2767_s1 + $0x8] sm:$0xff]  }
  0xb5   :  { %v2341_v57 = vsub.f32 %v1578_v29, %v215_v25  ;;  %v147_v19 = vpop.xlane.xlu0 %146  ;;  %v295_v20 = vmul.f32 %v2205_v59, %v263_v26  ;;  %1736 = vmatpush3.bf16.msra.mxu0 %v1795_v23  ;;  %1786 = vmatpush3.bf16.msra.mxu1 %v1795_v23 }
  0xb6   :  { %v149_v18 = vpop.xlane.xlu1 %148  ;;  %v200_v13 = vmul.f32 0.03125, %v147_v19  ;;  %364 = vadd.xlane.f32.xlu1 %v309_v56  ;;  %334 = vadd.xlane.f32.xlu0 %v294_v58  ;;  %v278_v27 = vmul.f32 %v2337_v5, %v2337_v5 }
  0xb7   :  { %v201_v28 = vmul.f32 0.03125, %v149_v18  ;;  %v279_v29 = vmul.f32 %v2341_v57, %v2341_v57  ;;  %1737 = vmatprep.subr.bf16.mxu0 %v1796_v24  ;;  %1779 = vmatprep.subr.bf16.mxu1 %v1796_v24 }
  0xb8   :  { %v2354_v63 = vsub.f32 %v1549_v31, %v200_v13  ;;  %v310_v48 = vmul.f32 %v2205_v59, %v278_v27 }
  0xb9   :  { %v2358_v7 = vsub.f32 %v1550_v32, %v201_v28  ;;  %v179_v49 = vpop.xlane.xlu0 %178  ;;  %v311_v21 = vmul.f32 %v2205_v59, %v279_v29  ;;  %1738 = vmatpush3.bf16.msra.mxu0 %v1796_v24  ;;  %v1797_v28 = vld [vmem:[%s2767_s1] sm:$0xff]   ;;  %1787 = vmatpush3.bf16.msra.mxu1 %v1796_v24 }
  0xba   :  { %v181_v22 = vpop.xlane.xlu1 %180  ;;  %v216_v52 = vmul.f32 0.03125, %v179_v49  ;;  %336 = vadd.xlane.f32.xlu1 %v295_v20  ;;  %366 = vadd.xlane.f32.xlu0 %v310_v48  ;;  %v264_v30 = vmul.f32 %v2354_v63, %v2354_v63 }
  0xbb   :  { %v217_v31 = vmul.f32 0.03125, %v181_v22  ;;  %v265_v32 = vmul.f32 %v2358_v7, %v2358_v7  ;;  %1739 = vmatprep.subr.bf16.mxu0 %v1797_v28  ;;  %1780 = vmatprep.subr.bf16.mxu1 %v1797_v28 }
  0xbc   :  { %v2371_v16 = vsub.f32 %v1581_v34, %v216_v52  ;;  %v296_v56 = vmul.f32 %v2205_v59, %v264_v30 }
  0xbd   :  { %v2375_v15 = vsub.f32 %v1582_v35, %v217_v31  ;;  %v151_v10 = vpop.xlane.xlu0 %150  ;;  %v297_v25 = vmul.f32 %v2205_v59, %v265_v32  ;;  %1740 = vmatpush3.bf16.msra.mxu0 %v1797_v28  ;;  %1788 = vmatpush3.bf16.msra.mxu1 %v1797_v28 }
  0xbe   :  { %v153_v0 = vpop.xlane.xlu1 %152  ;;  %v202_v26 = vmul.f32 0.03125, %v151_v10  ;;  %368 = vadd.xlane.f32.xlu1 %v311_v21  ;;  %338 = vadd.xlane.f32.xlu0 %v296_v56  ;;  %v280_v33 = vmul.f32 %v2371_v16, %v2371_v16 }
  0xbf   :  { %v203_v34 = vmul.f32 0.03125, %v153_v0  ;;  %v281_v35 = vmul.f32 %v2375_v15, %v2375_v15 }
  0xc0   :  { %v2388_v58 = vsub.f32 %v1553_v37, %v202_v26  ;;  %v312_v18 = vmul.f32 %v2205_v59, %v280_v33 }
  0xc1   :  { %v2392_v19 = vsub.f32 %v1554_v38, %v203_v34  ;;  %v183_v20 = vpop.xlane.xlu0 %182  ;;  %v313_v13 = vmul.f32 %v2205_v59, %v281_v35 }
  0xc2   :  { %v185_v62 = vpop.xlane.xlu1 %184  ;;  %v218_v27 = vmul.f32 0.03125, %v183_v20  ;;  %340 = vadd.xlane.f32.xlu1 %v297_v25  ;;  %370 = vadd.xlane.f32.xlu0 %v312_v18  ;;  %v266_v36 = vmul.f32 %v2388_v58, %v2388_v58 }
  0xc3   :  { %v219_v37 = vmul.f32 0.03125, %v185_v62  ;;  %v267_v38 = vmul.f32 %v2392_v19, %v2392_v19 }
  0xc4   :  { %v2405_v29 = vsub.f32 %v1585_v40, %v218_v27  ;;  %v298_v49 = vmul.f32 %v2205_v59, %v266_v36 }
  0xc5   :  { %v2409_v48 = vsub.f32 %v1586_v41, %v219_v37  ;;  %v155_v22 = vpop.xlane.xlu0 %154  ;;  %v299_v23 = vmul.f32 %v2205_v59, %v267_v38 }
  0xc6   :  { %v157_v21 = vpop.xlane.xlu1 %156  ;;  %v204_v52 = vmul.f32 0.03125, %v155_v22  ;;  %372 = vadd.xlane.f32.xlu1 %v313_v13  ;;  %342 = vadd.xlane.f32.xlu0 %v298_v49  ;;  %v282_v40 = vmul.f32 %v2405_v29, %v2405_v29 }
  0xc7   :  { %v205_v31 = vmul.f32 0.03125, %v157_v21  ;;  %v283_v39 = vmul.f32 %v2409_v48, %v2409_v48 }
  0xc8   :  { %v2419_v41 = vsub.f32 %v1557_v43, %v204_v52  ;;  %v314_v32 = vmul.f32 %v2205_v59, %v282_v40 }
  0xc9   :  { %v2423_v30 = vsub.f32 %v1558_v44, %v205_v31  ;;  %v187_v56 = vpop.xlane.xlu0 %186  ;;  %v315_v0 = vmul.f32 %v2205_v59, %v283_v39 }
  0xca   :  { %v189_v10 = vpop.xlane.xlu1 %188  ;;  %v220_v25 = vmul.f32 0.03125, %v187_v56  ;;  %344 = vadd.xlane.f32.xlu1 %v299_v23  ;;  %374 = vadd.xlane.f32.xlu0 %v314_v32  ;;  %v268_v26 = vmul.f32 %v2419_v41, %v2419_v41 }
  0xcb   :  { %v221_v24 = vmul.f32 0.03125, %v189_v10  ;;  %v269_v43 = vmul.f32 %v2423_v30, %v2423_v30 }
  0xcc   :  { %v2433_v42 = vsub.f32 %v1589_v46, %v220_v25  ;;  %v300_v34 = vmul.f32 %v2205_v59, %v268_v26 }
  0xcd   :  { %v2437_v44 = vsub.f32 %v1590_v47, %v221_v24  ;;  %v301_v33 = vmul.f32 %v2205_v59, %v269_v43 }
  0xce   :  { %376 = vadd.xlane.f32.xlu1 %v315_v0  ;;  %346 = vadd.xlane.f32.xlu0 %v300_v34  ;;  %v284_v35 = vmul.f32 %v2433_v42, %v2433_v42 }
  0xcf   :  { %v285_v18 = vmul.f32 %v2437_v44, %v2437_v44 }
  0xd0   :  { %v316_v20 = vmul.f32 %v2205_v59, %v284_v35 }
  0xd1   :  { %v317_v45 = vmul.f32 %v2205_v59, %v285_v18  ;;  %v2451_v18 = vld [vmem:[%s2768_s2] ss:$0 sm:$0xff] }
  0xd2   :  { %348 = vadd.xlane.f32.xlu1 %v301_v33  ;;  %378 = vadd.xlane.f32.xlu0 %v316_v20 }
  0xd6   :  { %380 = vadd.xlane.f32.xlu1 %v317_v45 }
 0x11f   :  { %v319_v46 = vpop.xlane.xlu0 %318 }
 0x120   :  { %v382_v47 = vmul.f32 0.03125, %v319_v46 }
 0x122   :  { %v414_v62 = vadd.f32 1e-05, %v382_v47 }
 0x123   :  { %v321_v13 = vpop.xlane.xlu1 %320  ;;  %v351_v28 = vpop.xlane.xlu0 %350 }
 0x124   :  { %1798 = vrsqrt.f32 %v414_v62  ;;  %v383_v27 = vmul.f32 0.03125, %v321_v13  ;;  %v398_v37 = vmul.f32 0.03125, %v351_v28 }
 0x126   :  { %v415_v36 = vadd.f32 1e-05, %v383_v27  ;;  %v430_v38 = vadd.f32 1e-05, %v398_v37 }
 0x127   :  { %v353_v49 = vpop.xlane.xlu1 %352  ;;  %v323_v22 = vpop.xlane.xlu0 %322 }
 0x128   :  { %1800 = vrsqrt.f32 %v415_v36  ;;  %v399_v21 = vmul.f32 0.03125, %v353_v49  ;;  %v384_v23 = vmul.f32 0.03125, %v323_v22 }
 0x129   :  { %1802 = vrsqrt.f32 %v430_v38 }
 0x12a   :  { %v431_v52 = vadd.f32 1e-05, %v399_v21  ;;  %v416_v31 = vadd.f32 1e-05, %v384_v23 }
 0x12b   :  { %v325_v59 = vpop.xlane.xlu1 %324  ;;  %v355_v40 = vpop.xlane.xlu0 %354 }
 0x12c   :  { %1804 = vrsqrt.f32 %v431_v52  ;;  %v385_v39 = vmul.f32 0.03125, %v325_v59  ;;  %v400_v32 = vmul.f32 0.03125, %v355_v40 }
 0x12d   :  { %1806 = vrsqrt.f32 %v416_v31 }
 0x12e   :  { %v417_v56 = vadd.f32 1e-05, %v385_v39  ;;  %v432_v10 = vadd.f32 1e-05, %v400_v32 }
 0x12f   :  { %v357_v0 = vpop.xlane.xlu1 %356  ;;  %v327_v25 = vpop.xlane.xlu0 %326 }
 0x130   :  { %1808 = vrsqrt.f32 %v417_v56  ;;  %v401_v24 = vmul.f32 0.03125, %v357_v0  ;;  %v386_v26 = vmul.f32 0.03125, %v327_v25 }
 0x131   :  { %v1799_v43 = vpop.eup %1798  ;;  %1810 = vrsqrt.f32 %v432_v10 }
 0x132   :  { %v433_v34 = vadd.f32 1e-05, %v401_v24  ;;  %v418_v33 = vadd.f32 1e-05, %v386_v26  ;;  %v478_v35 = vmul.f32 %v1799_v43, %v2199_v54  ;;  %v2458_v54 = vld [vmem:[%s2769_s3] ss:$0 sm:$0xff] }
 0x133   :  { %v329_v20 = vpop.xlane.xlu1 %328  ;;  %v359_v45 = vpop.xlane.xlu0 %358 }
 0x134   :  { %1812 = vrsqrt.f32 %v433_v34  ;;  %v387_v46 = vmul.f32 0.03125, %v329_v20  ;;  %v402_v47 = vmul.f32 0.03125, %v359_v45  ;;  %v517_v13 = vmul.f32 %v2451_v18, %v478_v35 }
 0x135   :  { %v1801_v62 = vpop.eup %1800  ;;  %1814 = vrsqrt.f32 %v418_v33 }
 0x136   :  { %v1803_v28 = vpop.eup %1802  ;;  %v419_v27 = vadd.f32 1e-05, %v387_v46  ;;  %v434_v37 = vadd.f32 1e-05, %v402_v47  ;;  %v479_v36 = vmul.f32 %v1801_v62, %v2213_v2  ;;  %v556_v59 = vadd.f32 %v2458_v54, %v517_v13 }
 0x137   :  { %v361_v38 = vpop.xlane.xlu1 %360  ;;  %v331_v49 = vpop.xlane.xlu0 %330  ;;  %v494_v22 = vmul.f32 %v1803_v28, %v2203_v55 }
 0x138   :  { %1816 = vrsqrt.f32 %v419_v27  ;;  %v403_v21 = vmul.f32 0.03125, %v361_v38  ;;  %v388_v23 = vmul.f32 0.03125, %v331_v49  ;;  %v518_v52 = vmul.f32 %v2451_v18, %v479_v36 }
 0x139   :  { %v1805_v31 = vpop.eup %1804  ;;  %1818 = vrsqrt.f32 %v434_v37  ;;  %v533_v55 = vmul.f32 %v2451_v18, %v494_v22 }
 0x13a   :  { %v1807_v40 = vpop.eup %1806  ;;  %v435_v2 = vadd.f32 1e-05, %v403_v21  ;;  %v420_v39 = vadd.f32 1e-05, %v388_v23  ;;  %v557_v32 = vadd.f32 %v2458_v54, %v518_v52  ;;  %v495_v56 = vmul.f32 %v1805_v31, %v2217_v3 }
 0x13b   :  { %v333_v10 = vpop.xlane.xlu1 %332  ;;  %v363_v0 = vpop.xlane.xlu0 %362  ;;  %v480_v25 = vmul.f32 %v1807_v40, %v2227_v1  ;;  %v572_v1 = vadd.f32 %v2458_v54, %v533_v55 }
 0x13c   :  { %1820 = vrsqrt.f32 %v435_v2  ;;  %v389_v24 = vmul.f32 0.03125, %v333_v10  ;;  %v404_v26 = vmul.f32 0.03125, %v363_v0  ;;  %v588_v43 = vpack.c.bf16 %v557_v32, %v556_v59 }
 0x13d   :  { %v1809_v34 = vpop.eup %1808  ;;  %1822 = vrsqrt.f32 %v420_v39  ;;  %v534_v33 = vmul.f32 %v2451_v18, %v495_v56  ;;  %v519_v35 = vmul.f32 %v2451_v18, %v480_v25 }
 0x13e   :  { %v1811_v20 = vpop.eup %1810  ;;  %v421_v45 = vadd.f32 1e-05, %v389_v24  ;;  %v436_v46 = vadd.f32 1e-05, %v404_v26  ;;  %1741 = vmatprep.mubr.bf16.mxu0 %v588_v43  ;;  %v481_v3 = vmul.f32 %v1809_v34, %v2231_v4 }
 0x13f   :  { %v365_v47 = vpop.xlane.xlu1 %364  ;;  %v335_v62 = vpop.xlane.xlu0 %334  ;;  %v573_v13 = vadd.f32 %v2458_v54, %v534_v33  ;;  %v496_v28 = vmul.f32 %v1811_v20, %v2241_v6  ;;  %v558_v22 = vadd.f32 %v2458_v54, %v519_v35 }
 0x140   :  { %1824 = vrsqrt.f32 %v421_v45  ;;  %v405_v27 = vmul.f32 0.03125, %v365_v47  ;;  %v390_v37 = vmul.f32 0.03125, %v335_v62  ;;  %v520_v36 = vmul.f32 %v2451_v18, %v481_v3 }
 0x141   :  { %v1813_v38 = vpop.eup %1812  ;;  %1826 = vrsqrt.f32 %v436_v46  ;;  %v596_v49 = vpack.c.bf16 %v573_v13, %v572_v1  ;;  %v535_v40 = vmul.f32 %v2451_v18, %v496_v28 }
 0x142   :  { %v1815_v21 = vpop.eup %1814  ;;  %v437_v4 = vadd.f32 1e-05, %v405_v27  ;;  %v422_v23 = vadd.f32 1e-05, %v390_v37  ;;  %v559_v52 = vadd.f32 %v2458_v54, %v520_v36  ;;  %v497_v31 = vmul.f32 %v1813_v38, %v2245_v8 }
 0x143   :  { %1757 = vmatprep.mubr.bf16.mxu1 %v596_v49  ;;  %v337_v59 = vpop.xlane.xlu1 %336  ;;  %v367_v6 = vpop.xlane.xlu0 %366  ;;  %v482_v2 = vmul.f32 %v1815_v21, %v2255_v9  ;;  %v574_v9 = vadd.f32 %v2458_v54, %v535_v40 }
 0x144   :  { %1828 = vrsqrt.f32 %v437_v4  ;;  %v391_v39 = vmul.f32 0.03125, %v337_v59  ;;  %v406_v32 = vmul.f32 0.03125, %v367_v6  ;;  %v589_v56 = vpack.c.bf16 %v559_v52, %v558_v22 }
 0x145   :  { %v1817_v10 = vpop.eup %1816  ;;  %1830 = vrsqrt.f32 %v422_v23  ;;  %v536_v0 = vmul.f32 %v2451_v18, %v497_v31  ;;  %v521_v55 = vmul.f32 %v2451_v18, %v482_v2 }
 0x146   :  { %v1819_v25 = vpop.eup %1818  ;;  %v423_v24 = vadd.f32 1e-05, %v391_v39  ;;  %v438_v8 = vadd.f32 1e-05, %v406_v32  ;;  %1742 = vmatmul.mubr.bf16.vlgmr.msra.gmra.mxu0 %v589_v56  ;;  %v483_v26 = vmul.f32 %v1817_v10, %v2259_v11 }
 0x147   :  { %v369_v43 = vpop.xlane.xlu1 %368  ;;  %v339_v34 = vpop.xlane.xlu0 %338  ;;  %v575_v33 = vadd.f32 %v2458_v54, %v536_v0  ;;  %v498_v35 = vmul.f32 %v1819_v25, %v2269_v12  ;;  %v560_v62 = vadd.f32 %v2458_v54, %v521_v55 }
 0x148   :  { %1832 = vrsqrt.f32 %v423_v24  ;;  %v407_v20 = vmul.f32 0.03125, %v369_v43  ;;  %v392_v45 = vmul.f32 0.03125, %v339_v34  ;;  %v522_v46 = vmul.f32 %v2451_v18, %v483_v26 }
 0x149   :  { %v1821_v3 = vpop.eup %1820  ;;  %1834 = vrsqrt.f32 %v438_v8  ;;  %v597_v47 = vpack.c.bf16 %v575_v33, %v574_v9  ;;  %v537_v36 = vmul.f32 %v2451_v18, %v498_v35 }
 0x14a   :  { %v1823_v1 = vpop.eup %1822  ;;  %v439_v11 = vadd.f32 1e-05, %v407_v20  ;;  %v424_v13 = vadd.f32 1e-05, %v392_v45  ;;  %v561_v28 = vadd.f32 %v2458_v54, %v522_v46  ;;  %v499_v27 = vmul.f32 %v1821_v3, %v2273_v14 }
 0x14b   :  { %1758 = vmatmul.mubr.bf16.vlgmr.msra.gmra.mxu1 %v597_v47  ;;  %v341_v37 = vpop.xlane.xlu1 %340  ;;  %v371_v12 = vpop.xlane.xlu0 %370  ;;  %v484_v38 = vmul.f32 %v1823_v1, %v2286_v17  ;;  %v576_v17 = vadd.f32 %v2458_v54, %v537_v36 }
 0x14c   :  { %1836 = vrsqrt.f32 %v439_v11  ;;  %v393_v49 = vmul.f32 0.03125, %v341_v37  ;;  %v408_v22 = vmul.f32 0.03125, %v371_v12  ;;  %v590_v21 = vpack.c.bf16 %v561_v28, %v560_v62 }
 0x14d   :  { %v1825_v4 = vpop.eup %1824  ;;  %1838 = vrsqrt.f32 %v424_v13  ;;  %v538_v23 = vmul.f32 %v2451_v18, %v499_v27  ;;  %v523_v52 = vmul.f32 %v2451_v18, %v484_v38 }
 0x14e   :  { %v1827_v31 = vpop.eup %1826  ;;  %v425_v59 = vadd.f32 1e-05, %v393_v49  ;;  %v440_v14 = vadd.f32 1e-05, %v408_v22  ;;  %1745 = vmatprep.mubr.bf16.mxu0 %v590_v21  ;;  %v485_v6 = vmul.f32 %v1825_v4, %v2290_v53 }
 0x14f   :  { %v373_v40 = vpop.xlane.xlu1 %372  ;;  %v343_v2 = vpop.xlane.xlu0 %342  ;;  %v577_v39 = vadd.f32 %v2458_v54, %v538_v23  ;;  %v500_v32 = vmul.f32 %v1827_v31, %v2303_v60  ;;  %v562_v24 = vadd.f32 %v2458_v54, %v523_v52 }
 0x150   :  { %1840 = vrsqrt.f32 %v425_v59  ;;  %v409_v56 = vmul.f32 0.03125, %v373_v40  ;;  %v394_v10 = vmul.f32 0.03125, %v343_v2  ;;  %v524_v0 = vmul.f32 %v2451_v18, %v485_v6 }
 0x151   :  { %v1829_v55 = vpop.eup %1828  ;;  %1842 = vrsqrt.f32 %v440_v14  ;;  %v598_v25 = vpack.c.bf16 %v577_v39, %v576_v17  ;;  %v539_v33 = vmul.f32 %v2451_v18, %v500_v32 }
 0x152   :  { %v1831_v8 = vpop.eup %1830  ;;  %v441_v53 = vadd.f32 1e-05, %v409_v56  ;;  %v426_v26 = vadd.f32 1e-05, %v394_v10  ;;  %v563_v43 = vadd.f32 %v2458_v54, %v524_v0  ;;  %v501_v34 = vmul.f32 %v1829_v55, %v2307_v61 }
 0x153   :  { %1761 = vmatprep.mubr.bf16.mxu1 %v598_v25  ;;  %v345_v9 = vpop.xlane.xlu1 %344  ;;  %v375_v60 = vpop.xlane.xlu0 %374  ;;  %v486_v35 = vmul.f32 %v1831_v8, %v2320_v50  ;;  %v578_v50 = vadd.f32 %v2458_v54, %v539_v33 }
 0x154   :  { %1844 = vrsqrt.f32 %v441_v53  ;;  %v395_v20 = vmul.f32 0.03125, %v345_v9  ;;  %v410_v45 = vmul.f32 0.03125, %v375_v60  ;;  %v591_v46 = vpack.c.bf16 %v563_v43, %v562_v24 }
 0x155   :  { %v1833_v3 = vpop.eup %1832  ;;  %1846 = vrsqrt.f32 %v426_v26  ;;  %v540_v47 = vmul.f32 %v2451_v18, %v501_v34  ;;  %v525_v62 = vmul.f32 %v2451_v18, %v486_v35 }
 0x156   :  { %v1835_v1 = vpop.eup %1834  ;;  %v427_v11 = vadd.f32 1e-05, %v395_v20  ;;  %v442_v61 = vadd.f32 1e-05, %v410_v45  ;;  %1746 = vmatmul.mubr.bf16.gmra.mxu0 %v591_v46  ;;  %v487_v13 = vmul.f32 %v1833_v3, %v2324_v51 }
 0x157   :  { %v377_v28 = vpop.xlane.xlu1 %376  ;;  %v347_v27 = vpop.xlane.xlu0 %346  ;;  %v579_v37 = vadd.f32 %v2458_v54, %v540_v47  ;;  %v502_v12 = vmul.f32 %v1835_v1, %v2337_v5  ;;  %v564_v4 = vadd.f32 %v2458_v54, %v525_v62 }
 0x158   :  { %1848 = vrsqrt.f32 %v427_v11  ;;  %v411_v36 = vmul.f32 0.03125, %v377_v28  ;;  %v396_v38 = vmul.f32 0.03125, %v347_v27  ;;  %v526_v49 = vmul.f32 %v2451_v18, %v487_v13 }
 0x159   :  { %v1837_v22 = vpop.eup %1836  ;;  %1850 = vrsqrt.f32 %v442_v61  ;;  %v599_v21 = vpack.c.bf16 %v579_v37, %v578_v50  ;;  %v541_v6 = vmul.f32 %v2451_v18, %v502_v12 }
 0x15a   :  { %v1839_v23 = vpop.eup %1838  ;;  %v443_v51 = vadd.f32 1e-05, %v411_v36  ;;  %v428_v52 = vadd.f32 1e-05, %v396_v38  ;;  %v565_v31 = vadd.f32 %v2458_v54, %v526_v49  ;;  %v503_v59 = vmul.f32 %v1837_v22, %v2341_v57 }
 0x15b   :  { %1762 = vmatmul.mubr.bf16.gmra.mxu1 %v599_v21  ;;  %v349_v14 = vpop.xlane.xlu1 %348  ;;  %v379_v5 = vpop.xlane.xlu0 %378  ;;  %v488_v40 = vmul.f32 %v1839_v23, %v2354_v63  ;;  %v580_v8 = vadd.f32 %v2458_v54, %v541_v6 }
 0x15c   :  { %1852 = vrsqrt.f32 %v443_v51  ;;  %v397_v2 = vmul.f32 0.03125, %v349_v14  ;;  %v412_v17 = vmul.f32 0.03125, %v379_v5  ;;  %v592_v39 = vpack.c.bf16 %v565_v31, %v564_v4 }
 0x15d   :  { %v1841_v32 = vpop.eup %1840  ;;  %1854 = vrsqrt.f32 %v428_v52  ;;  %v542_v56 = vmul.f32 %v2451_v18, %v503_v59  ;;  %v527_v10 = vmul.f32 %v2451_v18, %v488_v40 }
 0x15e   :  { %v1843_v0 = vpop.eup %1842  ;;  %v429_v55 = vadd.f32 1e-05, %v397_v2  ;;  %v444_v57 = vadd.f32 1e-05, %v412_v17  ;;  %1749 = vmatprep.mubr.bf16.mxu0 %v592_v39  ;;  %v489_v25 = vmul.f32 %v1841_v32, %v2358_v7  ;;  %v2556_v32 = vld [vmem:[%s2770_s4] ss:$0 sm:$0xff] }
 0x15f   :  { %v381_v24 = vpop.xlane.xlu1 %380  ;;  %v581_v63 = vadd.f32 %v2458_v54, %v542_v56  ;;  %v504_v53 = vmul.f32 %v1843_v0, %v2371_v16  ;;  %v566_v60 = vadd.f32 %v2458_v54, %v527_v10 }
 0x160   :  { %1856 = vrsqrt.f32 %v429_v55  ;;  %v413_v26 = vmul.f32 0.03125, %v381_v24  ;;  %v528_v43 = vmul.f32 %v2451_v18, %v489_v25 }
 0x161   :  { %v1845_v34 = vpop.eup %1844  ;;  %1858 = vrsqrt.f32 %v444_v57  ;;  %v600_v9 = vpack.c.bf16 %v581_v63, %v580_v8  ;;  %v543_v45 = vmul.f32 %v2451_v18, %v504_v53 }
 0x162   :  { %v1847_v33 = vpop.eup %1846  ;;  %v445_v35 = vadd.f32 1e-05, %v413_v26  ;;  %v567_v7 = vadd.f32 %v2458_v54, %v528_v43  ;;  %v505_v20 = vmul.f32 %v1845_v34, %v2375_v15 }
 0x163   :  { %1765 = vmatprep.mubr.bf16.mxu1 %v600_v9  ;;  %v490_v16 = vmul.f32 %v1847_v33, %v2388_v58  ;;  %v582_v1 = vadd.f32 %v2458_v54, %v543_v45 }
 0x164   :  { %1860 = vrsqrt.f32 %v445_v35  ;;  %v593_v46 = vpack.c.bf16 %v567_v7, %v566_v60  ;;  %v544_v3 = vmul.f32 %v2451_v18, %v505_v20 }
 0x165   :  { %v1849_v47 = vpop.eup %1848  ;;  %v529_v15 = vmul.f32 %v2451_v18, %v490_v16 }
 0x166   :  { %v1851_v62 = vpop.eup %1850  ;;  %1750 = vmatmul.mubr.bf16.gmra.mxu0 %v593_v46  ;;  %v583_v11 = vadd.f32 %v2458_v54, %v544_v3  ;;  %v491_v61 = vmul.f32 %v1849_v47, %v2392_v19 }
 0x167   :  { %v506_v13 = vmul.f32 %v1851_v62, %v2405_v29  ;;  %v568_v37 = vadd.f32 %v2458_v54, %v529_v15 }
 0x168   :  { %v601_v28 = vpack.c.bf16 %v583_v11, %v582_v1  ;;  %v530_v58 = vmul.f32 %v2451_v18, %v491_v61 }
 0x169   :  { %v1853_v27 = vpop.eup %1852  ;;  %v545_v38 = vmul.f32 %v2451_v18, %v506_v13 }
 0x16a   :  { %v1855_v50 = vpop.eup %1854  ;;  %1766 = vmatmul.mubr.bf16.gmra.mxu1 %v601_v28  ;;  %v569_v12 = vadd.f32 %v2458_v54, %v530_v58  ;;  %v507_v36 = vmul.f32 %v1853_v27, %v2409_v48 }
 0x16b   :  { %v492_v19 = vmul.f32 %v1855_v50, %v2419_v41  ;;  %v584_v4 = vadd.f32 %v2458_v54, %v545_v38 }
 0x16c   :  { %v594_v49 = vpack.c.bf16 %v569_v12, %v568_v37  ;;  %v546_v22 = vmul.f32 %v2451_v18, %v507_v36 }
 0x16d   :  { %v1857_v29 = vpop.eup %1856  ;;  %v531_v52 = vmul.f32 %v2451_v18, %v492_v19 }
 0x16e   :  { %v1859_v21 = vpop.eup %1858  ;;  %1753 = vmatprep.mubr.bf16.mxu0 %v594_v49  ;;  %v585_v23 = vadd.f32 %v2458_v54, %v546_v22  ;;  %v493_v51 = vmul.f32 %v1857_v29, %v2423_v30 }
 0x16f   :  { %v508_v48 = vmul.f32 %v1859_v21, %v2433_v42  ;;  %v570_v14 = vadd.f32 %v2458_v54, %v531_v52 }
 0x170   :  { %v602_v31 = vpack.c.bf16 %v585_v23, %v584_v4  ;;  %v532_v59 = vmul.f32 %v2451_v18, %v493_v51 }
 0x171   :  { %v1861_v41 = vpop.eup %1860  ;;  %v547_v40 = vmul.f32 %v2451_v18, %v508_v48 }
 0x172   :  { %1769 = vmatprep.mubr.bf16.mxu1 %v602_v31  ;;  %v571_v5 = vadd.f32 %v2458_v54, %v532_v59  ;;  %v509_v6 = vmul.f32 %v1861_v41, %v2437_v44 }
 0x173   :  { %v586_v17 = vadd.f32 %v2458_v54, %v547_v40 }
 0x174   :  { %v595_v2 = vpack.c.bf16 %v571_v5, %v570_v14  ;;  %v548_v30 = vmul.f32 %v2451_v18, %v509_v6 }
 0x176   :  { %1754 = vmatmul.mubr.bf16.gmra.mxu0 %v595_v2  ;;  %v587_v42 = vadd.f32 %v2458_v54, %v548_v30 }
 0x178   :  { %v603_v39 = vpack.c.bf16 %v587_v42, %v586_v17 }
 0x17a   :  { %1770 = vmatmul.mubr.bf16.gmra.mxu1 %v603_v39 }
 0x206   :  { %v1743_v56 = vpop.f32.mrf.mxu0 }
 0x207   :  { %v2559_v44 = vadd.f32 %v1743_v56, %v2556_v32 }
 0x208   :  { %v734_v10 = vpop.f32.mrf.mxu0 }
 0x209   :  { %v1433_v0 = vmul.f32 -1.702, %v2559_v44  ;;  %v2563_v18 = vadd.f32 %v2556_v32, %v734_v10 }
 0x20a   :  { %v1744_v55 = vpop.f32.mrf.mxu0 }
 0x20b   :  { %v1067_v57 = vmul.f32 1.442695, %v1433_v0  ;;  %v1431_v54 = vmul.f32 -1.702, %v2563_v18  ;;  %v2567_v25 = vadd.f32 %v1744_v55, %v2556_v32  ;;  %v1759_v24 = vpop.f32.mrf.mxu1 }
 0x20c   :  { %v2570_v8 = vadd.f32 %v1759_v24, %v2556_v32  ;;  %v737_v63 = vpop.f32.mrf.mxu0 }
 0x20d   :  { %1862 = vpow2.f32 %v1067_v57  ;;  %v1063_v53 = vmul.f32 1.442695, %v1431_v54  ;;  %v1434_v26 = vmul.f32 -1.702, %v2567_v25  ;;  %v2574_v43 = vadd.f32 %v2556_v32, %v737_v63  ;;  %v798_v34 = vpop.f32.mrf.mxu1 }
 0x20e   :  { %v1449_v9 = vmul.f32 -1.702, %v2570_v8  ;;  %v2578_v60 = vadd.f32 %v2556_v32, %v798_v34 }
 0x20f   :  { %1864 = vpow2.f32 %v1063_v53  ;;  %v1069_v33 = vmul.f32 1.442695, %v1434_v26  ;;  %v1432_v35 = vmul.f32 -1.702, %v2574_v43  ;;  %v1760_v7 = vpop.f32.mrf.mxu1 }
 0x210   :  { %v1099_v20 = vmul.f32 1.442695, %v1449_v9  ;;  %v1447_v45 = vmul.f32 -1.702, %v2578_v60  ;;  %v2583_v16 = vadd.f32 %v1760_v7, %v2556_v32 }
 0x211   :  { %1866 = vpow2.f32 %v1069_v33  ;;  %v1065_v46 = vmul.f32 1.442695, %v1432_v35  ;;  %v801_v3 = vpop.f32.mrf.mxu1 }
 0x212   :  { %1868 = vpow2.f32 %v1099_v20  ;;  %v1095_v47 = vmul.f32 1.442695, %v1447_v45  ;;  %v1450_v62 = vmul.f32 -1.702, %v2583_v16  ;;  %v2587_v1 = vadd.f32 %v2556_v32, %v801_v3 }
 0x213   :  { %1870 = vpow2.f32 %v1065_v46 }
 0x214   :  { %1872 = vpow2.f32 %v1095_v47  ;;  %v1101_v11 = vmul.f32 1.442695, %v1450_v62  ;;  %v1448_v61 = vmul.f32 -1.702, %v2587_v1 }
 0x216   :  { %1874 = vpow2.f32 %v1101_v11  ;;  %v1097_v15 = vmul.f32 1.442695, %v1448_v61  ;;  %v1747_v13 = vpop.f32.mrf.mxu0 }
 0x217   :  { %v2591_v28 = vadd.f32 %v1747_v13, %v2556_v32 }
 0x218   :  { %1876 = vpow2.f32 %v1097_v15  ;;  %v750_v58 = vpop.f32.mrf.mxu0 }
 0x219   :  { %v1437_v27 = vmul.f32 -1.702, %v2591_v28  ;;  %v2595_v50 = vadd.f32 %v2556_v32, %v750_v58 }
 0x21a   :  { %v1863_v37 = vpop.eup %1862  ;;  %v1748_v12 = vpop.f32.mrf.mxu0 }
 0x21b   :  { %v1129_v36 = vadd.f32 1.0, %v1863_v37  ;;  %v1075_v38 = vmul.f32 1.442695, %v1437_v27  ;;  %v1435_v19 = vmul.f32 -1.702, %v2595_v50  ;;  %v2599_v49 = vadd.f32 %v1748_v12, %v2556_v32  ;;  %v1763_v22 = vpop.f32.mrf.mxu1 }
 0x21c   :  { %v1865_v29 = vpop.eup %1864  ;;  %v2602_v21 = vadd.f32 %v1763_v22, %v2556_v32  ;;  %v753_v4 = vpop.f32.mrf.mxu0 }
 0x21d   :  { %1878 = vrcp.f32 %v1129_v36  ;;  %v1127_v23 = vadd.f32 1.0, %v1865_v29  ;;  %v1071_v51 = vmul.f32 1.442695, %v1435_v19  ;;  %v1438_v52 = vmul.f32 -1.702, %v2599_v49  ;;  %v814_v48 = vpop.f32.mrf.mxu1 }
 0x21e   :  { %v1867_v31 = vpop.eup %1866  ;;  %1880 = vpow2.f32 %v1075_v38  ;;  %v2606_v59 = vadd.f32 %v2556_v32, %v753_v4  ;;  %v2609_v41 = vadd.f32 %v2556_v32, %v814_v48  ;;  %v1453_v6 = vmul.f32 -1.702, %v2602_v21 }
 0x21f   :  { %v1869_v14 = vpop.eup %1868  ;;  %1882 = vrcp.f32 %v1127_v23  ;;  %v1130_v5 = vadd.f32 1.0, %v1867_v31  ;;  %v1764_v40 = vpop.f32.mrf.mxu1  ;;  %v1077_v17 = vmul.f32 1.442695, %v1438_v52 }
 0x220   :  { %v1871_v2 = vpop.eup %1870  ;;  %v1145_v30 = vadd.f32 1.0, %v1869_v14  ;;  %1884 = vpow2.f32 %v1071_v51  ;;  %v1436_v56 = vmul.f32 -1.702, %v2606_v59  ;;  %v2614_v10 = vadd.f32 %v1764_v40, %v2556_v32 }
 0x221   :  { %v1873_v42 = vpop.eup %1872  ;;  %1886 = vrcp.f32 %v1130_v5  ;;  %v1128_v39 = vadd.f32 1.0, %v1871_v2  ;;  %v817_v0 = vpop.f32.mrf.mxu1  ;;  %v1451_v57 = vmul.f32 -1.702, %v2609_v41  ;;  %v1107_v63 = vmul.f32 1.442695, %v1453_v6 }
 0x222   :  { %1888 = vrcp.f32 %v1145_v30  ;;  %v1143_v55 = vadd.f32 1.0, %v1873_v42  ;;  %v2618_v54 = vadd.f32 %v2556_v32, %v817_v0  ;;  %v1454_v53 = vmul.f32 -1.702, %v2614_v10 }
 0x223   :  { %v1875_v24 = vpop.eup %1874  ;;  %1890 = vrcp.f32 %v1128_v39  ;;  %v1073_v33 = vmul.f32 1.442695, %v1436_v56  ;;  %v1103_v7 = vmul.f32 1.442695, %v1451_v57 }
 0x224   :  { %1892 = vrcp.f32 %v1143_v55  ;;  %v1146_v26 = vadd.f32 1.0, %v1875_v24  ;;  %v1452_v34 = vmul.f32 -1.702, %v2618_v54  ;;  %v1109_v45 = vmul.f32 1.442695, %v1454_v53 }
 0x225   :  { %v1877_v9 = vpop.eup %1876  ;;  %1894 = vpow2.f32 %v1077_v17 }
 0x226   :  { %1896 = vrcp.f32 %v1146_v26  ;;  %v1144_v35 = vadd.f32 1.0, %v1877_v9  ;;  %v1751_v20 = vpop.f32.mrf.mxu0  ;;  %v1105_v3 = vmul.f32 1.442695, %v1452_v34 }
 0x227   :  { %1898 = vpow2.f32 %v1107_v63  ;;  %v2623_v46 = vadd.f32 %v1751_v20, %v2556_v32 }
 0x228   :  { %1900 = vrcp.f32 %v1144_v35  ;;  %v766_v47 = vpop.f32.mrf.mxu0 }
 0x229   :  { %1902 = vpow2.f32 %v1073_v33  ;;  %v1441_v62 = vmul.f32 -1.702, %v2623_v46  ;;  %v2627_v11 = vadd.f32 %v2556_v32, %v766_v47 }
 0x22a   :  { %v1879_v61 = vpop.eup %1878  ;;  %1904 = vpow2.f32 %v1103_v7  ;;  %v1752_v15 = vpop.f32.mrf.mxu0 }
 0x22b   :  { %v1767_v13 = vpop.f32.mrf.mxu1  ;;  %v1881_v58 = vpop.eup %1880  ;;  %1906 = vpow2.f32 %v1109_v45  ;;  %v1083_v27 = vmul.f32 1.442695, %v1441_v62  ;;  %v1439_v37 = vmul.f32 -1.702, %v2627_v11  ;;  %v2631_v38 = vadd.f32 %v1752_v15, %v2556_v32 }
 0x22c   :  { %v1883_v12 = vpop.eup %1882  ;;  %v1133_v36 = vadd.f32 1.0, %v1881_v58  ;;  %1908 = vpow2.f32 %v1105_v3  ;;  %v2634_v19 = vadd.f32 %v1767_v13, %v2556_v32  ;;  %v769_v22 = vpop.f32.mrf.mxu0  ;;  %v1225_v23 = vmul.f32 %v1879_v61, %v2559_v44 }
 0x22d   :  { %v830_v29 = vpop.f32.mrf.mxu1  ;;  %v1885_v4 = vpop.eup %1884  ;;  %1910 = vpow2.f32 %v1083_v27  ;;  %v1079_v51 = vmul.f32 1.442695, %v1439_v37  ;;  %v2638_v52 = vadd.f32 %v2556_v32, %v769_v22  ;;  %v1442_v14 = vmul.f32 -1.702, %v2631_v38 }
 0x22e   :  { %v1887_v48 = vpop.eup %1886  ;;  %1912 = vrcp.f32 %v1133_v36  ;;  %v1131_v31 = vadd.f32 1.0, %v1885_v4  ;;  %v1457_v5 = vmul.f32 -1.702, %v2634_v19  ;;  %v2645_v44 = vadd.f32 %v2556_v32, %v830_v29 }
 0x22f   :  { %v1768_v6 = vpop.f32.mrf.mxu1  ;;  %v1889_v40 = vpop.eup %1888  ;;  %v1226_v2 = vmul.f32 %v1887_v48, %v2567_v25  ;;  %1914 = vpow2.f32 %v1079_v51  ;;  %v1440_v30 = vmul.f32 -1.702, %v2638_v52  ;;  %v1223_v42 = vmul.f32 %v1883_v12, %v2563_v18 }
 0x230   :  { %v1891_v17 = vpop.eup %1890  ;;  %1916 = vrcp.f32 %v1131_v31  ;;  %v1085_v39 = vmul.f32 1.442695, %v1442_v14  ;;  %v1115_v56 = vmul.f32 1.442695, %v1457_v5  ;;  %v1455_v25 = vmul.f32 -1.702, %v2645_v44 }
 0x231   :  { %v833_v0 = vpop.f32.mrf.mxu1  ;;  %v1893_v55 = vpop.eup %1892  ;;  %v1599_v57 = vpack.c.bf16 %v1226_v2, %v1225_v23  ;;  %v1224_v24 = vmul.f32 %v1891_v17, %v2574_v43  ;;  %v1081_v63 = vmul.f32 1.442695, %v1440_v30  ;;  %v2651_v26 = vadd.f32 %v1768_v6, %v2556_v32 }
 0x232   :  { %v1895_v53 = vpop.eup %1894  ;;  %1918 = vpow2.f32 %v1085_v39  ;;  %v2654_v34 = vadd.f32 %v2556_v32, %v833_v0  ;;  %v1111_v43 = vmul.f32 1.442695, %v1455_v25  ;;  %v1241_v7 = vmul.f32 %v1889_v40, %v2570_v8 }
 0x233   :  { %v1897_v18 = vpop.eup %1896  ;;  %1686 = vst [vmem:[%s2771_s5 + $0x8] sm:$0xff] %v1599_v57   ;;  %v1594_v9 = vpack.c.bf16 %v1224_v24, %v1223_v42  ;;  %v1134_v33 = vadd.f32 1.0, %v1895_v53  ;;  %1920 = vpow2.f32 %v1115_v56  ;;  %v1458_v45 = vmul.f32 -1.702, %v2651_v26 }
 0x234   :  { %v1899_v35 = vpop.eup %1898  ;;  %v1242_v20 = vmul.f32 %v1897_v18, %v2583_v16  ;;  %1922 = vpow2.f32 %v1081_v63  ;;  %v1239_v47 = vmul.f32 %v1893_v55, %v2578_v60  ;;  %v1456_v61 = vmul.f32 -1.702, %v2654_v34 }
 0x235   :  { %v1901_v3 = vpop.eup %1900  ;;  %1595 = vst [vmem:[%s2771_s5] sm:$0xff] %v1594_v9   ;;  %1924 = vrcp.f32 %v1134_v33  ;;  %v1149_v62 = vadd.f32 1.0, %v1899_v35  ;;  %v1117_v16 = vmul.f32 1.442695, %v1458_v45 }
 0x236   :  { %v1903_v15 = vpop.eup %1902  ;;  %v1639_v13 = vpack.c.bf16 %v1242_v20, %v1241_v7  ;;  %v1240_v8 = vmul.f32 %v1901_v3, %v2587_v1  ;;  %1926 = vpow2.f32 %v1111_v43  ;;  %v1755_v58 = vpop.f32.mrf.mxu0  ;;  %v1113_v14 = vmul.f32 1.442695, %v1456_v61 }
 0x237   :  { %v1905_v27 = vpop.eup %1904  ;;  %1928 = vrcp.f32 %v1149_v62  ;;  %v1132_v37 = vadd.f32 1.0, %v1903_v15  ;;  %v2669_v12 = vadd.f32 %v1755_v58, %v2556_v32 }
 0x238   :  { %v1907_v36 = vpop.eup %1906  ;;  %1694 = vst [vmem:[%s2771_s5 + $0x48] sm:$0xff] %v1639_v13   ;;  %v1634_v60 = vpack.c.bf16 %v1240_v8, %v1239_v47  ;;  %v1147_v22 = vadd.f32 1.0, %v1905_v27  ;;  %1930 = vpow2.f32 %v1117_v16  ;;  %v782_v29 = vpop.f32.mrf.mxu0 }
 0x239   :  { %v1909_v4 = vpop.eup %1908  ;;  %1932 = vrcp.f32 %v1132_v37  ;;  %v1150_v1 = vadd.f32 1.0, %v1907_v36  ;;  %v1445_v23 = vmul.f32 -1.702, %v2669_v12  ;;  %v2676_v51 = vadd.f32 %v2556_v32, %v782_v29 }
 0x23a   :  { %v1911_v48 = vpop.eup %1910  ;;  %1693 = vst [vmem:[%s2771_s5 + $0x40] sm:$0xff] %v1634_v60   ;;  %1934 = vrcp.f32 %v1147_v22  ;;  %v1148_v31 = vadd.f32 1.0, %v1909_v4  ;;  %v1756_v5 = vpop.f32.mrf.mxu0 }
 0x23b   :  { %v1771_v6 = vpop.f32.mrf.mxu1  ;;  %v1913_v40 = vpop.eup %1912  ;;  %1936 = vrcp.f32 %v1150_v1  ;;  %v1137_v2 = vadd.f32 1.0, %v1911_v48  ;;  %v1443_v30 = vmul.f32 -1.702, %v2676_v51  ;;  %v1091_v42 = vmul.f32 1.442695, %v1445_v23 }
 0x23c   :  { %v1915_v17 = vpop.eup %1914  ;;  %1938 = vrcp.f32 %v1148_v31  ;;  %v2683_v39 = vadd.f32 %v1756_v5, %v2556_v32  ;;  %v2686_v56 = vadd.f32 %v1771_v6, %v2556_v32  ;;  %v785_v0 = vpop.f32.mrf.mxu0  ;;  %v1229_v20 = vmul.f32 %v1913_v40, %v2591_v28 }
 0x23d   :  { %v846_v55 = vpop.f32.mrf.mxu1  ;;  %v1917_v57 = vpop.eup %1916  ;;  %1940 = vrcp.f32 %v1137_v2  ;;  %v1135_v24 = vadd.f32 1.0, %v1915_v17  ;;  %v1087_v63 = vmul.f32 1.442695, %v1443_v30  ;;  %v2689_v25 = vadd.f32 %v2556_v32, %v785_v0 }
 0x23e   :  { %1942 = vpow2.f32 %v1113_v14  ;;  %v1446_v53 = vmul.f32 -1.702, %v2683_v39  ;;  %v1461_v33 = vmul.f32 -1.702, %v2686_v56  ;;  %v2694_v43 = vadd.f32 %v2556_v32, %v846_v55 }
 0x23f   :  { %v1772_v18 = vpop.f32.mrf.mxu1  ;;  %v1919_v9 = vpop.eup %1918  ;;  %1944 = vrcp.f32 %v1135_v24  ;;  %v1444_v15 = vmul.f32 -1.702, %v2689_v25 }
 0x240   :  { %v2697_v35 = vadd.f32 %v1772_v18, %v2556_v32  ;;  %v1921_v7 = vpop.eup %1920  ;;  %v1138_v45 = vadd.f32 1.0, %v1919_v9  ;;  %1946 = vpow2.f32 %v1091_v42  ;;  %v1093_v61 = vmul.f32 1.442695, %v1446_v53 }
 0x241   :  { %v849_v3 = vpop.f32.mrf.mxu1  ;;  %v1923_v47 = vpop.eup %1922  ;;  %v1153_v62 = vadd.f32 1.0, %v1921_v7  ;;  %1948 = vpow2.f32 %v1087_v63  ;;  %v1459_v16 = vmul.f32 -1.702, %v2694_v43  ;;  %v1123_v37 = vmul.f32 1.442695, %v1461_v33 }
 0x242   :  { %v1925_v13 = vpop.eup %1924  ;;  %1950 = vrcp.f32 %v1138_v45  ;;  %v1136_v8 = vadd.f32 1.0, %v1923_v47  ;;  %v2703_v58 = vadd.f32 %v2556_v32, %v849_v3  ;;  %v1462_v36 = vmul.f32 -1.702, %v2697_v35 }
 0x243   :  { %v1927_v27 = vpop.eup %1926  ;;  %v1230_v28 = vmul.f32 %v1925_v13, %v2599_v49  ;;  %1952 = vrcp.f32 %v1153_v62  ;;  %v1089_v23 = vmul.f32 1.442695, %v1444_v15  ;;  %v1119_v31 = vmul.f32 1.442695, %v1459_v16 }
 0x244   :  { %v1929_v60 = vpop.eup %1928  ;;  %1954 = vrcp.f32 %v1136_v8  ;;  %v1151_v22 = vadd.f32 1.0, %v1927_v27  ;;  %v1460_v29 = vmul.f32 -1.702, %v2703_v58  ;;  %v1227_v49 = vmul.f32 %v1917_v57, %v2595_v50 }
 0x245   :  { %v1931_v4 = vpop.eup %1930  ;;  %v1609_v1 = vpack.c.bf16 %v1230_v28, %v1229_v20  ;;  %1956 = vpow2.f32 %v1093_v61  ;;  %v1125_v6 = vmul.f32 1.442695, %v1462_v36  ;;  %v1245_v17 = vmul.f32 %v1929_v60, %v2602_v21 }
 0x246   :  { %v1933_v48 = vpop.eup %1932  ;;  %1958 = vrcp.f32 %v1151_v22  ;;  %v1154_v32 = vadd.f32 1.0, %v1931_v4  ;;  %v1121_v2 = vmul.f32 1.442695, %v1460_v29 }
 0x247   :  { %v1935_v14 = vpop.eup %1934  ;;  %1688 = vst [vmem:[%s2771_s5 + $0x18] sm:$0xff] %v1609_v1   ;;  %v1228_v5 = vmul.f32 %v1933_v48, %v2606_v59  ;;  %1960 = vpow2.f32 %v1123_v37 }
 0x248   :  { %v1937_v40 = vpop.eup %1936  ;;  %1962 = vrcp.f32 %v1154_v32  ;;  %v1243_v50 = vmul.f32 %v1935_v14, %v2609_v41 }
 0x249   :  { %v1939_v30 = vpop.eup %1938  ;;  %v1604_v42 = vpack.c.bf16 %v1228_v5, %v1227_v49  ;;  %v1246_v0 = vmul.f32 %v1937_v40, %v2614_v10  ;;  %1964 = vpow2.f32 %v1089_v23 }
 0x24a   :  { %v1941_v55 = vpop.eup %1940  ;;  %v1244_v57 = vmul.f32 %v1939_v30, %v2618_v54  ;;  %1966 = vpow2.f32 %v1119_v31 }
 0x24b   :  { %v1943_v24 = vpop.eup %1942  ;;  %1687 = vst [vmem:[%s2771_s5 + $0x10] sm:$0xff] %v1604_v42   ;;  %v1649_v59 = vpack.c.bf16 %v1246_v0, %v1245_v17  ;;  %1968 = vpow2.f32 %v1125_v6  ;;  %v1233_v33 = vmul.f32 %v1941_v55, %v2623_v46 }
 0x24c   :  { %v1945_v63 = vpop.eup %1944  ;;  %v1644_v53 = vpack.c.bf16 %v1244_v57, %v1243_v50  ;;  %v1152_v21 = vadd.f32 1.0, %v1943_v24  ;;  %1970 = vpow2.f32 %v1121_v2 }
 0x24d   :  { %v1947_v18 = vpop.eup %1946  ;;  %1696 = vst [vmem:[%s2771_s5 + $0x58] sm:$0xff] %v1649_v59   ;;  %v1231_v3 = vmul.f32 %v1945_v63, %v2627_v11 }
 0x24e   :  { %v1949_v41 = vpop.eup %1948  ;;  %1695 = vst [vmem:[%s2771_s5 + $0x50] sm:$0xff] %v1644_v53   ;;  %1972 = vrcp.f32 %v1152_v21  ;;  %v1141_v54 = vadd.f32 1.0, %v1947_v18 }
 0x24f   :  { %v1951_v10 = vpop.eup %1950  ;;  %v1139_v15 = vadd.f32 1.0, %v1949_v41 }
 0x250   :  { %v1953_v9 = vpop.eup %1952  ;;  %v1234_v7 = vmul.f32 %v1951_v10, %v2631_v38  ;;  %1974 = vrcp.f32 %v1141_v54 }
 0x251   :  { %v1955_v20 = vpop.eup %1954  ;;  %v1249_v28 = vmul.f32 %v1953_v9, %v2634_v19 }
 0x252   :  { %v1957_v45 = vpop.eup %1956  ;;  %v1619_v47 = vpack.c.bf16 %v1234_v7, %v1233_v33  ;;  %v1232_v62 = vmul.f32 %v1955_v20, %v2638_v52 }
 0x253   :  { %v1959_v61 = vpop.eup %1958  ;;  %v1142_v13 = vadd.f32 1.0, %v1957_v45 }
 0x254   :  { %v1961_v8 = vpop.eup %1960  ;;  %1690 = vst [vmem:[%s2771_s5 + $0x28] sm:$0xff] %v1619_v47   ;;  %v1614_v16 = vpack.c.bf16 %v1232_v62, %v1231_v3 }
 0x255   :  { %v1963_v46 = vpop.eup %1962  ;;  %1976 = vrcp.f32 %v1142_v13  ;;  %v1157_v38 = vadd.f32 1.0, %v1961_v8 }
 0x256   :  { %v1965_v27 = vpop.eup %1964  ;;  %1689 = vst [vmem:[%s2771_s5 + $0x20] sm:$0xff] %v1614_v16   ;;  %v1250_v11 = vmul.f32 %v1963_v46, %v2651_v26  ;;  %1978 = vrcp.f32 %v1139_v15  ;;  %v1247_v26 = vmul.f32 %v1959_v61, %v2645_v44 }
 0x257   :  { %v1967_v52 = vpop.eup %1966  ;;  %v1140_v37 = vadd.f32 1.0, %v1965_v27  ;;  %1980 = vrcp.f32 %v1157_v38 }
 0x258   :  { %v1969_v36 = vpop.eup %1968  ;;  %v1659_v60 = vpack.c.bf16 %v1250_v11, %v1249_v28  ;;  %v1155_v22 = vadd.f32 1.0, %v1967_v52 }
 0x259   :  { %v1971_v29 = vpop.eup %1970  ;;  %1982 = vrcp.f32 %v1140_v37  ;;  %v1158_v4 = vadd.f32 1.0, %v1969_v36 }
 0x25a   :  { %1698 = vst [vmem:[%s2771_s5 + $0x68] sm:$0xff] %v1659_v60   ;;  %1984 = vrcp.f32 %v1155_v22  ;;  %v1156_v19 = vadd.f32 1.0, %v1971_v29 }
 0x25b   :  { %v1973_v1 = vpop.eup %1972  ;;  %1986 = vrcp.f32 %v1158_v4 }
 0x25c   :  { %v1248_v23 = vmul.f32 %v1973_v1, %v2654_v34  ;;  %1988 = vrcp.f32 %v1156_v19 }
 0x25d   :  { %v1975_v32 = vpop.eup %1974 }
 0x25e   :  { %v1654_v48 = vpack.c.bf16 %v1248_v23, %v1247_v26  ;;  %v1237_v14 = vmul.f32 %v1975_v32, %v2669_v12 }
 0x260   :  { %1697 = vst [vmem:[%s2771_s5 + $0x60] sm:$0xff] %v1654_v48  }
 0x262   :  { %v1977_v31 = vpop.eup %1976 }
 0x263   :  { %v1238_v49 = vmul.f32 %v1977_v31, %v2683_v39  ;;  %v1979_v5 = vpop.eup %1978 }
 0x264   :  { %v1981_v6 = vpop.eup %1980  ;;  %v1235_v44 = vmul.f32 %v1979_v5, %v2676_v51 }
 0x265   :  { %v1629_v40 = vpack.c.bf16 %v1238_v49, %v1237_v14  ;;  %v1253_v0 = vmul.f32 %v1981_v6, %v2686_v56 }
 0x266   :  { %v1983_v2 = vpop.eup %1982 }
 0x267   :  { %v1985_v30 = vpop.eup %1984  ;;  %1692 = vst [vmem:[%s2771_s5 + $0x38] sm:$0xff] %v1629_v40   ;;  %v1236_v34 = vmul.f32 %v1983_v2, %v2689_v25 }
 0x268   :  { %v1987_v17 = vpop.eup %1986  ;;  %v1251_v55 = vmul.f32 %v1985_v30, %v2694_v43 }
 0x269   :  { %v1989_v42 = vpop.eup %1988  ;;  %v1624_v12 = vpack.c.bf16 %v1236_v34, %v1235_v44  ;;  %v1254_v39 = vmul.f32 %v1987_v17, %v2697_v35 }
 0x26a   :  { %v1252_v50 = vmul.f32 %v1989_v42, %v2703_v58 }
 0x26b   :  { %1691 = vst [vmem:[%s2771_s5 + $0x30] sm:$0xff] %v1624_v12   ;;  %v1669_v51 = vpack.c.bf16 %v1254_v39, %v1253_v0 }
 0x26c   :  { %v1664_v57 = vpack.c.bf16 %v1252_v50, %v1251_v55 }
 0x26d   :  { %1700 = vst [vmem:[%s2771_s5 + $0x78] sm:$0xff] %v1669_v51  }
 0x26e   :  { %1699 = vst [vmem:[%s2771_s5 + $0x70] sm:$0xff] %v1664_v57  }

// kernel: _lambda_.27
= control target key start
LH: loop header
LB: loop body
LE: loop exit
PB: predicated region body
PF: predicated region fallthrough
CT: control target
= control target key end

     0   :  { %v193_v0 = vmov 0.0   ;;  %vm194_vm0 = vmmov 0   ;;  %s248_s1 = inlined_call_operand.vmem [shape: bf16[128,128], index: 1, kind: input, shape index: {}]   ;;  %s249_s0 = inlined_call_operand.vmem [shape: bf16[8,128], index: 0, kind: input, shape index: {}]   ;;  %s250_s2 = inlined_call_operand.vmem [shape: f32[1,128], index: 2, kind: input, shape index: {}]   ;;  %s251_s3 = inlined_call_operand.vmem [shape: f32[8,128], index: 3, kind: output, shape index: {}]  }
   0x1   :  { %163 = vmatprep.subr.bf16.mxu0 %v193_v0  ;;  %v185_v1 = vld [vmem:[%s248_s1 + $0x38] sm:$0xff]   ;;  %179 = vmatprep.mubr.msk.bf16.mxu0 %vm194_vm0, %v193_v0  ;;  %v186_v2 = vld [vmem:[%s248_s1 + $0x30] sm:$0xff]   ;;  %v187_v3 = vld [vmem:[%s248_s1 + $0x28] sm:$0xff]  }
   0x2   :  { %164 = vmatpush3.bf16.msra.mxu0 %v185_v1  ;;  %v188_v4 = vld [vmem:[%s248_s1 + $0x20] sm:$0xff]   ;;  %v189_v5 = vld [vmem:[%s248_s1 + $0x18] sm:$0xff]   ;;  %v190_v6 = vld [vmem:[%s248_s1 + $0x10] sm:$0xff]  }
   0x3   :  { %165 = vmatprep.subr.bf16.mxu0 %v193_v0  ;;  %v191_v7 = vld [vmem:[%s248_s1 + $0x8] sm:$0xff]   ;;  %v192_v8 = vld [vmem:[%s248_s1] sm:$0xff]  }
   0x4   :  { %v20_v9 = vld [vmem:[%s249_s0] sm:$0xf] }
   0x5   :  { %v153_v10 = vld [vmem:[%s250_s2] ss:$0 sm:$0xff] }
   0x6   :  { %166 = vmatpush3.bf16.msra.mxu0 %v186_v2 }
   0x7   :  { %167 = vmatprep.subr.bf16.mxu0 %v193_v0 }
   0xa   :  { %168 = vmatpush3.bf16.msra.mxu0 %v187_v3 }
   0xb   :  { %169 = vmatprep.subr.bf16.mxu0 %v193_v0 }
   0xe   :  { %170 = vmatpush3.bf16.msra.mxu0 %v188_v4 }
   0xf   :  { %171 = vmatprep.subr.bf16.mxu0 %v193_v0 }
  0x12   :  { %172 = vmatpush3.bf16.msra.mxu0 %v189_v5 }
  0x13   :  { %173 = vmatprep.subr.bf16.mxu0 %v193_v0 }
  0x16   :  { %174 = vmatpush3.bf16.msra.mxu0 %v190_v6 }
  0x17   :  { %175 = vmatprep.subr.bf16.mxu0 %v193_v0 }
  0x1a   :  { %176 = vmatpush3.bf16.msra.mxu0 %v191_v7 }
  0x1b   :  { %177 = vmatprep.subr.bf16.mxu0 %v193_v0 }
  0x1e   :  { %178 = vmatpush3.bf16.msra.mxu0 %v192_v8 }
  0x21   :  { %180 = vmatmul.mubr.bf16.vlgmr.msra.gmra.mxu0 %v20_v9 }
  0xe1   :  { %v120_v11 = vpop.f32.mrf.mxu0 }
  0xe2   :  { %v139_v12 = vadd.f32 %v153_v10, %v120_v11 }
  0xe3   :  { %v181_v13 = vpop.f32.mrf.mxu0 }
  0xe4   :  { %140 = vst [vmem:[%s251_s3] sm:$0xff] %v139_v12 }
  0xe5   :  { %v123_v14 = vpop.f32.mrf.mxu0 }
  0xe7   :  { %v182_v15 = vpop.f32.mrf.mxu0 }

</bundles_post_ra>
